<compile_context>
chip_gen: v5e
topology: v5e:2x2
jax: 0.10.0
libtpu: 0.0.40
codegen_flags: <defaults>
</compile_context>

<pallas_src>
import functools

import jax
import jax.numpy as jnp
from jax.experimental import pallas as pl
from jax.experimental.pallas import tpu as pltpu


# ----------------------------------------------------------------------------
# Pallas kernels
# ----------------------------------------------------------------------------
def _matmul_bias_act_kernel(a_ref, w_ref, b_ref, o_ref, *, activation):
    acc = jnp.dot(a_ref[...], w_ref[...], preferred_element_type=jnp.float32)
    acc = acc + b_ref[...]                      # (M,N) + (1,N) broadcast
    if activation == "tanh":
        acc = jnp.tanh(acc)
    o_ref[...] = acc


def matmul_bias_act(a, w, b, activation="none"):
    """o = act(a @ w + b).  bf16 operands on the MXU, f32 accumulate/epilogue.

    When M divides cleanly we split it 2-way on a "parallel" grid axis so the
    second TensorCore on v7x gets used (no effect on v5e/v6e, harmless).
    """
    a = a.astype(jnp.bfloat16)
    w = w.astype(jnp.bfloat16)
    M, K = a.shape
    N = w.shape[1]
    b2 = b.reshape(1, N).astype(jnp.float32)

    if M % 32 == 0 and M >= 64:
        gm, bm = 2, M // 2
    else:
        gm, bm = 1, M

    return pl.pallas_call(
        functools.partial(_matmul_bias_act_kernel, activation=activation),
        out_shape=jax.ShapeDtypeStruct((M, N), jnp.float32),
        grid=(gm,),
        in_specs=[pl.BlockSpec((bm, K), lambda i: (i, 0)),
                  pl.BlockSpec((K, N), lambda i: (0, 0)),
                  pl.BlockSpec((1, N), lambda i: (0, 0))],
        out_specs=pl.BlockSpec((bm, N), lambda i: (i, 0)),
        compiler_params=pltpu.CompilerParams(
            dimension_semantics=("parallel",)),
    )(a, w, b2)


def _chain_kernel(x_ref, *refs, scales):
    """Fused chain of 1x1-spatial conv layers: h = tanh(h @ W_i + b_i) * s_i.

    refs = (w0, b0, w1, b1, ..., o_ref).  scales is a static tuple: 0.25 for
    layers followed by the padded 2x2 average pool on a 1x1 map, 1.0 for the
    last layer (GlobalPooling on a 1x1 map is the identity).
    """
    o_ref = refs[-1]
    n_layers = len(scales)
    h = x_ref[...].astype(jnp.bfloat16)
    for idx in range(n_layers):
        w = refs[2 * idx][...]
        b = refs[2 * idx + 1][...]
        h = jnp.tanh(jnp.dot(h, w, preferred_element_type=jnp.float32) + b)
        if scales[idx] != 1.0:
            h = h * scales[idx]
        if idx + 1 < n_layers:
            h = h.astype(jnp.bfloat16)
    o_ref[...] = h


def fused_1x1_chain(x, layers):
    """Fused tail of the conv tower on (N, C) features (spatial already 1x1).

    layers: list of (weight (K, Cout), bias (Cout,), post_scale) tuples.
    """
    N, C0 = x.shape
    scales = tuple(float(s) for (_, _, s) in layers)
    operands = [x.astype(jnp.bfloat16)]
    in_specs = [pl.BlockSpec((N, C0), lambda: (0, 0))]
    for (w, b, _) in layers:
        K, Cout = w.shape
        operands.append(w.astype(jnp.bfloat16))
        operands.append(b.reshape(1, Cout).astype(jnp.float32))
        in_specs.append(pl.BlockSpec((K, Cout), lambda: (0, 0)))
        in_specs.append(pl.BlockSpec((1, Cout), lambda: (0, 0)))
    Cout_last = layers[-1][0].shape[1]
    return pl.pallas_call(
        functools.partial(_chain_kernel, scales=scales),
        out_shape=jax.ShapeDtypeStruct((N, Cout_last), jnp.float32),
        in_specs=in_specs,
        out_specs=pl.BlockSpec((N, Cout_last), lambda: (0, 0)),
    )(*operands)


def _sa_fc_kernel(f_ref, w1_ref, b1_ref, w2_ref, b2_ref, o_ref):
    g = jnp.dot(f_ref[...], w1_ref[...],
                preferred_element_type=jnp.float32) + b1_ref[...]
    g = jnp.maximum(g, 0.0)
    a = jnp.dot(g.astype(jnp.bfloat16), w2_ref[...],
                preferred_element_type=jnp.float32) + b2_ref[...]
    o_ref[...] = a


def sa_fc(f, w1, b1, w2, b2):
    """Fused SplitAttention fc1-relu-fc2 -> logits (N, C)."""
    N, C = f.shape
    I = w1.shape[1]
    return pl.pallas_call(
        _sa_fc_kernel,
        out_shape=jax.ShapeDtypeStruct((N, C), jnp.float32),
        in_specs=[pl.BlockSpec((N, C), lambda: (0, 0)),
                  pl.BlockSpec((C, I), lambda: (0, 0)),
                  pl.BlockSpec((1, I), lambda: (0, 0)),
                  pl.BlockSpec((I, C), lambda: (0, 0)),
                  pl.BlockSpec((1, C), lambda: (0, 0))],
        out_specs=pl.BlockSpec((N, C), lambda: (0, 0)),
    )(f.astype(jnp.bfloat16),
      w1.astype(jnp.bfloat16), b1.reshape(1, -1).astype(jnp.float32),
      w2.astype(jnp.bfloat16), b2.reshape(1, -1).astype(jnp.float32))


def _sv_curve_kernel(x_ref, thr_ref, d_ref, o_ref, *, steps):
    """Piecewise-linear multiplicative S/V curves, lane-dense packing.

    x_ref:   (R, 128)  packed S rows followed by V rows (pixels in lanes)
    thr_ref: (T, 1, 1) basis thresholds (first is -1 -> constant-1 basis)
    d_ref:   (T, R, 1) per-row basis weights (k0 and knot deltas)
    """
    x = x_ref[...]                                               # (R, 128)
    basis = jnp.clip(x[None] * steps - thr_ref[...], 0.0, 1.0)   # (T, R, 128)
    scale = jnp.sum(basis * d_ref[...], axis=0)                  # (R, 128)
    o_ref[...] = jnp.clip(x * scale, 0.0, 1.0)


def apply_sv_curves(s_plane, v_plane, h_vec, num_points):
    """CURL-style multiplicative S/V tone curves from knot logits h_vec."""
    half = num_points // 2
    steps = float(half - 1)
    knots = jnp.exp(h_vec.astype(jnp.float32))                   # (num_points,)
    ks, kv = knots[:half], knots[half:]
    d_s = jnp.concatenate([ks[:1], jnp.diff(ks)])                # (half,)
    d_v = jnp.concatenate([kv[:1], jnp.diff(kv)])
    thr = (jnp.arange(half, dtype=jnp.float32) - 1.0).reshape(half, 1, 1)

    Hh, Ww = s_plane.shape
    P = Hh * Ww
    rows = -(-P // 128)
    pad = rows * 128 - P

    def pack(plane):
        return jnp.pad(plane.reshape(-1), (0, pad)).reshape(rows, 128)

    sv = jnp.concatenate([pack(s_plane), pack(v_plane)],
                         axis=0).astype(jnp.float32)             # (2*rows,128)
    R = 2 * rows
    dmat = jnp.concatenate(
        [jnp.tile(d_s[:, None], (1, rows)), jnp.tile(d_v[:, None], (1, rows))],
        axis=1)[:, :, None].astype(jnp.float32)                  # (half, R, 1)

    out = pl.pallas_call(
        functools.partial(_sv_curve_kernel, steps=steps),
        out_shape=jax.ShapeDtypeStruct((R, 128), jnp.float32),
        in_specs=[pl.BlockSpec((R, 128), lambda: (0, 0)),
                  pl.BlockSpec((half, 1, 1), lambda: (0, 0, 0)),
                  pl.BlockSpec((half, R, 1), lambda: (0, 0, 0))],
        out_specs=pl.BlockSpec((R, 128), lambda: (0, 0)),
    )(sv, thr, dmat)

    s_out = out[:rows].reshape(-1)[:P].reshape(Hh, Ww)
    v_out = out[rows:].reshape(-1)[:P].reshape(Hh, Ww)
    return s_out, v_out


# ----------------------------------------------------------------------------
# Conv / pool wrappers (padding, im2col, reshapes stay in JAX; compute in
# the fused Pallas matmul kernel)
# ----------------------------------------------------------------------------
def conv3x3_tanh(x, w, b):
    """x: (N,H,W,Cin); w: (3,3,wcin,cout); stride 1, padding 1, tanh fused.

    * Input channels are sliced back to the weight's true width (zero-padded
      channels from the previous layer contribute nothing), keeping K small.
    * Output channels are zero-padded up to 128 (lane-dense stores); the
      padded channels are exactly zero so downstream math is unchanged.
    """
    N, H, W, _ = x.shape
    _, _, wcin, cout = w.shape
    x = x[..., :wcin]
    cout_pad = max(cout, 128)
    w = jnp.pad(w, ((0, 0), (0, 0), (0, 0), (0, cout_pad - cout)))
    b = jnp.pad(b, (0, cout_pad - cout))

    xp = jnp.pad(x, ((0, 0), (1, 1), (1, 1), (0, 0)))
    cols = [xp[:, dy:dy + H, dx:dx + W, :] for dy in range(3) for dx in range(3)]
    patches = jnp.concatenate(cols, axis=-1).reshape(N * H * W, 9 * wcin)
    out = matmul_bias_act(patches, w.reshape(9 * wcin, cout_pad), b,
                          activation="tanh")
    return out.reshape(N, H, W, cout_pad)


def avg_pool(x):
    """AvgPoolBlock: k=2,s=2; on a 1x1 map it is k=2,s=2,padding=1 (=> x/4).

    Plain-JAX reshape+mean so XLA fuses it (no dedicated pallas_call).
    """
    N, H, W, C = x.shape
    if H == 1 or W == 1:
        return x * 0.25
    return x.reshape(N, H // 2, 2, W // 2, 2, C).mean(axis=(2, 4))


def conv_tower(x_nchw, p):
    """self.conv_layer.

    3x3 conv+tanh+pool layers run as individual fused Pallas matmuls while the
    spatial map is > 1x1.  Once the map collapses to 1x1 every remaining 3x3
    conv only sees its centre tap (all other taps hit zero padding), the
    padded 2x2 pool is *0.25 and GlobalPooling is the identity -> the whole
    remainder (conv5, conv6, c7, c8, pools, GAP) is ONE fused Pallas kernel.
    """
    x = jnp.transpose(x_nchw, (0, 2, 3, 1)).astype(jnp.float32)  # NCHW -> NHWC
    li = 0
    while li < 6 and x.shape[1] > 1 and x.shape[2] > 1:
        x = conv3x3_tanh(x, p[f"c{li+1}_w"], p[f"c{li+1}_b"])
        x = avg_pool(x)
        li += 1

    N = x.shape[0]
    feat = x.reshape(N, -1)                        # spatial is 1x1 here
    layers = []
    for i in range(li, 6):                         # remaining 3x3 convs: centre tap
        layers.append((p[f"c{i+1}_w"][1, 1], p[f"c{i+1}_b"], 0.25))
    layers.append((p["c7_w"], p["c7_b"], 0.25))    # c7 1x1 conv + padded pool
    layers.append((p["c8_w"], p["c8_b"], 1.0))     # c8 1x1 conv; GAP == identity
    feat = feat[:, :layers[0][0].shape[0]]         # drop zero-padded channels
    return fused_1x1_chain(feat, layers)           # (N, 512)


# ----------------------------------------------------------------------------
# MCB / SplitAttention / HSV helpers
# ----------------------------------------------------------------------------
def mcb(x, y, p):
    # TODO(synk): original MCB source not provided; standard compact bilinear
    # pooling (count-sketch via signed scatter-add + FFT product) used.
    d = int(p["mcb_h1"].shape[0])
    sx = jnp.zeros((x.shape[0], d), jnp.float32).at[:, p["mcb_h1"]].add(
        x * p["mcb_s1"])
    sy = jnp.zeros((y.shape[0], d), jnp.float32).at[:, p["mcb_h2"]].add(
        y * p["mcb_s2"])
    fx = jnp.fft.rfft(sx, axis=-1)
    fy = jnp.fft.rfft(sy, axis=-1)
    return jnp.fft.irfft(fx * fy, n=d, axis=-1).astype(jnp.float32)


def split_attention(feat, p, radix=16, cardinality=4):
    # TODO(synk): SplitAttention source not provided; ResNeSt-style rSoftMax
    # channel gate (fc1-relu-fc2 in Pallas, softmax/gate as tiny XLA glue).
    N, C = feat.shape
    a = sa_fc(feat, p["sa_w1"], p["sa_b1"], p["sa_w2"], p["sa_b2"])
    a = a.reshape(N, cardinality, radix, C // (cardinality * radix))
    a = jax.nn.softmax(a, axis=2).reshape(N, C)
    return feat * a


def rgb_to_hsv(img):
    """img: (3,H,W) in [0,1] -> hsv (3,H,W) in [0,1]."""
    r, g, b = img[0], img[1], img[2]
    mx = jnp.maximum(jnp.maximum(r, g), b)
    mn = jnp.minimum(jnp.minimum(r, g), b)
    df = mx - mn
    eps = 1e-9
    hr = jnp.mod((g - b) / (df + eps), 6.0)
    hg = (b - r) / (df + eps) + 2.0
    hb = (r - g) / (df + eps) + 4.0
    h = jnp.where(mx == r, hr, jnp.where(mx == g, hg, hb)) / 6.0
    h = jnp.where(df <= eps, 0.0, h)
    s = jnp.where(mx <= eps, 0.0, df / (mx + eps))
    return jnp.stack([h, s, mx], axis=0)


def hsv_to_rgb(hsv):
    h, s, v = hsv[0] * 6.0, hsv[1], hsv[2]
    i = jnp.floor(h)
    f = h - i
    p = v * (1.0 - s)
    q = v * (1.0 - s * f)
    t = v * (1.0 - s * (1.0 - f))
    idx = jnp.mod(i, 6.0).astype(jnp.int32)
    conds = [idx == k for k in range(6)]
    r = jnp.select(conds, [v, q, p, p, t, v])
    g = jnp.select(conds, [t, v, v, q, p, p])
    b = jnp.select(conds, [p, p, t, v, v, q])
    return jnp.stack([r, g, b], axis=0)


# ----------------------------------------------------------------------------
# CUD_NET forward
# ----------------------------------------------------------------------------
def cud_net_forward(x, params, num_points=64):
    x = jnp.clip(x, 0.0, 1.0)
    img = x[:, 0:3]

    img_hsv = jnp.clip(rgb_to_hsv(img[0]), 0.0, 1.0)   # .squeeze(0): batch == 1

    # Batch the three towers (shared weights) => single pass at N=3.
    imgs = jnp.concatenate([x[:, 0:3], x[:, 3:6], x[:, 6:9]], axis=0)
    feats = conv_tower(imgs, params)                    # (3, 512)
    feat_img, feat_deu, feat_diff = feats[0:1], feats[1:2], feats[2:3]

    feat_img_deu = mcb(feat_img, feat_deu, params)
    feat_img_diff = mcb(feat_img, feat_diff, params)
    feat_fusion = mcb(feat_img_deu, feat_img_diff, params)
    feat_final = mcb(feat_img, feat_fusion, params)

    feat_final_att = split_attention(feat_final, params)
    feat_cat = jnp.concatenate([feat_img, feat_final_att], axis=1)   # (1,1024)

    # nn.Dropout(0.5) is identity in eval mode.
    H = matmul_bias_act(feat_cat, params["reg_w"], params["reg_b"])  # (1, 64)

    # adjust_sv: exp'd knots, piecewise-linear S/V curves (Pallas kernel).
    s_out, v_out = apply_sv_curves(img_hsv[1], img_hsv[2], H[0], num_points)
    img_hsv_out = jnp.clip(jnp.stack([img_hsv[0], s_out, v_out], axis=0),
                           0.0, 1.0)
    # clip_threshold=False branch skipped.
    img_rgb_out = jnp.clip(hsv_to_rgb(img_hsv_out), 0.0, 1.0)
    return img_rgb_out


# ----------------------------------------------------------------------------
# Deterministic parameter initialization
# ----------------------------------------------------------------------------
def init_params(key, num_points=64, bottleneck=512):
    keys = jax.random.split(key, 16)
    w = lambda k, shape, sc=0.05: sc * jax.random.normal(k, shape, jnp.float32)
    p = {}
    chans = [3, 16, 32, 64, 128, 256, 512]
    ki = 0
    for i in range(6):
        p[f"c{i+1}_w"] = w(keys[ki], (3, 3, chans[i], chans[i + 1])); ki += 1
        p[f"c{i+1}_b"] = jnp.zeros((chans[i + 1],), jnp.float32)
    p["c7_w"] = w(keys[ki], (512, bottleneck)); ki += 1
    p["c7_b"] = jnp.zeros((bottleneck,), jnp.float32)
    p["c8_w"] = w(keys[ki], (bottleneck, bottleneck)); ki += 1
    p["c8_b"] = jnp.zeros((bottleneck,), jnp.float32)

    # MCB count-sketch hash indices + signs (applied as a scatter-add).
    p["mcb_h1"] = jax.random.randint(keys[ki], (bottleneck,), 0, bottleneck); ki += 1
    p["mcb_h2"] = jax.random.randint(keys[ki], (bottleneck,), 0, bottleneck); ki += 1
    p["mcb_s1"] = jnp.where(jax.random.bernoulli(keys[ki], 0.5, (bottleneck,)),
                            1.0, -1.0).astype(jnp.float32); ki += 1
    p["mcb_s2"] = jnp.where(jax.random.bernoulli(keys[ki], 0.5, (bottleneck,)),
                            1.0, -1.0).astype(jnp.float32); ki += 1

    inter = bottleneck // 4
    p["sa_w1"] = w(keys[ki], (bottleneck, inter)); ki += 1
    p["sa_b1"] = jnp.zeros((inter,), jnp.float32)
    p["sa_w2"] = w(keys[ki], (inter, bottleneck)); ki += 1
    p["sa_b2"] = jnp.zeros((bottleneck,), jnp.float32)

    p["reg_w"] = w(keys[ki], (bottleneck * 2, num_points), sc=0.02); ki += 1
    p["reg_b"] = jnp.zeros((num_points,), jnp.float32)
    return p


if __name__ == "__main__":
    key = jax.random.PRNGKey(0)
    pkey, xkey = jax.random.split(key)
    params = init_params(pkey)

    # Input: batch 1 (the HSV output path of the module assumes batch size 1),
    # 9 channels = [rgb | deuteranopia-sim | diff], 16x16 spatial, NCHW.
    x = jax.random.uniform(xkey, (1, 9, 16, 16), dtype=jnp.float32)

    out = jax.jit(cud_net_forward)(x, params)
    jax.block_until_ready(out)
    assert out.shape == (3, 16, 16)
    assert bool(jnp.all(jnp.isfinite(out)))
    print("KERNEL_OK")
</pallas_src>

<mosaic_0001>
module attributes {stable_mosaic.version = 11 : i64} {
  func.func @_matmul_bias_act_kernel(%arg0: i32, %arg1: memref<384x27xbf16, #tpu.memory_space<vmem>>, %arg2: memref<27x128xbf16, #tpu.memory_space<vmem>>, %arg3: memref<1x128xf32, #tpu.memory_space<vmem>>, %arg4: memref<384x128xf32, #tpu.memory_space<vmem>>) attributes {dimension_semantics = [#tpu.dimension_semantics<parallel>], iteration_bounds = array<i64: 2>, scalar_prefetch = 0 : i64, scratch_operands = 0 : i64, tpu.core_type = #tpu.core_type<tc>, window_params = [{transform_indices = @transform_0, window_bounds = array<i64: 384, 27>}, {pipeline_mode = #tpu.pipeline_mode<synchronous>, transform_indices = @transform_1, window_bounds = array<i64: 27, 128>}, {pipeline_mode = #tpu.pipeline_mode<synchronous>, transform_indices = @transform_2, window_bounds = array<i64: 1, 128>}, {transform_indices = @transform_3, window_bounds = array<i64: 384, 128>}]} {
    %c0 = arith.constant 0 : index
    %c0_0 = arith.constant 0 : index
    %0 = vector.load %arg1[%c0, %c0_0] : memref<384x27xbf16, #tpu.memory_space<vmem>>, vector<384x27xbf16>
    %c0_1 = arith.constant 0 : index
    %c0_2 = arith.constant 0 : index
    %1 = vector.load %arg2[%c0_1, %c0_2] : memref<27x128xbf16, #tpu.memory_space<vmem>>, vector<27x128xbf16>
    %cst = arith.constant dense<0.000000e+00> : vector<384x128xf32>
    %2 = tpu.matmul %0, %1, %cst {dimension_numbers = #tpu.dot_dimension_numbers<[1], [0], [0], [1], [0, 0, 1, 1], [], []>} : vector<384x27xbf16>, vector<27x128xbf16>, vector<384x128xf32> -> vector<384x128xf32>
    %c0_3 = arith.constant 0 : index
    %c0_4 = arith.constant 0 : index
    %3 = vector.load %arg3[%c0_3, %c0_4] : memref<1x128xf32, #tpu.memory_space<vmem>>, vector<1x128xf32>
    %4 = vector.broadcast %3 : vector<1x128xf32> to vector<384x128xf32>
    %5 = arith.addf %2, %4 : vector<384x128xf32>
    %6 = math.tanh %5 : vector<384x128xf32>
    %c0_5 = arith.constant 0 : index
    %c0_6 = arith.constant 0 : index
    %7 = vector.load %arg4[%c0_5, %c0_6] : memref<384x128xf32, #tpu.memory_space<vmem>>, vector<384x128xf32>
    tpu.vector_store %arg4[%c0_5, %c0_6], %6 {strides = array<i32>} : memref<384x128xf32, #tpu.memory_space<vmem>>, vector<384x128xf32>,
    return
  }
  func.func @transform_0(%arg0: i32) -> (i32, i32) {
    %c0_i32 = arith.constant 0 : i32
    %c0_i32_0 = arith.constant 0 : i32
    return %arg0, %c0_i32 : i32, i32
  }
  func.func @transform_1(%arg0: i32) -> (i32, i32) {
    %c0_i32 = arith.constant 0 : i32
    %c0_i32_0 = arith.constant 0 : i32
    %c0_i32_1 = arith.constant 0 : i32
    return %c0_i32, %c0_i32_0 : i32, i32
  }
  func.func @transform_2(%arg0: i32) -> (i32, i32) {
    %c0_i32 = arith.constant 0 : i32
    %c0_i32_0 = arith.constant 0 : i32
    %c0_i32_1 = arith.constant 0 : i32
    return %c0_i32, %c0_i32_0 : i32, i32
  }
  func.func @transform_3(%arg0: i32) -> (i32, i32) {
    %c0_i32 = arith.constant 0 : i32
    %c0_i32_0 = arith.constant 0 : i32
    return %arg0, %c0_i32 : i32, i32
  }
}

module attributes {stable_mosaic.version = 11 : i64} {
  func.func @_matmul_bias_act_kernel(%arg0: i32, %arg1: memref<96x144xbf16, #tpu.memory_space<vmem>>, %arg2: memref<144x128xbf16, #tpu.memory_space<vmem>>, %arg3: memref<1x128xf32, #tpu.memory_space<vmem>>, %arg4: memref<96x128xf32, #tpu.memory_space<vmem>>) attributes {dimension_semantics = [#tpu.dimension_semantics<parallel>], iteration_bounds = array<i64: 2>, scalar_prefetch = 0 : i64, scratch_operands = 0 : i64, tpu.core_type = #tpu.core_type<tc>, window_params = [{transform_indices = @transform_0, window_bounds = array<i64: 96, 144>}, {pipeline_mode = #tpu.pipeline_mode<synchronous>, transform_indices = @transform_1, window_bounds = array<i64: 144, 128>}, {pipeline_mode = #tpu.pipeline_mode<synchronous>, transform_indices = @transform_2, window_bounds = array<i64: 1, 128>}, {transform_indices = @transform_3, window_bounds = array<i64: 96, 128>}]} {
    %c0 = arith.constant 0 : index
    %c0_0 = arith.constant 0 : index
    %0 = vector.load %arg1[%c0, %c0_0] : memref<96x144xbf16, #tpu.memory_space<vmem>>, vector<96x144xbf16>
    %c0_1 = arith.constant 0 : index
    %c0_2 = arith.constant 0 : index
    %1 = vector.load %arg2[%c0_1, %c0_2] : memref<144x128xbf16, #tpu.memory_space<vmem>>, vector<144x128xbf16>
    %cst = arith.constant dense<0.000000e+00> : vector<96x128xf32>
    %2 = tpu.matmul %0, %1, %cst {dimension_numbers = #tpu.dot_dimension_numbers<[1], [0], [0], [1], [0, 0, 1, 1], [], []>} : vector<96x144xbf16>, vector<144x128xbf16>, vector<96x128xf32> -> vector<96x128xf32>
    %c0_3 = arith.constant 0 : index
    %c0_4 = arith.constant 0 : index
    %3 = vector.load %arg3[%c0_3, %c0_4] : memref<1x128xf32, #tpu.memory_space<vmem>>, vector<1x128xf32>
    %4 = vector.broadcast %3 : vector<1x128xf32> to vector<96x128xf32>
    %5 = arith.addf %2, %4 : vector<96x128xf32>
    %6 = math.tanh %5 : vector<96x128xf32>
    %c0_5 = arith.constant 0 : index
    %c0_6 = arith.constant 0 : index
    %7 = vector.load %arg4[%c0_5, %c0_6] : memref<96x128xf32, #tpu.memory_space<vmem>>, vector<96x128xf32>
    tpu.vector_store %arg4[%c0_5, %c0_6], %6 {strides = array<i32>} : memref<96x128xf32, #tpu.memory_space<vmem>>, vector<96x128xf32>,
    return
  }
  func.func @transform_0(%arg0: i32) -> (i32, i32) {
    %c0_i32 = arith.constant 0 : i32
    %c0_i32_0 = arith.constant 0 : i32
    return %arg0, %c0_i32 : i32, i32
  }
  func.func @transform_1(%arg0: i32) -> (i32, i32) {
    %c0_i32 = arith.constant 0 : i32
    %c0_i32_0 = arith.constant 0 : i32
    %c0_i32_1 = arith.constant 0 : i32
    return %c0_i32, %c0_i32_0 : i32, i32
  }
  func.func @transform_2(%arg0: i32) -> (i32, i32) {
    %c0_i32 = arith.constant 0 : i32
    %c0_i32_0 = arith.constant 0 : i32
    %c0_i32_1 = arith.constant 0 : i32
    return %c0_i32, %c0_i32_0 : i32, i32
  }
  func.func @transform_3(%arg0: i32) -> (i32, i32) {
    %c0_i32 = arith.constant 0 : i32
    %c0_i32_0 = arith.constant 0 : i32
    return %arg0, %c0_i32 : i32, i32
  }
}

module attributes {stable_mosaic.version = 11 : i64} {
  func.func @_matmul_bias_act_kernel(%arg0: i32, %arg1: memref<48x288xbf16, #tpu.memory_space<vmem>>, %arg2: memref<288x128xbf16, #tpu.memory_space<vmem>>, %arg3: memref<1x128xf32, #tpu.memory_space<vmem>>, %arg4: memref<48x128xf32, #tpu.memory_space<vmem>>) attributes {dimension_semantics = [#tpu.dimension_semantics<parallel>], iteration_bounds = array<i64: 1>, scalar_prefetch = 0 : i64, scratch_operands = 0 : i64, tpu.core_type = #tpu.core_type<tc>, window_params = [{transform_indices = @transform_0, window_bounds = array<i64: 48, 288>}, {pipeline_mode = #tpu.pipeline_mode<synchronous>, transform_indices = @transform_1, window_bounds = array<i64: 288, 128>}, {pipeline_mode = #tpu.pipeline_mode<synchronous>, transform_indices = @transform_2, window_bounds = array<i64: 1, 128>}, {transform_indices = @transform_3, window_bounds = array<i64: 48, 128>}]} {
    %c0 = arith.constant 0 : index
    %c0_0 = arith.constant 0 : index
    %0 = vector.load %arg1[%c0, %c0_0] : memref<48x288xbf16, #tpu.memory_space<vmem>>, vector<48x288xbf16>
    %c0_1 = arith.constant 0 : index
    %c0_2 = arith.constant 0 : index
    %1 = vector.load %arg2[%c0_1, %c0_2] : memref<288x128xbf16, #tpu.memory_space<vmem>>, vector<288x128xbf16>
    %cst = arith.constant dense<0.000000e+00> : vector<48x128xf32>
    %2 = tpu.matmul %0, %1, %cst {dimension_numbers = #tpu.dot_dimension_numbers<[1], [0], [0], [1], [0, 0, 1, 1], [], []>} : vector<48x288xbf16>, vector<288x128xbf16>, vector<48x128xf32> -> vector<48x128xf32>
    %c0_3 = arith.constant 0 : index
    %c0_4 = arith.constant 0 : index
    %3 = vector.load %arg3[%c0_3, %c0_4] : memref<1x128xf32, #tpu.memory_space<vmem>>, vector<1x128xf32>
    %4 = vector.broadcast %3 : vector<1x128xf32> to vector<48x128xf32>
    %5 = arith.addf %2, %4 : vector<48x128xf32>
    %6 = math.tanh %5 : vector<48x128xf32>
    %c0_5 = arith.constant 0 : index
    %c0_6 = arith.constant 0 : index
    %7 = vector.load %arg4[%c0_5, %c0_6] : memref<48x128xf32, #tpu.memory_space<vmem>>, vector<48x128xf32>
    tpu.vector_store %arg4[%c0_5, %c0_6], %6 {strides = array<i32>} : memref<48x128xf32, #tpu.memory_space<vmem>>, vector<48x128xf32>,
    return
  }
  func.func @transform_0(%arg0: i32) -> (i32, i32) {
    %c0_i32 = arith.constant 0 : i32
    %c0_i32_0 = arith.constant 0 : i32
    return %arg0, %c0_i32 : i32, i32
  }
  func.func @transform_1(%arg0: i32) -> (i32, i32) {
    %c0_i32 = arith.constant 0 : i32
    %c0_i32_0 = arith.constant 0 : i32
    %c0_i32_1 = arith.constant 0 : i32
    return %c0_i32, %c0_i32_0 : i32, i32
  }
  func.func @transform_2(%arg0: i32) -> (i32, i32) {
    %c0_i32 = arith.constant 0 : i32
    %c0_i32_0 = arith.constant 0 : i32
    %c0_i32_1 = arith.constant 0 : i32
    return %c0_i32, %c0_i32_0 : i32, i32
  }
  func.func @transform_3(%arg0: i32) -> (i32, i32) {
    %c0_i32 = arith.constant 0 : i32
    %c0_i32_0 = arith.constant 0 : i32
    return %arg0, %c0_i32 : i32, i32
  }
}

module attributes {stable_mosaic.version = 11 : i64} {
  func.func @_matmul_bias_act_kernel(%arg0: i32, %arg1: memref<12x576xbf16, #tpu.memory_space<vmem>>, %arg2: memref<576x128xbf16, #tpu.memory_space<vmem>>, %arg3: memref<1x128xf32, #tpu.memory_space<vmem>>, %arg4: memref<12x128xf32, #tpu.memory_space<vmem>>) attributes {dimension_semantics = [#tpu.dimension_semantics<parallel>], iteration_bounds = array<i64: 1>, scalar_prefetch = 0 : i64, scratch_operands = 0 : i64, tpu.core_type = #tpu.core_type<tc>, window_params = [{transform_indices = @transform_0, window_bounds = array<i64: 12, 576>}, {pipeline_mode = #tpu.pipeline_mode<synchronous>, transform_indices = @transform_1, window_bounds = array<i64: 576, 128>}, {pipeline_mode = #tpu.pipeline_mode<synchronous>, transform_indices = @transform_2, window_bounds = array<i64: 1, 128>}, {transform_indices = @transform_3, window_bounds = array<i64: 12, 128>}]} {
    %c0 = arith.constant 0 : index
    %c0_0 = arith.constant 0 : index
    %0 = vector.load %arg1[%c0, %c0_0] : memref<12x576xbf16, #tpu.memory_space<vmem>>, vector<12x576xbf16>
    %c0_1 = arith.constant 0 : index
    %c0_2 = arith.constant 0 : index
    %1 = vector.load %arg2[%c0_1, %c0_2] : memref<576x128xbf16, #tpu.memory_space<vmem>>, vector<576x128xbf16>
    %cst = arith.constant dense<0.000000e+00> : vector<12x128xf32>
    %2 = tpu.matmul %0, %1, %cst {dimension_numbers = #tpu.dot_dimension_numbers<[1], [0], [0], [1], [0, 0, 1, 1], [], []>} : vector<12x576xbf16>, vector<576x128xbf16>, vector<12x128xf32> -> vector<12x128xf32>
    %c0_3 = arith.constant 0 : index
    %c0_4 = arith.constant 0 : index
    %3 = vector.load %arg3[%c0_3, %c0_4] : memref<1x128xf32, #tpu.memory_space<vmem>>, vector<1x128xf32>
    %4 = vector.broadcast %3 : vector<1x128xf32> to vector<12x128xf32>
    %5 = arith.addf %2, %4 : vector<12x128xf32>
    %6 = math.tanh %5 : vector<12x128xf32>
    %c0_5 = arith.constant 0 : index
    %c0_6 = arith.constant 0 : index
    %7 = vector.load %arg4[%c0_5, %c0_6] : memref<12x128xf32, #tpu.memory_space<vmem>>, vector<12x128xf32>
    tpu.vector_store %arg4[%c0_5, %c0_6], %6 {strides = array<i32>} : memref<12x128xf32, #tpu.memory_space<vmem>>, vector<12x128xf32>,
    return
  }
  func.func @transform_0(%arg0: i32) -> (i32, i32) {
    %c0_i32 = arith.constant 0 : i32
    %c0_i32_0 = arith.constant 0 : i32
    return %arg0, %c0_i32 : i32, i32
  }
  func.func @transform_1(%arg0: i32) -> (i32, i32) {
    %c0_i32 = arith.constant 0 : i32
    %c0_i32_0 = arith.constant 0 : i32
    %c0_i32_1 = arith.constant 0 : i32
    return %c0_i32, %c0_i32_0 : i32, i32
  }
  func.func @transform_2(%arg0: i32) -> (i32, i32) {
    %c0_i32 = arith.constant 0 : i32
    %c0_i32_0 = arith.constant 0 : i32
    %c0_i32_1 = arith.constant 0 : i32
    return %c0_i32, %c0_i32_0 : i32, i32
  }
  func.func @transform_3(%arg0: i32) -> (i32, i32) {
    %c0_i32 = arith.constant 0 : i32
    %c0_i32_0 = arith.constant 0 : i32
    return %arg0, %c0_i32 : i32, i32
  }
}

module attributes {stable_mosaic.version = 11 : i64} {
  func.func @_chain_kernel(%arg0: memref<3x128xbf16, #tpu.memory_space<vmem>>, %arg1: memref<128x256xbf16, #tpu.memory_space<vmem>>, %arg2: memref<1x256xf32, #tpu.memory_space<vmem>>, %arg3: memref<256x512xbf16, #tpu.memory_space<vmem>>, %arg4: memref<1x512xf32, #tpu.memory_space<vmem>>, %arg5: memref<512x512xbf16, #tpu.memory_space<vmem>>, %arg6: memref<1x512xf32, #tpu.memory_space<vmem>>, %arg7: memref<512x512xbf16, #tpu.memory_space<vmem>>, %arg8: memref<1x512xf32, #tpu.memory_space<vmem>>, %arg9: memref<3x512xf32, #tpu.memory_space<vmem>>) attributes {dimension_semantics = [], scalar_prefetch = 0 : i64, scratch_operands = 0 : i64, tpu.core_type = #tpu.core_type<tc>} {
    %c0 = arith.constant 0 : index
    %c0_0 = arith.constant 0 : index
    %0 = vector.load %arg0[%c0, %c0_0] : memref<3x128xbf16, #tpu.memory_space<vmem>>, vector<3x128xbf16>
    %c0_1 = arith.constant 0 : index
    %c0_2 = arith.constant 0 : index
    %1 = vector.load %arg1[%c0_1, %c0_2] : memref<128x256xbf16, #tpu.memory_space<vmem>>, vector<128x256xbf16>
    %c0_3 = arith.constant 0 : index
    %c0_4 = arith.constant 0 : index
    %2 = vector.load %arg2[%c0_3, %c0_4] : memref<1x256xf32, #tpu.memory_space<vmem>>, vector<1x256xf32>
    %cst = arith.constant dense<0.000000e+00> : vector<3x256xf32>
    %3 = tpu.matmul %0, %1, %cst {dimension_numbers = #tpu.dot_dimension_numbers<[1], [0], [0], [1], [0, 0, 1, 1], [], []>} : vector<3x128xbf16>, vector<128x256xbf16>, vector<3x256xf32> -> vector<3x256xf32>
    %4 = vector.broadcast %2 : vector<1x256xf32> to vector<3x256xf32>
    %5 = arith.addf %3, %4 : vector<3x256xf32>
    %6 = math.tanh %5 : vector<3x256xf32>
    %cst_5 = arith.constant 2.500000e-01 : f32
    %7 = vector.broadcast %cst_5 : f32 to vector<3x256xf32>
    %8 = arith.mulf %6, %7 : vector<3x256xf32>
    %9 = arith.truncf %8 : vector<3x256xf32> to vector<3x256xbf16>
    %c0_6 = arith.constant 0 : index
    %c0_7 = arith.constant 0 : index
    %10 = vector.load %arg3[%c0_6, %c0_7] : memref<256x512xbf16, #tpu.memory_space<vmem>>, vector<256x512xbf16>
    %c0_8 = arith.constant 0 : index
    %c0_9 = arith.constant 0 : index
    %11 = vector.load %arg4[%c0_8, %c0_9] : memref<1x512xf32, #tpu.memory_space<vmem>>, vector<1x512xf32>
    %cst_10 = arith.constant dense<0.000000e+00> : vector<3x512xf32>
    %12 = tpu.matmul %9, %10, %cst_10 {dimension_numbers = #tpu.dot_dimension_numbers<[1], [0], [0], [1], [0, 0, 1, 1], [], []>} : vector<3x256xbf16>, vector<256x512xbf16>, vector<3x512xf32> -> vector<3x512xf32>
    %13 = vector.broadcast %11 : vector<1x512xf32> to vector<3x512xf32>
    %14 = arith.addf %12, %13 : vector<3x512xf32>
    %15 = math.tanh %14 : vector<3x512xf32>
    %cst_11 = arith.constant 2.500000e-01 : f32
    %16 = vector.broadcast %cst_11 : f32 to vector<3x512xf32>
    %17 = arith.mulf %15, %16 : vector<3x512xf32>
    %18 = arith.truncf %17 : vector<3x512xf32> to vector<3x512xbf16>
    %c0_12 = arith.constant 0 : index
    %c0_13 = arith.constant 0 : index
    %19 = vector.load %arg5[%c0_12, %c0_13] : memref<512x512xbf16, #tpu.memory_space<vmem>>, vector<512x512xbf16>
    %c0_14 = arith.constant 0 : index
    %c0_15 = arith.constant 0 : index
    %20 = vector.load %arg6[%c0_14, %c0_15] : memref<1x512xf32, #tpu.memory_space<vmem>>, vector<1x512xf32>
    %cst_16 = arith.constant dense<0.000000e+00> : vector<3x512xf32>
    %21 = tpu.matmul %18, %19, %cst_16 {dimension_numbers = #tpu.dot_dimension_numbers<[1], [0], [0], [1], [0, 0, 1, 1], [], []>} : vector<3x512xbf16>, vector<512x512xbf16>, vector<3x512xf32> -> vector<3x512xf32>
    %22 = vector.broadcast %20 : vector<1x512xf32> to vector<3x512xf32>
    %23 = arith.addf %21, %22 : vector<3x512xf32>
    %24 = math.tanh %23 : vector<3x512xf32>
    %cst_17 = arith.constant 2.500000e-01 : f32
    %25 = vector.broadcast %cst_17 : f32 to vector<3x512xf32>
    %26 = arith.mulf %24, %25 : vector<3x512xf32>
    %27 = arith.truncf %26 : vector<3x512xf32> to vector<3x512xbf16>
    %c0_18 = arith.constant 0 : index
    %c0_19 = arith.constant 0 : index
    %28 = vector.load %arg7[%c0_18, %c0_19] : memref<512x512xbf16, #tpu.memory_space<vmem>>, vector<512x512xbf16>
    %c0_20 = arith.constant 0 : index
    %c0_21 = arith.constant 0 : index
    %29 = vector.load %arg8[%c0_20, %c0_21] : memref<1x512xf32, #tpu.memory_space<vmem>>, vector<1x512xf32>
    %cst_22 = arith.constant dense<0.000000e+00> : vector<3x512xf32>
    %30 = tpu.matmul %27, %28, %cst_22 {dimension_numbers = #tpu.dot_dimension_numbers<[1], [0], [0], [1], [0, 0, 1, 1], [], []>} : vector<3x512xbf16>, vector<512x512xbf16>, vector<3x512xf32> -> vector<3x512xf32>
    %31 = vector.broadcast %29 : vector<1x512xf32> to vector<3x512xf32>
    %32 = arith.addf %30, %31 : vector<3x512xf32>
    %33 = math.tanh %32 : vector<3x512xf32>
    %c0_23 = arith.constant 0 : index
    %c0_24 = arith.constant 0 : index
    %34 = vector.load %arg9[%c0_23, %c0_24] : memref<3x512xf32, #tpu.memory_space<vmem>>, vector<3x512xf32>
    tpu.vector_store %arg9[%c0_23, %c0_24], %33 {strides = array<i32>} : memref<3x512xf32, #tpu.memory_space<vmem>>, vector<3x512xf32>,
    return
  }
}

module attributes {stable_mosaic.version = 11 : i64} {
  func.func @_sa_fc_kernel(%arg0: memref<1x512xbf16, #tpu.memory_space<vmem>>, %arg1: memref<512x128xbf16, #tpu.memory_space<vmem>>, %arg2: memref<1x128xf32, #tpu.memory_space<vmem>>, %arg3: memref<128x512xbf16, #tpu.memory_space<vmem>>, %arg4: memref<1x512xf32, #tpu.memory_space<vmem>>, %arg5: memref<1x512xf32, #tpu.memory_space<vmem>>) attributes {dimension_semantics = [], scalar_prefetch = 0 : i64, scratch_operands = 0 : i64, tpu.core_type = #tpu.core_type<tc>} {
    %c0 = arith.constant 0 : index
    %c0_0 = arith.constant 0 : index
    %0 = vector.load %arg0[%c0, %c0_0] : memref<1x512xbf16, #tpu.memory_space<vmem>>, vector<1x512xbf16>
    %c0_1 = arith.constant 0 : index
    %c0_2 = arith.constant 0 : index
    %1 = vector.load %arg1[%c0_1, %c0_2] : memref<512x128xbf16, #tpu.memory_space<vmem>>, vector<512x128xbf16>
    %cst = arith.constant dense<0.000000e+00> : vector<1x128xf32>
    %2 = tpu.matmul %0, %1, %cst {dimension_numbers = #tpu.dot_dimension_numbers<[1], [0], [0], [1], [0, 0, 1, 1], [], []>} : vector<1x512xbf16>, vector<512x128xbf16>, vector<1x128xf32> -> vector<1x128xf32>
    %c0_3 = arith.constant 0 : index
    %c0_4 = arith.constant 0 : index
    %3 = vector.load %arg2[%c0_3, %c0_4] : memref<1x128xf32, #tpu.memory_space<vmem>>, vector<1x128xf32>
    %4 = arith.addf %2, %3 : vector<1x128xf32>
    %cst_5 = arith.constant 0.000000e+00 : f32
    %5 = vector.broadcast %cst_5 : f32 to vector<1x128xf32>
    %6 = arith.maximumf %4, %5 : vector<1x128xf32>
    %7 = arith.truncf %6 : vector<1x128xf32> to vector<1x128xbf16>
    %c0_6 = arith.constant 0 : index
    %c0_7 = arith.constant 0 : index
    %8 = vector.load %arg3[%c0_6, %c0_7] : memref<128x512xbf16, #tpu.memory_space<vmem>>, vector<128x512xbf16>
    %cst_8 = arith.constant dense<0.000000e+00> : vector<1x512xf32>
    %9 = tpu.matmul %7, %8, %cst_8 {dimension_numbers = #tpu.dot_dimension_numbers<[1], [0], [0], [1], [0, 0, 1, 1], [], []>} : vector<1x128xbf16>, vector<128x512xbf16>, vector<1x512xf32> -> vector<1x512xf32>
    %c0_9 = arith.constant 0 : index
    %c0_10 = arith.constant 0 : index
    %10 = vector.load %arg4[%c0_9, %c0_10] : memref<1x512xf32, #tpu.memory_space<vmem>>, vector<1x512xf32>
    %11 = arith.addf %9, %10 : vector<1x512xf32>
    %c0_11 = arith.constant 0 : index
    %c0_12 = arith.constant 0 : index
    %12 = vector.load %arg5[%c0_11, %c0_12] : memref<1x512xf32, #tpu.memory_space<vmem>>, vector<1x512xf32>
    tpu.vector_store %arg5[%c0_11, %c0_12], %11 {strides = array<i32>} : memref<1x512xf32, #tpu.memory_space<vmem>>, vector<1x512xf32>,
    return
  }
}

module attributes {stable_mosaic.version = 11 : i64} {
  func.func @_matmul_bias_act_kernel(%arg0: i32, %arg1: memref<1x1024xbf16, #tpu.memory_space<vmem>>, %arg2: memref<1024x64xbf16, #tpu.memory_space<vmem>>, %arg3: memref<1x64xf32, #tpu.memory_space<vmem>>, %arg4: memref<1x64xf32, #tpu.memory_space<vmem>>) attributes {dimension_semantics = [#tpu.dimension_semantics<parallel>], iteration_bounds = array<i64: 1>, scalar_prefetch = 0 : i64, scratch_operands = 0 : i64, tpu.core_type = #tpu.core_type<tc>, window_params = [{transform_indices = @transform_0, window_bounds = array<i64: 1, 1024>}, {pipeline_mode = #tpu.pipeline_mode<synchronous>, transform_indices = @transform_1, window_bounds = array<i64: 1024, 64>}, {pipeline_mode = #tpu.pipeline_mode<synchronous>, transform_indices = @transform_2, window_bounds = array<i64: 1, 64>}, {transform_indices = @transform_3, window_bounds = array<i64: 1, 64>}]} {
    %c0 = arith.constant 0 : index
    %c0_0 = arith.constant 0 : index
    %0 = vector.load %arg1[%c0, %c0_0] : memref<1x1024xbf16, #tpu.memory_space<vmem>>, vector<1x1024xbf16>
    %c0_1 = arith.constant 0 : index
    %c0_2 = arith.constant 0 : index
    %1 = vector.load %arg2[%c0_1, %c0_2] : memref<1024x64xbf16, #tpu.memory_space<vmem>>, vector<1024x64xbf16>
    %cst = arith.constant dense<0.000000e+00> : vector<1x64xf32>
    %2 = tpu.matmul %0, %1, %cst {dimension_numbers = #tpu.dot_dimension_numbers<[1], [0], [0], [1], [0, 0, 1, 1], [], []>} : vector<1x1024xbf16>, vector<1024x64xbf16>, vector<1x64xf32> -> vector<1x64xf32>
    %c0_3 = arith.constant 0 : index
    %c0_4 = arith.constant 0 : index
    %3 = vector.load %arg3[%c0_3, %c0_4] : memref<1x64xf32, #tpu.memory_space<vmem>>, vector<1x64xf32>
    %4 = arith.addf %2, %3 : vector<1x64xf32>
    %c0_5 = arith.constant 0 : index
    %c0_6 = arith.constant 0 : index
    %5 = vector.load %arg4[%c0_5, %c0_6] : memref<1x64xf32, #tpu.memory_space<vmem>>, vector<1x64xf32>
    tpu.vector_store %arg4[%c0_5, %c0_6], %4 {strides = array<i32>} : memref<1x64xf32, #tpu.memory_space<vmem>>, vector<1x64xf32>,
    return
  }
  func.func @transform_0(%arg0: i32) -> (i32, i32) {
    %c0_i32 = arith.constant 0 : i32
    %c0_i32_0 = arith.constant 0 : i32
    return %arg0, %c0_i32 : i32, i32
  }
  func.func @transform_1(%arg0: i32) -> (i32, i32) {
    %c0_i32 = arith.constant 0 : i32
    %c0_i32_0 = arith.constant 0 : i32
    %c0_i32_1 = arith.constant 0 : i32
    return %c0_i32, %c0_i32_0 : i32, i32
  }
  func.func @transform_2(%arg0: i32) -> (i32, i32) {
    %c0_i32 = arith.constant 0 : i32
    %c0_i32_0 = arith.constant 0 : i32
    %c0_i32_1 = arith.constant 0 : i32
    return %c0_i32, %c0_i32_0 : i32, i32
  }
  func.func @transform_3(%arg0: i32) -> (i32, i32) {
    %c0_i32 = arith.constant 0 : i32
    %c0_i32_0 = arith.constant 0 : i32
    return %arg0, %c0_i32 : i32, i32
  }
}

module attributes {stable_mosaic.version = 11 : i64} {
  func.func @_sv_curve_kernel(%arg0: memref<4x128xf32, #tpu.memory_space<vmem>>, %arg1: memref<32x1x1xf32, #tpu.memory_space<vmem>>, %arg2: memref<32x4x1xf32, #tpu.memory_space<vmem>>, %arg3: memref<4x128xf32, #tpu.memory_space<vmem>>) attributes {dimension_semantics = [], scalar_prefetch = 0 : i64, scratch_operands = 0 : i64, tpu.core_type = #tpu.core_type<tc>} {
    %c0 = arith.constant 0 : index
    %c0_0 = arith.constant 0 : index
    %0 = vector.load %arg0[%c0, %c0_0] : memref<4x128xf32, #tpu.memory_space<vmem>>, vector<4x128xf32>
    %1 = vector.shape_cast %0 : vector<4x128xf32> to vector<1x4x128xf32>
    %cst = arith.constant 3.100000e+01 : f32
    %2 = vector.broadcast %cst : f32 to vector<1x4x128xf32>
    %3 = arith.mulf %1, %2 : vector<1x4x128xf32>
    %c0_1 = arith.constant 0 : index
    %c0_2 = arith.constant 0 : index
    %c0_3 = arith.constant 0 : index
    %4 = vector.load %arg1[%c0_1, %c0_2, %c0_3] : memref<32x1x1xf32, #tpu.memory_space<vmem>>, vector<32x1x1xf32>
    %5 = vector.broadcast %3 : vector<1x4x128xf32> to vector<32x4x128xf32>
    %6 = vector.broadcast %4 : vector<32x1x1xf32> to vector<32x4x128xf32>
    %7 = arith.subf %5, %6 : vector<32x4x128xf32>
    %cst_4 = arith.constant 0.000000e+00 : f32
    %cst_5 = arith.constant 1.000000e+00 : f32
    %8 = vector.broadcast %cst_4 : f32 to vector<32x4x128xf32>
    %9 = arith.maximumf %8, %7 : vector<32x4x128xf32>
    %10 = vector.broadcast %cst_5 : f32 to vector<32x4x128xf32>
    %11 = arith.minimumf %10, %9 : vector<32x4x128xf32>
    %c0_6 = arith.constant 0 : index
    %c0_7 = arith.constant 0 : index
    %c0_8 = arith.constant 0 : index
    %12 = vector.load %arg2[%c0_6, %c0_7, %c0_8] : memref<32x4x1xf32, #tpu.memory_space<vmem>>, vector<32x4x1xf32>
    %13 = vector.broadcast %12 : vector<32x4x1xf32> to vector<32x4x128xf32>
    %14 = arith.mulf %11, %13 : vector<32x4x128xf32>
    %cst_9 = arith.constant dense<0.000000e+00> : vector<4x128xf32>
    %15 = vector.multi_reduction <add>, %14, %cst_9 [0] : vector<32x4x128xf32> to vector<4x128xf32>
    %16 = arith.mulf %0, %15 : vector<4x128xf32>
    %cst_10 = arith.constant 0.000000e+00 : f32
    %cst_11 = arith.constant 1.000000e+00 : f32
    %17 = vector.broadcast %cst_10 : f32 to vector<4x128xf32>
    %18 = arith.maximumf %17, %16 : vector<4x128xf32>
    %19 = vector.broadcast %cst_11 : f32 to vector<4x128xf32>
    %20 = arith.minimumf %19, %18 : vector<4x128xf32>
    %c0_12 = arith.constant 0 : index
    %c0_13 = arith.constant 0 : index
    %21 = vector.load %arg3[%c0_12, %c0_13] : memref<4x128xf32, #tpu.memory_space<vmem>>, vector<4x128xf32>
    tpu.vector_store %arg3[%c0_12, %c0_13], %20 {strides = array<i32>} : memref<4x128xf32, #tpu.memory_space<vmem>>, vector<4x128xf32>,
    return
  }
}

</mosaic_0001>

<bundles_post_ra>
// kernel: cud_net_forward.8
= control target key start
LH: loop header
LB: loop body
LE: loop exit
PB: predicated region body
PF: predicated region fallthrough
CT: control target
= control target key end

     0   :  { %s1027_s12 = smov 0   ;;  %s1210_s0 = inlined_call_operand.vmem [shape: bf16[768,27], index: 0, kind: input, shape index: {}]   ;;  %s1211_s1 = inlined_call_operand.vmem [shape: bf16[27,128], index: 1, kind: input, shape index: {}]   ;;  %s1212_s2 = inlined_call_operand.vmem [shape: f32[1,128], index: 2, kind: input, shape index: {}]   ;;  %s1213_s3 = inlined_call_operand.vmem [shape: f32[768,128], index: 3, kind: output, shape index: {}]  }
   0x1 LB: > { %s723_s13 = sadd.s32 4294967295, %s1004_s12   ;;  %p727_p0 = scmp.ge.s32.totalorder %s1004_s12, 1  ;;  %s1004_s12 = sphi %s1027_s12, %s13_s12  }
   0x2   : > { %p138_p1 = scmp.lt.s32.totalorder %s1004_s12, 3 }
   0x4   : > { %p139_p2 = pnand %p727_p0, %p138_p1 }
   0x5   : > { %s162_s18 = smul.u32 (!%p139_p2), 48, %s723_s13 }
   0x6   : > { %142 = sbr.rel (%p139_p2) target bundleno = 256 (0x100), region = 32 }
   0x7   : > { %p163_p3 = scmp.lt.s32.totalorder (!%p139_p2), %s162_s18, 95 }
   0xb   : > { %v832_v0 = vld [vmem:[%s1211_s1 + $0x8] sm:$0xf]  ;;  %v885_v1 = vld [vmem:[%s1211_s1 + $0x8] sm:$0x30]  ;;  %vm435_vm0 = vcmask 1044480   ;;  %vm436_vm1 = vcmask 1045504  }
   0xc   : > { %v833_v2 = vor.u32 %v885_v1, %v832_v0  ;;  %v1006_v3 = vmov 65535   ;;  %s1215_s18 = smov (!%p163_p3, %s162_s18), 95  ;;  %v884_v7 = vld [vmem:[%s1211_s1] sm:$0xff]  ;;  %vm362_vm2 = vcmask 220160  }
   0xd   : > { %v437_v4 = vsel %vm435_vm0, 4294967295, %v1006_v3  ;;  %s728_s21 = sshll.u32 %s1215_s18, 2  ;;  %v1103_v32 = vld [vmem:[%s1212_s2] ss:$0 sm:$0xff]  ;;  %s729_s27 = sshll.u32 %s1215_s18, 3 }
   0xe   : > { %v438_v5 = vsel %vm436_vm1, %v437_v4, 0  ;;  %s1050_s24 = scalar_lea.vmem %s1210_s0, %s728_s21  ;;  %s1111_s30 = scalar_lea.vmem %s1213_s3, %s729_s27 }
   0xf   : > { %v440_v6 = vand.u32 %v833_v2, %v438_v5  ;;  %v860_v8 = vld [vmem:[%s1050_s24] sm:$0xff]  ;;  %v866_v9 = vld [vmem:[%s1050_s24 + $0x30] sm:$0xff]  ;;  %v861_v12 = vld [vmem:[%s1050_s24 + $0x8] sm:$0xff] }
  0x10   : > { %v872_v10 = vld [vmem:[%s1050_s24 + $0x60] sm:$0xff]  ;;  %v878_v11 = vld [vmem:[%s1050_s24 + $0x90] sm:$0xff]  ;;  %v867_v13 = vld [vmem:[%s1050_s24 + $0x38] sm:$0xff] }
  0x11   : > { %448 = vmatpush.bf16.msra.mxu0 %v440_v6  ;;  %886 = vmatpush.bf16.msra.mxu1 %v440_v6  ;;  %v873_v14 = vld [vmem:[%s1050_s24 + $0x68] sm:$0xff]  ;;  %v879_v15 = vld [vmem:[%s1050_s24 + $0x98] sm:$0xff]  ;;  %v862_v16 = vld [vmem:[%s1050_s24 + $0x10] sm:$0xff] }
  0x12   : > { %887 = vmatpush.bf16.msra.mxu2 %v440_v6  ;;  %888 = vmatpush.bf16.msra.mxu3 %v440_v6  ;;  %v868_v17 = vld [vmem:[%s1050_s24 + $0x40] sm:$0xff]  ;;  %v874_v18 = vld [vmem:[%s1050_s24 + $0x70] sm:$0xff]  ;;  %v863_v20 = vld [vmem:[%s1050_s24 + $0x18] sm:$0xff] }
  0x13   : > { %v880_v19 = vld [vmem:[%s1050_s24 + $0xa0] sm:$0xff]  ;;  %v869_v21 = vld [vmem:[%s1050_s24 + $0x48] sm:$0xff]  ;;  %v875_v22 = vld [vmem:[%s1050_s24 + $0x78] sm:$0xff] }
  0x14   : > { %v881_v23 = vld [vmem:[%s1050_s24 + $0xa8] sm:$0xff]  ;;  %v864_v24 = vld [vmem:[%s1050_s24 + $0x20] sm:$0xff]  ;;  %v870_v25 = vld [vmem:[%s1050_s24 + $0x50] sm:$0xff] }
  0x15   : > { %449 = vmatpush.bf16.msra.mxu0 %v884_v7  ;;  %889 = vmatpush.bf16.msra.mxu1 %v884_v7  ;;  %v876_v26 = vld [vmem:[%s1050_s24 + $0x80] sm:$0xff]  ;;  %v882_v27 = vld [vmem:[%s1050_s24 + $0xb0] sm:$0xff]  ;;  %v865_v28 = vld [vmem:[%s1050_s24 + $0x28] sm:$0xff] }
  0x16   : > { %890 = vmatpush.bf16.msra.mxu2 %v884_v7  ;;  %891 = vmatpush.bf16.msra.mxu3 %v884_v7  ;;  %v871_v29 = vld [vmem:[%s1050_s24 + $0x58] sm:$0xff]  ;;  %v877_v30 = vld [vmem:[%s1050_s24 + $0x88] sm:$0xff] }
  0x17   : > { %v883_v31 = vld [vmem:[%s1050_s24 + $0xb8] sm:$0xff] }
  0x18   : > { %834 = vmatmul.msk.bf16.vlgmr.msra.gmra.mxu0 %vm362_vm2, %v860_v8  ;;  %840 = vmatmul.msk.bf16.vlgmr.msra.gmra.mxu1 %vm362_vm2, %v866_v9 }
  0x19   : > { %846 = vmatmul.msk.bf16.vlgmr.msra.gmra.mxu2 %vm362_vm2, %v872_v10  ;;  %852 = vmatmul.msk.bf16.vlgmr.msra.gmra.mxu3 %vm362_vm2, %v878_v11 }
  0x28   : > { %835 = vmatmul.msk.bf16.gmra.mxu0 %vm362_vm2, %v861_v12  ;;  %841 = vmatmul.msk.bf16.gmra.mxu1 %vm362_vm2, %v867_v13 }
  0x29   : > { %847 = vmatmul.msk.bf16.gmra.mxu2 %vm362_vm2, %v873_v14  ;;  %853 = vmatmul.msk.bf16.gmra.mxu3 %vm362_vm2, %v879_v15 }
  0x38   : > { %836 = vmatmul.msk.bf16.gmra.mxu0 %vm362_vm2, %v862_v16  ;;  %842 = vmatmul.msk.bf16.gmra.mxu1 %vm362_vm2, %v868_v17 }
  0x39   : > { %848 = vmatmul.msk.bf16.gmra.mxu2 %vm362_vm2, %v874_v18  ;;  %854 = vmatmul.msk.bf16.gmra.mxu3 %vm362_vm2, %v880_v19 }
  0x48   : > { %837 = vmatmul.msk.bf16.gmra.mxu0 %vm362_vm2, %v863_v20  ;;  %843 = vmatmul.msk.bf16.gmra.mxu1 %vm362_vm2, %v869_v21 }
  0x49   : > { %849 = vmatmul.msk.bf16.gmra.mxu2 %vm362_vm2, %v875_v22  ;;  %855 = vmatmul.msk.bf16.gmra.mxu3 %vm362_vm2, %v881_v23 }
  0x58   : > { %838 = vmatmul.msk.bf16.gmra.mxu0 %vm362_vm2, %v864_v24  ;;  %844 = vmatmul.msk.bf16.gmra.mxu1 %vm362_vm2, %v870_v25 }
  0x59   : > { %850 = vmatmul.msk.bf16.gmra.mxu2 %vm362_vm2, %v876_v26  ;;  %856 = vmatmul.msk.bf16.gmra.mxu3 %vm362_vm2, %v882_v27 }
  0x68   : > { %839 = vmatmul.msk.bf16.gmra.mxu0 %vm362_vm2, %v865_v28  ;;  %845 = vmatmul.msk.bf16.gmra.mxu1 %vm362_vm2, %v871_v29 }
  0x69   : > { %851 = vmatmul.msk.bf16.gmra.mxu2 %vm362_vm2, %v877_v30  ;;  %857 = vmatmul.msk.bf16.gmra.mxu3 %vm362_vm2, %v883_v31 }
  0x95   : > { %v451_v33 = vpop.f32.mrf.mxu0  ;;  %v481_v34 = vpop.f32.mrf.mxu1 }
  0x96   : > { %v452_v35 = vadd.f32 %v1103_v32, %v451_v33  ;;  %v482_v36 = vadd.f32 %v1103_v32, %v481_v34 }
  0x98   : > { %902 = vtanh.f32 %v452_v35 }
  0x99   : > { %904 = vtanh.f32 %v482_v36 }
  0x9c   : > { %v511_v37 = vpop.f32.mrf.mxu2  ;;  %v541_v38 = vpop.f32.mrf.mxu3 }
  0x9d   : > { %v512_v39 = vadd.f32 %v1103_v32, %v511_v37  ;;  %v542_v40 = vadd.f32 %v1103_v32, %v541_v38  ;;  %v453_v41 = vpop.f32.mrf.mxu0  ;;  %v483_v42 = vpop.f32.mrf.mxu1 }
  0x9e   : > { %v903_v43 = vpop.eup %902  ;;  %v454_v44 = vadd.f32 %v1103_v32, %v453_v41  ;;  %v484_v45 = vadd.f32 %v1103_v32, %v483_v42 }
  0x9f   : > { %v905_v46 = vpop.eup %904  ;;  %619 = vst [vmem:[%s1111_s30] sm:$0xff] %v903_v43  ;;  %906 = vtanh.f32 %v512_v39 }
  0xa0   : > { %631 = vst [vmem:[%s1111_s30 + $0x60] sm:$0xff] %v905_v46  ;;  %908 = vtanh.f32 %v542_v40 }
  0xa1   : > { %910 = vtanh.f32 %v454_v44 }
  0xa2   : > { %912 = vtanh.f32 %v484_v45 }
  0xa4   : > { %v513_v47 = vpop.f32.mrf.mxu2  ;;  %v543_v48 = vpop.f32.mrf.mxu3 }
  0xa5   : > { %v907_v49 = vpop.eup %906  ;;  %v514_v50 = vadd.f32 %v1103_v32, %v513_v47  ;;  %v544_v51 = vadd.f32 %v1103_v32, %v543_v48  ;;  %v456_v52 = vpop.f32.mrf.mxu0 }
  0xa6   : > { %v486_v53 = vpop.f32.mrf.mxu1  ;;  %v909_v54 = vpop.eup %908  ;;  %643 = vst [vmem:[%s1111_s30 + $0xc0] sm:$0xff] %v907_v49  ;;  %v457_v55 = vadd.f32 %v1103_v32, %v456_v52 }
  0xa7   : > { %v487_v56 = vadd.f32 %v1103_v32, %v486_v53  ;;  %v911_v57 = vpop.eup %910  ;;  %655 = vst [vmem:[%s1111_s30 + $0x120] sm:$0xff] %v909_v54  ;;  %914 = vtanh.f32 %v514_v50 }
  0xa8   : > { %v913_v58 = vpop.eup %912  ;;  %620 = vst [vmem:[%s1111_s30 + $0x8] sm:$0xff] %v911_v57  ;;  %916 = vtanh.f32 %v544_v51 }
  0xa9   : > { %632 = vst [vmem:[%s1111_s30 + $0x68] sm:$0xff] %v913_v58  ;;  %918 = vtanh.f32 %v457_v55 }
  0xaa   : > { %920 = vtanh.f32 %v487_v56 }
  0xac   : > { %v516_v59 = vpop.f32.mrf.mxu2  ;;  %v546_v60 = vpop.f32.mrf.mxu3 }
  0xad   : > { %v915_v61 = vpop.eup %914  ;;  %v517_v62 = vadd.f32 %v1103_v32, %v516_v59  ;;  %v547_v63 = vadd.f32 %v1103_v32, %v546_v60  ;;  %v458_v0 = vpop.f32.mrf.mxu0 }
  0xae   : > { %v488_v1 = vpop.f32.mrf.mxu1  ;;  %v917_v2 = vpop.eup %916  ;;  %644 = vst [vmem:[%s1111_s30 + $0xc8] sm:$0xff] %v915_v61  ;;  %v459_v3 = vadd.f32 %v1103_v32, %v458_v0 }
  0xaf   : > { %v489_v4 = vadd.f32 %v1103_v32, %v488_v1  ;;  %v919_v5 = vpop.eup %918  ;;  %656 = vst [vmem:[%s1111_s30 + $0x128] sm:$0xff] %v917_v2  ;;  %922 = vtanh.f32 %v517_v62 }
  0xb0   : > { %v921_v6 = vpop.eup %920  ;;  %621 = vst [vmem:[%s1111_s30 + $0x10] sm:$0xff] %v919_v5  ;;  %924 = vtanh.f32 %v547_v63 }
  0xb1   : > { %633 = vst [vmem:[%s1111_s30 + $0x70] sm:$0xff] %v921_v6  ;;  %926 = vtanh.f32 %v459_v3 }
  0xb2   : > { %928 = vtanh.f32 %v489_v4 }
  0xb4   : > { %v518_v7 = vpop.f32.mrf.mxu2  ;;  %v548_v8 = vpop.f32.mrf.mxu3 }
  0xb5   : > { %v923_v9 = vpop.eup %922  ;;  %v519_v10 = vadd.f32 %v1103_v32, %v518_v7  ;;  %v549_v11 = vadd.f32 %v1103_v32, %v548_v8  ;;  %v461_v12 = vpop.f32.mrf.mxu0 }
  0xb6   : > { %v491_v13 = vpop.f32.mrf.mxu1  ;;  %v925_v14 = vpop.eup %924  ;;  %645 = vst [vmem:[%s1111_s30 + $0xd0] sm:$0xff] %v923_v9  ;;  %v462_v15 = vadd.f32 %v1103_v32, %v461_v12 }
  0xb7   : > { %v492_v16 = vadd.f32 %v1103_v32, %v491_v13  ;;  %v927_v17 = vpop.eup %926  ;;  %657 = vst [vmem:[%s1111_s30 + $0x130] sm:$0xff] %v925_v14  ;;  %930 = vtanh.f32 %v519_v10 }
  0xb8   : > { %v929_v18 = vpop.eup %928  ;;  %622 = vst [vmem:[%s1111_s30 + $0x18] sm:$0xff] %v927_v17  ;;  %932 = vtanh.f32 %v549_v11 }
  0xb9   : > { %634 = vst [vmem:[%s1111_s30 + $0x78] sm:$0xff] %v929_v18  ;;  %934 = vtanh.f32 %v462_v15 }
  0xba   : > { %936 = vtanh.f32 %v492_v16 }
  0xbc   : > { %v521_v19 = vpop.f32.mrf.mxu2  ;;  %v551_v20 = vpop.f32.mrf.mxu3 }
  0xbd   : > { %v931_v21 = vpop.eup %930  ;;  %v522_v22 = vadd.f32 %v1103_v32, %v521_v19  ;;  %v552_v23 = vadd.f32 %v1103_v32, %v551_v20  ;;  %v463_v24 = vpop.f32.mrf.mxu0 }
  0xbe   : > { %v493_v25 = vpop.f32.mrf.mxu1  ;;  %v933_v26 = vpop.eup %932  ;;  %646 = vst [vmem:[%s1111_s30 + $0xd8] sm:$0xff] %v931_v21  ;;  %v464_v27 = vadd.f32 %v1103_v32, %v463_v24 }
  0xbf   : > { %v494_v28 = vadd.f32 %v1103_v32, %v493_v25  ;;  %v935_v29 = vpop.eup %934  ;;  %658 = vst [vmem:[%s1111_s30 + $0x138] sm:$0xff] %v933_v26  ;;  %938 = vtanh.f32 %v522_v22 }
  0xc0   : > { %v937_v30 = vpop.eup %936  ;;  %623 = vst [vmem:[%s1111_s30 + $0x20] sm:$0xff] %v935_v29  ;;  %940 = vtanh.f32 %v552_v23 }
  0xc1   : > { %635 = vst [vmem:[%s1111_s30 + $0x80] sm:$0xff] %v937_v30  ;;  %942 = vtanh.f32 %v464_v27 }
  0xc2   : > { %944 = vtanh.f32 %v494_v28 }
  0xc4   : > { %v523_v31 = vpop.f32.mrf.mxu2  ;;  %v553_v33 = vpop.f32.mrf.mxu3 }
  0xc5   : > { %v939_v34 = vpop.eup %938  ;;  %v524_v35 = vadd.f32 %v1103_v32, %v523_v31  ;;  %v554_v36 = vadd.f32 %v1103_v32, %v553_v33  ;;  %v466_v37 = vpop.f32.mrf.mxu0 }
  0xc6   : > { %v496_v38 = vpop.f32.mrf.mxu1  ;;  %v941_v39 = vpop.eup %940  ;;  %647 = vst [vmem:[%s1111_s30 + $0xe0] sm:$0xff] %v939_v34  ;;  %v467_v40 = vadd.f32 %v1103_v32, %v466_v37 }
  0xc7   : > { %v497_v41 = vadd.f32 %v1103_v32, %v496_v38  ;;  %v943_v42 = vpop.eup %942  ;;  %659 = vst [vmem:[%s1111_s30 + $0x140] sm:$0xff] %v941_v39  ;;  %946 = vtanh.f32 %v524_v35 }
  0xc8   : > { %v945_v43 = vpop.eup %944  ;;  %624 = vst [vmem:[%s1111_s30 + $0x28] sm:$0xff] %v943_v42  ;;  %948 = vtanh.f32 %v554_v36 }
  0xc9   : > { %636 = vst [vmem:[%s1111_s30 + $0x88] sm:$0xff] %v945_v43  ;;  %950 = vtanh.f32 %v467_v40 }
  0xca   : > { %952 = vtanh.f32 %v497_v41 }
  0xcc   : > { %v526_v44 = vpop.f32.mrf.mxu2  ;;  %v556_v45 = vpop.f32.mrf.mxu3 }
  0xcd   : > { %v947_v46 = vpop.eup %946  ;;  %v527_v47 = vadd.f32 %v1103_v32, %v526_v44  ;;  %v557_v48 = vadd.f32 %v1103_v32, %v556_v45  ;;  %v468_v49 = vpop.f32.mrf.mxu0 }
  0xce   : > { %v498_v50 = vpop.f32.mrf.mxu1  ;;  %v949_v51 = vpop.eup %948  ;;  %648 = vst [vmem:[%s1111_s30 + $0xe8] sm:$0xff] %v947_v46  ;;  %v469_v52 = vadd.f32 %v1103_v32, %v468_v49 }
  0xcf   : > { %v499_v53 = vadd.f32 %v1103_v32, %v498_v50  ;;  %v951_v54 = vpop.eup %950  ;;  %660 = vst [vmem:[%s1111_s30 + $0x148] sm:$0xff] %v949_v51  ;;  %954 = vtanh.f32 %v527_v47 }
  0xd0   : > { %v953_v55 = vpop.eup %952  ;;  %625 = vst [vmem:[%s1111_s30 + $0x30] sm:$0xff] %v951_v54  ;;  %956 = vtanh.f32 %v557_v48 }
  0xd1   : > { %637 = vst [vmem:[%s1111_s30 + $0x90] sm:$0xff] %v953_v55  ;;  %958 = vtanh.f32 %v469_v52 }
  0xd2   : > { %960 = vtanh.f32 %v499_v53 }
  0xd4   : > { %v528_v56 = vpop.f32.mrf.mxu2  ;;  %v558_v57 = vpop.f32.mrf.mxu3 }
  0xd5   : > { %v955_v58 = vpop.eup %954  ;;  %v529_v59 = vadd.f32 %v1103_v32, %v528_v56  ;;  %v559_v60 = vadd.f32 %v1103_v32, %v558_v57  ;;  %v471_v61 = vpop.f32.mrf.mxu0 }
  0xd6   : > { %v501_v62 = vpop.f32.mrf.mxu1  ;;  %v957_v63 = vpop.eup %956  ;;  %649 = vst [vmem:[%s1111_s30 + $0xf0] sm:$0xff] %v955_v58  ;;  %v472_v0 = vadd.f32 %v1103_v32, %v471_v61 }
  0xd7   : > { %v502_v1 = vadd.f32 %v1103_v32, %v501_v62  ;;  %v959_v2 = vpop.eup %958  ;;  %661 = vst [vmem:[%s1111_s30 + $0x150] sm:$0xff] %v957_v63  ;;  %962 = vtanh.f32 %v529_v59 }
  0xd8   : > { %v961_v3 = vpop.eup %960  ;;  %626 = vst [vmem:[%s1111_s30 + $0x38] sm:$0xff] %v959_v2  ;;  %964 = vtanh.f32 %v559_v60 }
  0xd9   : > { %638 = vst [vmem:[%s1111_s30 + $0x98] sm:$0xff] %v961_v3  ;;  %966 = vtanh.f32 %v472_v0 }
  0xda   : > { %968 = vtanh.f32 %v502_v1 }
  0xdc   : > { %v531_v4 = vpop.f32.mrf.mxu2  ;;  %v561_v5 = vpop.f32.mrf.mxu3 }
  0xdd   : > { %v963_v6 = vpop.eup %962  ;;  %v532_v7 = vadd.f32 %v1103_v32, %v531_v4  ;;  %v562_v8 = vadd.f32 %v1103_v32, %v561_v5  ;;  %v473_v9 = vpop.f32.mrf.mxu0 }
  0xde   : > { %v503_v10 = vpop.f32.mrf.mxu1  ;;  %v965_v11 = vpop.eup %964  ;;  %650 = vst [vmem:[%s1111_s30 + $0xf8] sm:$0xff] %v963_v6  ;;  %v474_v12 = vadd.f32 %v1103_v32, %v473_v9 }
  0xdf   : > { %v504_v13 = vadd.f32 %v1103_v32, %v503_v10  ;;  %v967_v14 = vpop.eup %966  ;;  %662 = vst [vmem:[%s1111_s30 + $0x158] sm:$0xff] %v965_v11  ;;  %970 = vtanh.f32 %v532_v7 }
  0xe0   : > { %v969_v15 = vpop.eup %968  ;;  %627 = vst [vmem:[%s1111_s30 + $0x40] sm:$0xff] %v967_v14  ;;  %972 = vtanh.f32 %v562_v8 }
  0xe1   : > { %639 = vst [vmem:[%s1111_s30 + $0xa0] sm:$0xff] %v969_v15  ;;  %974 = vtanh.f32 %v474_v12 }
  0xe2   : > { %976 = vtanh.f32 %v504_v13 }
  0xe4   : > { %v533_v16 = vpop.f32.mrf.mxu2  ;;  %v563_v17 = vpop.f32.mrf.mxu3 }
  0xe5   : > { %v971_v18 = vpop.eup %970  ;;  %v534_v19 = vadd.f32 %v1103_v32, %v533_v16  ;;  %v564_v20 = vadd.f32 %v1103_v32, %v563_v17  ;;  %v476_v21 = vpop.f32.mrf.mxu0 }
  0xe6   : > { %v506_v22 = vpop.f32.mrf.mxu1  ;;  %v973_v23 = vpop.eup %972  ;;  %651 = vst [vmem:[%s1111_s30 + $0x100] sm:$0xff] %v971_v18  ;;  %v477_v24 = vadd.f32 %v1103_v32, %v476_v21 }
  0xe7   : > { %v507_v25 = vadd.f32 %v1103_v32, %v506_v22  ;;  %v975_v26 = vpop.eup %974  ;;  %663 = vst [vmem:[%s1111_s30 + $0x160] sm:$0xff] %v973_v23  ;;  %978 = vtanh.f32 %v534_v19 }
  0xe8   : > { %v977_v27 = vpop.eup %976  ;;  %628 = vst [vmem:[%s1111_s30 + $0x48] sm:$0xff] %v975_v26  ;;  %980 = vtanh.f32 %v564_v20 }
  0xe9   : > { %640 = vst [vmem:[%s1111_s30 + $0xa8] sm:$0xff] %v977_v27  ;;  %982 = vtanh.f32 %v477_v24 }
  0xea   : > { %984 = vtanh.f32 %v507_v25 }
  0xec   : > { %v536_v28 = vpop.f32.mrf.mxu2  ;;  %v566_v29 = vpop.f32.mrf.mxu3 }
  0xed   : > { %v979_v30 = vpop.eup %978  ;;  %v537_v31 = vadd.f32 %v1103_v32, %v536_v28  ;;  %v567_v33 = vadd.f32 %v1103_v32, %v566_v29  ;;  %v478_v34 = vpop.f32.mrf.mxu0 }
  0xee   : > { %v508_v35 = vpop.f32.mrf.mxu1  ;;  %v981_v36 = vpop.eup %980  ;;  %652 = vst [vmem:[%s1111_s30 + $0x108] sm:$0xff] %v979_v30  ;;  %v479_v37 = vadd.f32 %v1103_v32, %v478_v34 }
  0xef   : > { %v509_v38 = vadd.f32 %v1103_v32, %v508_v35  ;;  %v983_v39 = vpop.eup %982  ;;  %664 = vst [vmem:[%s1111_s30 + $0x168] sm:$0xff] %v981_v36  ;;  %986 = vtanh.f32 %v537_v31 }
  0xf0   : > { %v985_v40 = vpop.eup %984  ;;  %629 = vst [vmem:[%s1111_s30 + $0x50] sm:$0xff] %v983_v39  ;;  %988 = vtanh.f32 %v567_v33 }
  0xf1   : > { %641 = vst [vmem:[%s1111_s30 + $0xb0] sm:$0xff] %v985_v40  ;;  %990 = vtanh.f32 %v479_v37 }
  0xf2   : > { %992 = vtanh.f32 %v509_v38 }
  0xf4   : > { %v538_v41 = vpop.f32.mrf.mxu2  ;;  %v568_v42 = vpop.f32.mrf.mxu3 }
  0xf5   : > { %v987_v43 = vpop.eup %986  ;;  %v539_v44 = vadd.f32 %v1103_v32, %v538_v41  ;;  %v569_v45 = vadd.f32 %v1103_v32, %v568_v42 }
  0xf6   : > { %v989_v46 = vpop.eup %988  ;;  %653 = vst [vmem:[%s1111_s30 + $0x110] sm:$0xff] %v987_v43 }
  0xf7   : > { %v991_v47 = vpop.eup %990  ;;  %665 = vst [vmem:[%s1111_s30 + $0x170] sm:$0xff] %v989_v46  ;;  %994 = vtanh.f32 %v539_v44 }
  0xf8   : > { %v993_v48 = vpop.eup %992  ;;  %630 = vst [vmem:[%s1111_s30 + $0x58] sm:$0xff] %v991_v47  ;;  %996 = vtanh.f32 %v569_v45 }
  0xf9   : > { %642 = vst [vmem:[%s1111_s30 + $0xb8] sm:$0xff] %v993_v48 }
  0xfd   : > { %v995_v49 = vpop.eup %994 }
  0xfe   : > { %v997_v50 = vpop.eup %996  ;;  %654 = vst [vmem:[%s1111_s30 + $0x118] sm:$0xff] %v995_v49 }
  0xff   : > { %666 = vst [vmem:[%s1111_s30 + $0x178] sm:$0xff] %v997_v50 }
 0x100 PF: > { %s13_s12 = sadd.s32 1, %s1004_s12  }
 0x101   : > { %p10_p4 = scmp.ge.s32.totalorder %s13_s12, 4  }
 0x103   :  { %12 = sbr.rel (!%p10_p4) target bundleno = 1 (0x1), region = 62 }

// kernel: cud_net_forward.9
= control target key start
LH: loop header
LB: loop body
LE: loop exit
PB: predicated region body
PF: predicated region fallthrough
CT: control target
= control target key end

     0   :  { %s689_s12 = smov 0   ;;  %s803_s0 = inlined_call_operand.vmem [shape: bf16[192,144], index: 0, kind: input, shape index: {}]   ;;  %s804_s1 = inlined_call_operand.vmem [shape: bf16[144,128], index: 1, kind: input, shape index: {}]   ;;  %s805_s2 = inlined_call_operand.vmem [shape: f32[1,128], index: 2, kind: input, shape index: {}]   ;;  %s806_s3 = inlined_call_operand.vmem [shape: f32[192,128], index: 3, kind: output, shape index: {}]  }
   0x1 LB: > { %s497_s13 = sadd.s32 4294967295, %s667_s12   ;;  %p501_p0 = scmp.ge.s32.totalorder %s667_s12, 1  ;;  %s667_s12 = sphi %s689_s12, %s13_s12  }
   0x2   : > { %p139_p1 = scmp.lt.s32.totalorder %s667_s12, 3 }
   0x4   : > { %p140_p2 = pnand %p501_p0, %p139_p1 }
   0x5   : > { %s164_s18 = smul.u32 (!%p140_p2), 12, %s497_s13 }
   0x6   : > { %143 = sbr.rel (%p140_p2) target bundleno = 227 (0xe3), region = 32 }
   0x7   : > { %p165_p3 = scmp.lt.s32.totalorder (!%p140_p2), %s164_s18, 23 }
   0xb   : > { %v617_v0 = vld [vmem:[%s804_s1 + $0x38] sm:$0xff]  ;;  %v618_v1 = vld [vmem:[%s804_s1 + $0x40] sm:$0xff]  ;;  %v616_v2 = vld [vmem:[%s804_s1 + $0x30] sm:$0xff]  ;;  %s808_s18 = smov (!%p165_p3, %s164_s18), 23  ;;  %vm320_vm0 = vcmask 130048  }
   0xc   : > { %339 = vmatpush.bf16.msra.mxu0 %v617_v0  ;;  %619 = vmatpush.bf16.msra.mxu2 %v617_v0  ;;  %v615_v3 = vld [vmem:[%s804_s1 + $0x28] sm:$0xff]  ;;  %s597_s23 = sshll.u32 %s808_s18, 3  ;;  %v614_v7 = vld [vmem:[%s804_s1 + $0x20] sm:$0xff]  ;;  %v613_v11 = vld [vmem:[%s804_s1 + $0x18] sm:$0xff] }
   0xd   : > { %385 = vmatpush.bf16.msra.mxu1 %v618_v1  ;;  %627 = vmatpush.bf16.msra.mxu3 %v618_v1  ;;  %s717_s26 = scalar_lea.vmem %s803_s0, %s597_s23  ;;  %v612_v12 = vld [vmem:[%s804_s1 + $0x10] sm:$0xff]  ;;  %v611_v15 = vld [vmem:[%s804_s1 + $0x8] sm:$0xff]  ;;  %v610_v19 = vld [vmem:[%s804_s1] sm:$0xff]  ;;  %s775_s15 = scalar_lea.vmem %s806_s3, %s597_s23 }
   0xe   : > { %v598_v4 = vld [vmem:[%s717_s26 + $0x4] sm:$0xf]  ;;  %v509_v5 = vld [vmem:[%s717_s26 + $0x8] sm:$0xf0]  ;;  %v600_v13 = vld [vmem:[%s717_s26 + $0x14] sm:$0xf] }
   0xf   : > { %v512_v6 = vor.u32 %v598_v4, %v509_v5  ;;  %v606_v8 = vld [vmem:[%s717_s26 + $0x44] sm:$0xf]  ;;  %v541_v9 = vld [vmem:[%s717_s26 + $0x48] sm:$0xf0]  ;;  %v517_v14 = vld [vmem:[%s717_s26 + $0x18] sm:$0xf0] }
  0x10   : > { %340 = vmatpush.bf16.msra.mxu0 %v616_v2  ;;  %620 = vmatpush.bf16.msra.mxu2 %v616_v2  ;;  %v544_v10 = vor.u32 %v606_v8, %v541_v9  ;;  %v520_v16 = vor.u32 %v600_v13, %v517_v14  ;;  %v608_v17 = vld [vmem:[%s717_s26 + $0x54] sm:$0xf]  ;;  %v549_v18 = vld [vmem:[%s717_s26 + $0x58] sm:$0xf0]  ;;  %v507_v20 = vld [vmem:[%s717_s26] sm:$0xf] }
  0x11   : > { %589 = vmatmul.msk.bf16.vlgmr.msra.gmra.mxu1 %vm320_vm0, %v512_v6  ;;  %v599_v21 = vld [vmem:[%s717_s26 + $0x4] sm:$0xf0]  ;;  %v531_v22 = vld [vmem:[%s717_s26 + $0x30] sm:$0xf]  ;;  %v605_v23 = vld [vmem:[%s717_s26 + $0x34] sm:$0xf0]  ;;  %v552_v24 = vor.u32 %v608_v17, %v549_v18 }
  0x12   : > { %593 = vmatmul.msk.bf16.vlgmr.msra.gmra.mxu3 %vm320_vm0, %v544_v10  ;;  %v508_v25 = vor.u32 %v599_v21, %v507_v20  ;;  %v532_v26 = vor.u32 %v605_v23, %v531_v22  ;;  %v602_v27 = vld [vmem:[%s717_s26 + $0x24] sm:$0xf]  ;;  %v525_v28 = vld [vmem:[%s717_s26 + $0x28] sm:$0xf0]  ;;  %v515_v30 = vld [vmem:[%s717_s26 + $0x10] sm:$0xf] }
  0x13   : > { %v528_v29 = vor.u32 %v602_v27, %v525_v28  ;;  %v601_v31 = vld [vmem:[%s717_s26 + $0x14] sm:$0xf0]  ;;  %v539_v32 = vld [vmem:[%s717_s26 + $0x40] sm:$0xf]  ;;  %v607_v33 = vld [vmem:[%s717_s26 + $0x44] sm:$0xf0] }
  0x14   : > { %341 = vmatpush.bf16.msra.mxu0 %v615_v3  ;;  %621 = vmatpush.bf16.msra.mxu2 %v615_v3  ;;  %v516_v34 = vor.u32 %v601_v31, %v515_v30  ;;  %v540_v35 = vor.u32 %v607_v33, %v539_v32  ;;  %v604_v36 = vld [vmem:[%s717_s26 + $0x34] sm:$0xf]  ;;  %v533_v37 = vld [vmem:[%s717_s26 + $0x38] sm:$0xf0]  ;;  %v523_v39 = vld [vmem:[%s717_s26 + $0x20] sm:$0xf] }
  0x15   : > { %v536_v38 = vor.u32 %v604_v36, %v533_v37  ;;  %v603_v40 = vld [vmem:[%s717_s26 + $0x24] sm:$0xf0]  ;;  %v547_v41 = vld [vmem:[%s717_s26 + $0x50] sm:$0xf]  ;;  %v609_v42 = vld [vmem:[%s717_s26 + $0x54] sm:$0xf0] }
  0x16   : > { %v524_v43 = vor.u32 %v603_v40, %v523_v39  ;;  %v548_v44 = vor.u32 %v609_v42, %v547_v41  ;;  %v767_v48 = vld [vmem:[%s805_s2] ss:$0 sm:$0xff] }
  0x18   : > { %342 = vmatpush.bf16.msra.mxu0 %v614_v7  ;;  %622 = vmatpush.bf16.msra.mxu2 %v614_v7 }
  0x1c   : > { %343 = vmatpush.bf16.msra.mxu0 %v613_v11  ;;  %623 = vmatpush.bf16.msra.mxu2 %v613_v11 }
  0x20   : > { %344 = vmatpush.bf16.msra.mxu0 %v612_v12  ;;  %624 = vmatpush.bf16.msra.mxu2 %v612_v12 }
  0x21   : > { %590 = vmatmul.msk.bf16.gmra.mxu1 %vm320_vm0, %v520_v16 }
  0x22   : > { %594 = vmatmul.msk.bf16.gmra.mxu3 %vm320_vm0, %v552_v24 }
  0x24   : > { %345 = vmatpush.bf16.msra.mxu0 %v611_v15  ;;  %625 = vmatpush.bf16.msra.mxu2 %v611_v15 }
  0x28   : > { %346 = vmatpush.bf16.msra.mxu0 %v610_v19  ;;  %626 = vmatpush.bf16.msra.mxu2 %v610_v19 }
  0x2b   : > { %347 = vmatmul.bf16.vlgmr.msra.gmra.mxu0 %v508_v25  ;;  %362 = vmatmul.bf16.vlgmr.msra.gmra.mxu2 %v532_v26 }
  0x31   : > { %591 = vmatmul.msk.bf16.gmra.mxu1 %vm320_vm0, %v528_v29 }
  0x3b   : > { %352 = vmatmul.bf16.gmra.mxu0 %v516_v34  ;;  %367 = vmatmul.bf16.gmra.mxu2 %v540_v35 }
  0x41   : > { %592 = vmatmul.msk.bf16.gmra.mxu1 %vm320_vm0, %v536_v38 }
  0x4b   : > { %357 = vmatmul.bf16.gmra.mxu0 %v524_v43  ;;  %372 = vmatmul.bf16.gmra.mxu2 %v548_v44 }
  0x8e   : > { %v387_v45 = vpop.f32.mrf.mxu1 }
  0x95   : > { %v407_v62 = vpop.f32.mrf.mxu3 }
  0x96   : > { %v389_v46 = vpop.f32.mrf.mxu1 }
  0x9d   : > { %v409_v12 = vpop.f32.mrf.mxu3 }
  0x9e   : > { %v392_v47 = vpop.f32.mrf.mxu1 }
  0xa5   : > { %v412_v25 = vpop.f32.mrf.mxu3 }
  0xa6   : > { %v394_v51 = vpop.f32.mrf.mxu1 }
  0xa8   : > { %v348_v49 = vpop.f32.mrf.mxu0 }
  0xa9   : > { %v349_v50 = vadd.f32 %v767_v48, %v348_v49 }
  0xab   : > { %v388_v52 = vadd.f32 %v387_v45, %v349_v50 }
  0xad   : > { %637 = vtanh.f32 %v388_v52  ;;  %v414_v37 = vpop.f32.mrf.mxu3 }
  0xae   : > { %v363_v53 = vpop.f32.mrf.mxu2  ;;  %v397_v56 = vpop.f32.mrf.mxu1 }
  0xaf   : > { %v364_v5 = vadd.f32 %v767_v48, %v363_v53 }
  0xb0   : > { %v350_v54 = vpop.f32.mrf.mxu0 }
  0xb1   : > { %v351_v55 = vadd.f32 %v767_v48, %v350_v54 }
  0xb3   : > { %v638_v57 = vpop.eup %637  ;;  %v390_v58 = vadd.f32 %v389_v46, %v351_v55 }
  0xb4   : > { %429 = vst [vmem:[%s775_s15] sm:$0xff] %v638_v57 }
  0xb5   : > { %639 = vtanh.f32 %v390_v58 }
  0xb6   : > { %v365_v59 = vpop.f32.mrf.mxu2  ;;  %v399_v63 = vpop.f32.mrf.mxu1 }
  0xb7   : > { %v366_v17 = vadd.f32 %v767_v48, %v365_v59 }
  0xb8   : > { %v353_v60 = vpop.f32.mrf.mxu0 }
  0xb9   : > { %v354_v61 = vadd.f32 %v767_v48, %v353_v60 }
  0xbb   : > { %v640_v0 = vpop.eup %639  ;;  %v393_v1 = vadd.f32 %v392_v47, %v354_v61 }
  0xbc   : > { %430 = vst [vmem:[%s775_s15 + $0x8] sm:$0xff] %v640_v0 }
  0xbd   : > { %641 = vtanh.f32 %v393_v1 }
  0xbe   : > { %v368_v2 = vpop.f32.mrf.mxu2  ;;  %v402_v8 = vpop.f32.mrf.mxu1 }
  0xbf   : > { %v369_v3 = vadd.f32 %v767_v48, %v368_v2  ;;  %v403_v11 = vadd.f32 %v402_v8, %v364_v5 }
  0xc0   : > { %v355_v4 = vpop.f32.mrf.mxu0 }
  0xc1   : > { %v408_v6 = vadd.f32 %v407_v62, %v369_v3  ;;  %v356_v7 = vadd.f32 %v767_v48, %v355_v4 }
  0xc3   : > { %v642_v9 = vpop.eup %641  ;;  %643 = vtanh.f32 %v408_v6  ;;  %v395_v10 = vadd.f32 %v394_v51, %v356_v7 }
  0xc4   : > { %431 = vst [vmem:[%s775_s15 + $0x10] sm:$0xff] %v642_v9 }
  0xc5   : > { %645 = vtanh.f32 %v395_v10 }
  0xc6   : > { %647 = vtanh.f32 %v403_v11  ;;  %v370_v13 = vpop.f32.mrf.mxu2  ;;  %v404_v20 = vpop.f32.mrf.mxu1 }
  0xc7   : > { %v371_v14 = vadd.f32 %v767_v48, %v370_v13  ;;  %v405_v23 = vadd.f32 %v404_v20, %v366_v17 }
  0xc8   : > { %v358_v15 = vpop.f32.mrf.mxu0 }
  0xc9   : > { %v644_v16 = vpop.eup %643  ;;  %v410_v18 = vadd.f32 %v409_v12, %v371_v14  ;;  %v359_v19 = vadd.f32 %v767_v48, %v358_v15 }
  0xca   : > { %437 = vst [vmem:[%s775_s15 + $0x40] sm:$0xff] %v644_v16 }
  0xcb   : > { %v646_v21 = vpop.eup %645  ;;  %649 = vtanh.f32 %v410_v18  ;;  %v398_v22 = vadd.f32 %v397_v56, %v359_v19 }
  0xcc   : > { %v648_v24 = vpop.eup %647  ;;  %432 = vst [vmem:[%s775_s15 + $0x18] sm:$0xff] %v646_v21 }
  0xcd   : > { %435 = vst [vmem:[%s775_s15 + $0x30] sm:$0xff] %v648_v24  ;;  %651 = vtanh.f32 %v398_v22 }
  0xce   : > { %653 = vtanh.f32 %v405_v23  ;;  %v373_v26 = vpop.f32.mrf.mxu2 }
  0xcf   : > { %v374_v27 = vadd.f32 %v767_v48, %v373_v26 }
  0xd0   : > { %v360_v28 = vpop.f32.mrf.mxu0 }
  0xd1   : > { %v650_v29 = vpop.eup %649  ;;  %v413_v30 = vadd.f32 %v412_v25, %v374_v27  ;;  %v361_v31 = vadd.f32 %v767_v48, %v360_v28 }
  0xd2   : > { %438 = vst [vmem:[%s775_s15 + $0x48] sm:$0xff] %v650_v29 }
  0xd3   : > { %v652_v32 = vpop.eup %651  ;;  %655 = vtanh.f32 %v413_v30  ;;  %v400_v33 = vadd.f32 %v399_v63, %v361_v31 }
  0xd4   : > { %v654_v34 = vpop.eup %653  ;;  %433 = vst [vmem:[%s775_s15 + $0x20] sm:$0xff] %v652_v32 }
  0xd5   : > { %436 = vst [vmem:[%s775_s15 + $0x38] sm:$0xff] %v654_v34  ;;  %657 = vtanh.f32 %v400_v33 }
  0xd6   : > { %v375_v35 = vpop.f32.mrf.mxu2 }
  0xd7   : > { %v376_v36 = vadd.f32 %v767_v48, %v375_v35 }
  0xd9   : > { %v656_v38 = vpop.eup %655  ;;  %v415_v39 = vadd.f32 %v414_v37, %v376_v36 }
  0xda   : > { %439 = vst [vmem:[%s775_s15 + $0x50] sm:$0xff] %v656_v38 }
  0xdb   : > { %v658_v40 = vpop.eup %657  ;;  %659 = vtanh.f32 %v415_v39 }
  0xdc   : > { %434 = vst [vmem:[%s775_s15 + $0x28] sm:$0xff] %v658_v40 }
  0xe1   : > { %v660_v41 = vpop.eup %659 }
  0xe2   : > { %440 = vst [vmem:[%s775_s15 + $0x58] sm:$0xff] %v660_v41 }
  0xe3 PF: > { %s13_s12 = sadd.s32 1, %s667_s12  }
  0xe4   : > { %p10_p4 = scmp.ge.s32.totalorder %s13_s12, 4  }
  0xe6   :  { %12 = sbr.rel (!%p10_p4) target bundleno = 1 (0x1), region = 62 }

// kernel: cud_net_forward.10
= control target key start
LH: loop header
LB: loop body
LE: loop exit
PB: predicated region body
PF: predicated region fallthrough
CT: control target
= control target key end

     0   :  { %vm220_vm0 = vcmask 261120   ;;  %s629_s1 = inlined_call_operand.vmem [shape: bf16[288,128], index: 1, kind: input, shape index: {}]   ;;  %s630_s0 = inlined_call_operand.vmem [shape: bf16[48,288], index: 0, kind: input, shape index: {}]   ;;  %s631_s2 = inlined_call_operand.vmem [shape: f32[1,128], index: 2, kind: input, shape index: {}]   ;;  %s632_s3 = inlined_call_operand.vmem [shape: f32[48,128], index: 3, kind: output, shape index: {}]  }
   0x1   :  { %v445_v0 = vld [vmem:[%s629_s1 + $0x38] sm:$0xff]  ;;  %v444_v2 = vld [vmem:[%s629_s1 + $0x30] sm:$0xff]  ;;  %v455_v3 = vld [vmem:[%s629_s1 + $0x88] sm:$0xff] }
   0x2   :  { %v453_v1 = vld [vmem:[%s629_s1 + $0x78] sm:$0xff]  ;;  %230 = vmatpush.bf16.msra.mxu0 %v445_v0  ;;  %456 = vmatpush.bf16.msra.mxu3 %v445_v0  ;;  %v452_v4 = vld [vmem:[%s629_s1 + $0x70] sm:$0xff]  ;;  %v454_v5 = vld [vmem:[%s629_s1 + $0x80] sm:$0xff] }
   0x3   :  { %254 = vmatpush.bf16.msra.mxu1 %v453_v1  ;;  %284 = vmatpush.bf16.msra.mxu2 %v455_v3  ;;  %v328_v6 = vld [vmem:[%s630_s0 + $0x8] sm:$0xf]  ;;  %v431_v7 = vld [vmem:[%s630_s0 + $0x10] sm:$0xf0]  ;;  %v442_v11 = vld [vmem:[%s629_s1 + $0x20] sm:$0xff] }
   0x4   :  { %v443_v8 = vld [vmem:[%s629_s1 + $0x28] sm:$0xff]  ;;  %v329_v10 = vor.u32 %v431_v7, %v328_v6  ;;  %v450_v12 = vld [vmem:[%s629_s1 + $0x60] sm:$0xff]  ;;  %v441_v13 = vld [vmem:[%s629_s1 + $0x18] sm:$0xff] }
   0x5   :  { %v451_v9 = vld [vmem:[%s629_s1 + $0x68] sm:$0xff]  ;;  %v449_v14 = vld [vmem:[%s629_s1 + $0x58] sm:$0xff]  ;;  %v440_v15 = vld [vmem:[%s629_s1 + $0x10] sm:$0xff] }
   0x6   :  { %231 = vmatpush.bf16.msra.mxu0 %v444_v2  ;;  %457 = vmatpush.bf16.msra.mxu3 %v444_v2  ;;  %v448_v16 = vld [vmem:[%s629_s1 + $0x50] sm:$0xff]  ;;  %v340_v17 = vld [vmem:[%s630_s0 + $0x20] sm:$0xf]  ;;  %v434_v18 = vld [vmem:[%s630_s0 + $0x28] sm:$0xf0] }
   0x7   :  { %255 = vmatpush.bf16.msra.mxu1 %v452_v4  ;;  %285 = vmatpush.bf16.msra.mxu2 %v454_v5  ;;  %v439_v19 = vld [vmem:[%s629_s1 + $0x8] sm:$0xff]  ;;  %v341_v21 = vor.u32 %v434_v18, %v340_v17  ;;  %v438_v22 = vld [vmem:[%s629_s1] sm:$0xff]  ;;  %v332_v25 = vld [vmem:[%s630_s0 + $0x18] sm:$0xf] }
   0x8   :  { %v447_v20 = vld [vmem:[%s629_s1 + $0x48] sm:$0xff]  ;;  %v320_v23 = vld [vmem:[%s630_s0] sm:$0xf]  ;;  %v433_v26 = vld [vmem:[%s630_s0 + $0x20] sm:$0xf0] }
   0x9   :  { %v430_v24 = vld [vmem:[%s630_s0 + $0x8] sm:$0xf0]  ;;  %v446_v27 = vld [vmem:[%s629_s1 + $0x40] sm:$0xff]  ;;  %v322_v29 = vld [vmem:[%s630_s0 + $0xc] sm:$0xf0]  ;;  %v333_v31 = vor.u32 %v433_v26, %v332_v25 }
   0xa   :  { %232 = vmatpush.bf16.msra.mxu0 %v443_v8  ;;  %458 = vmatpush.bf16.msra.mxu3 %v443_v8  ;;  %v429_v28 = vld [vmem:[%s630_s0 + $0x4] sm:$0xf]  ;;  %v321_v30 = vor.u32 %v430_v24, %v320_v23  ;;  %v352_v33 = vld [vmem:[%s630_s0 + $0x38] sm:$0xf]  ;;  %v344_v36 = vld [vmem:[%s630_s0 + $0x30] sm:$0xf] }
   0xb   :  { %256 = vmatpush.bf16.msra.mxu1 %v451_v9  ;;  %426 = vmatmul.msk.bf16.vlgmr.msra.gmra.mxu2 %vm220_vm0, %v329_v10  ;;  %v325_v32 = vor.u32 %v429_v28, %v322_v29  ;;  %v437_v34 = vld [vmem:[%s630_s0 + $0x40] sm:$0xf0]  ;;  %v436_v37 = vld [vmem:[%s630_s0 + $0x38] sm:$0xf0]  ;;  %v334_v39 = vld [vmem:[%s630_s0 + $0x24] sm:$0xf0] }
   0xc   :  { %v353_v35 = vor.u32 %v437_v34, %v352_v33  ;;  %v432_v38 = vld [vmem:[%s630_s0 + $0x1c] sm:$0xf]  ;;  %v345_v40 = vor.u32 %v436_v37, %v344_v36  ;;  %v435_v42 = vld [vmem:[%s630_s0 + $0x34] sm:$0xf]  ;;  %v346_v43 = vld [vmem:[%s630_s0 + $0x3c] sm:$0xf0] }
   0xd   :  { %v337_v41 = vor.u32 %v432_v38, %v334_v39  ;;  %v349_v44 = vor.u32 %v435_v42, %v346_v43  ;;  %v464_v46 = vld [vmem:[%s631_s2] ss:$0 sm:$0xff] }
   0xe   :  { %233 = vmatpush.bf16.msra.mxu0 %v442_v11  ;;  %459 = vmatpush.bf16.msra.mxu3 %v442_v11 }
   0xf   :  { %257 = vmatpush.bf16.msra.mxu1 %v450_v12 }
  0x12   :  { %234 = vmatpush.bf16.msra.mxu0 %v441_v13  ;;  %460 = vmatpush.bf16.msra.mxu3 %v441_v13 }
  0x13   :  { %258 = vmatpush.bf16.msra.mxu1 %v449_v14 }
  0x16   :  { %235 = vmatpush.bf16.msra.mxu0 %v440_v15  ;;  %461 = vmatpush.bf16.msra.mxu3 %v440_v15 }
  0x17   :  { %259 = vmatpush.bf16.msra.mxu1 %v448_v16 }
  0x1a   :  { %236 = vmatpush.bf16.msra.mxu0 %v439_v19  ;;  %462 = vmatpush.bf16.msra.mxu3 %v439_v19 }
  0x1b   :  { %260 = vmatpush.bf16.msra.mxu1 %v447_v20  ;;  %427 = vmatmul.msk.bf16.gmra.mxu2 %vm220_vm0, %v341_v21 }
  0x1e   :  { %237 = vmatpush.bf16.msra.mxu0 %v438_v22  ;;  %463 = vmatpush.bf16.msra.mxu3 %v438_v22 }
  0x1f   :  { %261 = vmatpush.bf16.msra.mxu1 %v446_v27 }
  0x21   :  { %238 = vmatmul.bf16.vlgmr.msra.gmra.mxu0 %v321_v30  ;;  %243 = vmatmul.bf16.vlgmr.msra.gmra.mxu3 %v333_v31 }
  0x22   :  { %262 = vmatmul.bf16.vlgmr.msra.gmra.mxu1 %v325_v32 }
  0x2b   :  { %428 = vmatmul.msk.bf16.gmra.mxu2 %vm220_vm0, %v353_v35 }
  0x31   :  { %248 = vmatmul.bf16.gmra.mxu3 %v345_v40 }
  0x32   :  { %267 = vmatmul.bf16.gmra.mxu1 %v337_v41 }
  0x42   :  { %272 = vmatmul.bf16.gmra.mxu1 %v349_v44 }
  0x8e   :  { %v287_v45 = vpop.f32.mrf.mxu2 }
  0x96   :  { %v289_v51 = vpop.f32.mrf.mxu2 }
  0x9e   :  { %v239_v47 = vpop.f32.mrf.mxu0  ;;  %v292_v60 = vpop.f32.mrf.mxu2 }
  0x9f   :  { %v240_v48 = vadd.f32 %v464_v46, %v239_v47  ;;  %v263_v49 = vpop.f32.mrf.mxu1 }
  0xa1   :  { %v264_v50 = vadd.f32 %v263_v49, %v240_v48 }
  0xa3   :  { %v288_v52 = vadd.f32 %v287_v45, %v264_v50 }
  0xa4   :  { %v244_v53 = vpop.f32.mrf.mxu3 }
  0xa5   :  { %465 = vtanh.f32 %v288_v52  ;;  %v245_v61 = vadd.f32 %v464_v46, %v244_v53 }
  0xa6   :  { %v241_v54 = vpop.f32.mrf.mxu0  ;;  %v294_v3 = vpop.f32.mrf.mxu2 }
  0xa7   :  { %v242_v55 = vadd.f32 %v464_v46, %v241_v54  ;;  %v265_v56 = vpop.f32.mrf.mxu1 }
  0xa9   :  { %v266_v57 = vadd.f32 %v265_v56, %v242_v55 }
  0xab   :  { %v466_v58 = vpop.eup %465  ;;  %v290_v59 = vadd.f32 %v289_v51, %v266_v57 }
  0xac   :  { %308 = vst [vmem:[%s632_s3] sm:$0xff] %v466_v58  ;;  %v246_v62 = vpop.f32.mrf.mxu3 }
  0xad   :  { %467 = vtanh.f32 %v290_v59  ;;  %v247_v4 = vadd.f32 %v464_v46, %v246_v62 }
  0xae   :  { %v297_v11 = vpop.f32.mrf.mxu2 }
  0xaf   :  { %v268_v63 = vpop.f32.mrf.mxu1 }
  0xb0   :  { %v269_v0 = vadd.f32 %v268_v63, %v245_v61 }
  0xb2   :  { %v293_v1 = vadd.f32 %v292_v60, %v269_v0 }
  0xb3   :  { %v468_v2 = vpop.eup %467 }
  0xb4   :  { %309 = vst [vmem:[%s632_s3 + $0x8] sm:$0xff] %v468_v2  ;;  %469 = vtanh.f32 %v293_v1  ;;  %v249_v7 = vpop.f32.mrf.mxu3 }
  0xb5   :  { %v250_v10 = vadd.f32 %v464_v46, %v249_v7 }
  0xb6   :  { %v299_v20 = vpop.f32.mrf.mxu2 }
  0xb7   :  { %v270_v5 = vpop.f32.mrf.mxu1 }
  0xb8   :  { %v271_v6 = vadd.f32 %v270_v5, %v247_v4 }
  0xba   :  { %v470_v8 = vpop.eup %469  ;;  %v295_v9 = vadd.f32 %v294_v3, %v271_v6 }
  0xbb   :  { %310 = vst [vmem:[%s632_s3 + $0x10] sm:$0xff] %v470_v8 }
  0xbc   :  { %471 = vtanh.f32 %v295_v9  ;;  %v251_v16 = vpop.f32.mrf.mxu3 }
  0xbd   :  { %v252_v17 = vadd.f32 %v464_v46, %v251_v16 }
  0xbf   :  { %v273_v12 = vpop.f32.mrf.mxu1 }
  0xc0   :  { %v274_v13 = vadd.f32 %v273_v12, %v250_v10 }
  0xc2   :  { %v472_v14 = vpop.eup %471  ;;  %v298_v15 = vadd.f32 %v297_v11, %v274_v13 }
  0xc3   :  { %311 = vst [vmem:[%s632_s3 + $0x18] sm:$0xff] %v472_v14 }
  0xc4   :  { %473 = vtanh.f32 %v298_v15 }
  0xc7   :  { %v275_v18 = vpop.f32.mrf.mxu1 }
  0xc8   :  { %v276_v19 = vadd.f32 %v275_v18, %v252_v17 }
  0xca   :  { %v474_v21 = vpop.eup %473  ;;  %v300_v22 = vadd.f32 %v299_v20, %v276_v19 }
  0xcb   :  { %312 = vst [vmem:[%s632_s3 + $0x20] sm:$0xff] %v474_v21 }
  0xcc   :  { %475 = vtanh.f32 %v300_v22 }
  0xd2   :  { %v476_v23 = vpop.eup %475 }
  0xd3   :  { %313 = vst [vmem:[%s632_s3 + $0x28] sm:$0xff] %v476_v23 }

// kernel: cud_net_forward.11
= control target key start
LH: loop header
LB: loop body
LE: loop exit
PB: predicated region body
PF: predicated region fallthrough
CT: control target
= control target key end

     0   :  { %vm338_vm0 = vcmask 523264   ;;  %s798_s1 = inlined_call_operand.vmem [shape: bf16[576,128], index: 1, kind: input, shape index: {}]   ;;  %s799_s2 = inlined_call_operand.vmem [shape: f32[1,128], index: 2, kind: input, shape index: {}]   ;;  %s800_s0 = inlined_call_operand.vmem [shape: bf16[12,576], index: 0, kind: input, shape index: {}]   ;;  %s801_s3 = inlined_call_operand.vmem [shape: f32[12,128], index: 3, kind: output, shape index: {}]  }
   0x1   :  { %v597_v0 = vld [vmem:[%s798_s1 + $0x38] sm:$0xff]  ;;  %v596_v4 = vld [vmem:[%s798_s1 + $0x30] sm:$0xff]  ;;  %v595_v8 = vld [vmem:[%s798_s1 + $0x28] sm:$0xff] }
   0x2   :  { %v613_v1 = vld [vmem:[%s798_s1 + $0xb8] sm:$0xff]  ;;  %342 = vmatpush.bf16.msra.mxu0 %v597_v0  ;;  %v612_v5 = vld [vmem:[%s798_s1 + $0xb0] sm:$0xff]  ;;  %v611_v9 = vld [vmem:[%s798_s1 + $0xa8] sm:$0xff] }
   0x3   :  { %v621_v2 = vld [vmem:[%s798_s1 + $0xf8] sm:$0xff]  ;;  %370 = vmatpush.bf16.msra.mxu2 %v613_v1  ;;  %v620_v6 = vld [vmem:[%s798_s1 + $0xf0] sm:$0xff]  ;;  %v619_v10 = vld [vmem:[%s798_s1 + $0xe8] sm:$0xff] }
   0x4   :  { %v605_v3 = vld [vmem:[%s798_s1 + $0x78] sm:$0xff]  ;;  %384 = vmatpush.bf16.msra.mxu3 %v621_v2  ;;  %v604_v7 = vld [vmem:[%s798_s1 + $0x70] sm:$0xff]  ;;  %v603_v11 = vld [vmem:[%s798_s1 + $0x68] sm:$0xff] }
   0x5   :  { %356 = vmatpush.bf16.msra.mxu1 %v605_v3  ;;  %v594_v12 = vld [vmem:[%s798_s1 + $0x20] sm:$0xff]  ;;  %v593_v16 = vld [vmem:[%s798_s1 + $0x18] sm:$0xff]  ;;  %v592_v20 = vld [vmem:[%s798_s1 + $0x10] sm:$0xff] }
   0x6   :  { %343 = vmatpush.bf16.msra.mxu0 %v596_v4  ;;  %v610_v13 = vld [vmem:[%s798_s1 + $0xa0] sm:$0xff]  ;;  %v609_v17 = vld [vmem:[%s798_s1 + $0x98] sm:$0xff]  ;;  %v608_v21 = vld [vmem:[%s798_s1 + $0x90] sm:$0xff] }
   0x7   :  { %371 = vmatpush.bf16.msra.mxu2 %v612_v5  ;;  %v618_v14 = vld [vmem:[%s798_s1 + $0xe0] sm:$0xff]  ;;  %v617_v18 = vld [vmem:[%s798_s1 + $0xd8] sm:$0xff]  ;;  %v616_v22 = vld [vmem:[%s798_s1 + $0xd0] sm:$0xff] }
   0x8   :  { %385 = vmatpush.bf16.msra.mxu3 %v620_v6  ;;  %v602_v15 = vld [vmem:[%s798_s1 + $0x60] sm:$0xff]  ;;  %v601_v19 = vld [vmem:[%s798_s1 + $0x58] sm:$0xff]  ;;  %v600_v23 = vld [vmem:[%s798_s1 + $0x50] sm:$0xff] }
   0x9   :  { %357 = vmatpush.bf16.msra.mxu1 %v604_v7  ;;  %v591_v24 = vld [vmem:[%s798_s1 + $0x8] sm:$0xff]  ;;  %v590_v28 = vld [vmem:[%s798_s1] sm:$0xff]  ;;  %v587_v33 = vld [vmem:[%s800_s0 + $0x10] sm:$0x30] }
   0xa   :  { %344 = vmatpush.bf16.msra.mxu0 %v595_v8  ;;  %v607_v25 = vld [vmem:[%s798_s1 + $0x88] sm:$0xff]  ;;  %v606_v29 = vld [vmem:[%s798_s1 + $0x80] sm:$0xff]  ;;  %v588_v35 = vld [vmem:[%s800_s0 + $0x18] sm:$0x30] }
   0xb   :  { %372 = vmatpush.bf16.msra.mxu2 %v611_v9  ;;  %v615_v26 = vld [vmem:[%s798_s1 + $0xc8] sm:$0xff]  ;;  %v614_v30 = vld [vmem:[%s798_s1 + $0xc0] sm:$0xff]  ;;  %v424_v39 = vld [vmem:[%s800_s0 + $0x14] sm:$0x30] }
   0xc   :  { %386 = vmatpush.bf16.msra.mxu3 %v619_v10  ;;  %v599_v27 = vld [vmem:[%s798_s1 + $0x48] sm:$0xff]  ;;  %v598_v31 = vld [vmem:[%s798_s1 + $0x40] sm:$0xff]  ;;  %v625_v40 = vld [vmem:[%s798_s1 + $0x118] sm:$0xff] }
   0xd   :  { %358 = vmatpush.bf16.msra.mxu1 %v603_v11  ;;  %v422_v32 = vld [vmem:[%s800_s0] sm:$0xf]  ;;  %v430_v34 = vld [vmem:[%s800_s0 + $0x8] sm:$0xf]  ;;  %v586_v36 = vld [vmem:[%s800_s0 + $0xc] sm:$0xf] }
   0xe   :  { %345 = vmatpush.bf16.msra.mxu0 %v594_v12  ;;  %v432_v37 = vld [vmem:[%s800_s0 + $0x1c] sm:$0x30]  ;;  %v585_v38 = vld [vmem:[%s800_s0 + $0x4] sm:$0xf]  ;;  %v423_v41 = vor.u32 %v587_v33, %v422_v32  ;;  %v431_v42 = vor.u32 %v588_v35, %v430_v34  ;;  %v624_v45 = vld [vmem:[%s798_s1 + $0x110] sm:$0xff] }
   0xf   :  { %373 = vmatpush.bf16.msra.mxu2 %v610_v13  ;;  %v435_v43 = vor.u32 %v586_v36, %v432_v37  ;;  %v427_v44 = vor.u32 %v585_v38, %v424_v39  ;;  %v623_v46 = vld [vmem:[%s798_s1 + $0x108] sm:$0xff]  ;;  %v622_v47 = vld [vmem:[%s798_s1 + $0x100] sm:$0xff]  ;;  %v438_v48 = vld [vmem:[%s800_s0 + $0x10] sm:$0xf] }
  0x10   :  { %387 = vmatpush.bf16.msra.mxu3 %v618_v14  ;;  %v589_v49 = vld [vmem:[%s800_s0 + $0x20] sm:$0x30]  ;;  %v626_v52 = vld [vmem:[%s799_s2] ss:$0 sm:$0xff] }
  0x11   :  { %359 = vmatpush.bf16.msra.mxu1 %v602_v15  ;;  %v439_v50 = vor.u32 %v589_v49, %v438_v48 }
  0x12   :  { %346 = vmatpush.bf16.msra.mxu0 %v593_v16 }
  0x13   :  { %374 = vmatpush.bf16.msra.mxu2 %v609_v17 }
  0x14   :  { %388 = vmatpush.bf16.msra.mxu3 %v617_v18 }
  0x15   :  { %360 = vmatpush.bf16.msra.mxu1 %v601_v19 }
  0x16   :  { %347 = vmatpush.bf16.msra.mxu0 %v592_v20 }
  0x17   :  { %375 = vmatpush.bf16.msra.mxu2 %v608_v21 }
  0x18   :  { %389 = vmatpush.bf16.msra.mxu3 %v616_v22 }
  0x19   :  { %361 = vmatpush.bf16.msra.mxu1 %v600_v23 }
  0x1a   :  { %348 = vmatpush.bf16.msra.mxu0 %v591_v24 }
  0x1b   :  { %376 = vmatpush.bf16.msra.mxu2 %v607_v25 }
  0x1c   :  { %390 = vmatpush.bf16.msra.mxu3 %v615_v26 }
  0x1d   :  { %362 = vmatpush.bf16.msra.mxu1 %v599_v27 }
  0x1e   :  { %349 = vmatpush.bf16.msra.mxu0 %v590_v28 }
  0x1f   :  { %377 = vmatpush.bf16.msra.mxu2 %v606_v29 }
  0x20   :  { %391 = vmatpush.bf16.msra.mxu3 %v614_v30 }
  0x21   :  { %363 = vmatpush.bf16.msra.mxu1 %v598_v31  ;;  %350 = vmatmul.bf16.vlgmr.msra.gmra.mxu0 %v423_v41 }
  0x22   :  { %402 = vmatpush.bf16.msrb.mxu0 %v625_v40  ;;  %378 = vmatmul.bf16.vlgmr.msra.gmra.mxu2 %v431_v42 }
  0x23   :  { %392 = vmatmul.bf16.vlgmr.msra.gmra.mxu3 %v435_v43 }
  0x24   :  { %364 = vmatmul.bf16.vlgmr.msra.gmra.mxu1 %v427_v44 }
  0x26   :  { %403 = vmatpush.bf16.msrb.mxu0 %v624_v45 }
  0x2a   :  { %404 = vmatpush.bf16.msrb.mxu0 %v623_v46 }
  0x2e   :  { %405 = vmatpush.bf16.msrb.mxu0 %v622_v47 }
  0x31   :  { %584 = vmatmul.msk.bf16.vlgmr.msrb.gmra.mxu0 %vm338_vm0, %v439_v50 }
  0x9e   :  { %v351_v51 = vpop.f32.mrf.mxu0 }
  0x9f   :  { %v352_v54 = vadd.f32 %v626_v52, %v351_v51 }
  0xa1   :  { %v365_v53 = vpop.f32.mrf.mxu1 }
  0xa2   :  { %v366_v57 = vadd.f32 %v365_v53, %v352_v54 }
  0xa5   :  { %v379_v55 = vpop.f32.mrf.mxu2 }
  0xa6   :  { %v353_v56 = vpop.f32.mrf.mxu0  ;;  %v380_v58 = vadd.f32 %v379_v55, %v366_v57  ;;  %v393_v59 = vpop.f32.mrf.mxu3 }
  0xa7   :  { %v354_v60 = vadd.f32 %v626_v52, %v353_v56 }
  0xa8   :  { %v394_v62 = vadd.f32 %v393_v59, %v380_v58 }
  0xa9   :  { %v367_v61 = vpop.f32.mrf.mxu1 }
  0xaa   :  { %v368_v1 = vadd.f32 %v367_v61, %v354_v60 }
  0xad   :  { %v381_v63 = vpop.f32.mrf.mxu2 }
  0xae   :  { %v407_v0 = vpop.f32.mrf.mxu0  ;;  %v382_v3 = vadd.f32 %v381_v63, %v368_v1  ;;  %v395_v4 = vpop.f32.mrf.mxu3 }
  0xaf   :  { %v408_v2 = vadd.f32 %v407_v0, %v394_v62 }
  0xb0   :  { %v396_v5 = vadd.f32 %v395_v4, %v382_v3 }
  0xb1   :  { %627 = vtanh.f32 %v408_v2 }
  0xb6   :  { %v409_v6 = vpop.f32.mrf.mxu0 }
  0xb7   :  { %v628_v7 = vpop.eup %627  ;;  %v410_v8 = vadd.f32 %v409_v6, %v396_v5 }
  0xb8   :  { %414 = vst [vmem:[%s801_s3] sm:$0xff] %v628_v7 }
  0xb9   :  { %629 = vtanh.f32 %v410_v8 }
  0xbf   :  { %v630_v9 = vpop.eup %629 }
  0xc0   :  { %415 = vst [vmem:[%s801_s3 + $0x8] sm:$0xf] %v630_v9 }

// kernel: cud_net_forward.12
= control target key start
LH: loop header
LB: loop body
LE: loop exit
PB: predicated region body
PF: predicated region fallthrough
CT: control target
= control target key end

     0   :  { %vm2671_vm0 = vcmask 1043456   ;;  %s6551_s1 = inlined_call_operand.vmem [shape: bf16[128,256], index: 1, kind: input, shape index: {}]   ;;  %s6552_s3 = inlined_call_operand.vmem [shape: bf16[256,512], index: 3, kind: input, shape index: {}]   ;;  %s6553_s0 = inlined_call_operand.vmem [shape: bf16[3,128], index: 0, kind: input, shape index: {}]   ;;  %s6554_s2 = inlined_call_operand.vmem [shape: f32[1,256], index: 2, kind: input, shape index: {}]   ;;  %s6555_s5 = inlined_call_operand.vmem [shape: bf16[512,512], index: 5, kind: input, shape index: {}]   ;;  %s6556_s4 = inlined_call_operand.vmem [shape: f32[1,512], index: 4, kind: input, shape index: {}]   ;;  %s6557_s7 = inlined_call_operand.vmem [shape: bf16[512,512], index: 7, kind: input, shape index: {}]   ;;  %s6558_s6 = inlined_call_operand.vmem [shape: f32[1,512], index: 6, kind: input, shape index: {}]   ;;  %s6559_s8 = inlined_call_operand.vmem [shape: f32[1,512], index: 8, kind: input, shape index: {}]   ;;  %s6560_s9 = inlined_call_operand.vmem [shape: f32[3,512], index: 9, kind: output, shape index: {}]  }
   0x1   :  { %v2740_v0 = vld [vmem:[%s6551_s1 + $0x70] sm:$0xf]  ;;  %v4041_v1 = vld [vmem:[%s6551_s1 + $0x74] sm:$0xf0]  ;;  %v4040_v2 = vld [vmem:[%s6551_s1 + $0x74] sm:$0xf] }
   0x2   :  { %v2741_v3 = vor.u32 %v4041_v1, %v2740_v0  ;;  %v2742_v4 = vld [vmem:[%s6551_s1 + $0x78] sm:$0xf0]  ;;  %v2732_v5 = vld [vmem:[%s6551_s1 + $0x60] sm:$0xf]  ;;  %v4039_v6 = vld [vmem:[%s6551_s1 + $0x64] sm:$0xf0] }
   0x3   :  { %v2745_v7 = vor.u32 %v4040_v2, %v2742_v4  ;;  %v4038_v8 = vld [vmem:[%s6551_s1 + $0x64] sm:$0xf]  ;;  %v2734_v9 = vld [vmem:[%s6551_s1 + $0x68] sm:$0xf0]  ;;  %v2733_v10 = vor.u32 %v4039_v6, %v2732_v5  ;;  %v2724_v12 = vld [vmem:[%s6551_s1 + $0x50] sm:$0xf] }
   0x4   :  { %135 = vmatpush.bf16.msra.mxu0 %v2741_v3  ;;  %v2737_v11 = vor.u32 %v4038_v8, %v2734_v9  ;;  %v4037_v13 = vld [vmem:[%s6551_s1 + $0x54] sm:$0xf0]  ;;  %v4036_v14 = vld [vmem:[%s6551_s1 + $0x54] sm:$0xf]  ;;  %v2726_v15 = vld [vmem:[%s6551_s1 + $0x58] sm:$0xf0] }
   0x5   :  { %148 = vmatpush.bf16.msra.mxu1 %v2745_v7  ;;  %v2725_v16 = vor.u32 %v4037_v13, %v2724_v12  ;;  %v2729_v17 = vor.u32 %v4036_v14, %v2726_v15  ;;  %v2716_v18 = vld [vmem:[%s6551_s1 + $0x40] sm:$0xf]  ;;  %v4035_v19 = vld [vmem:[%s6551_s1 + $0x44] sm:$0xf0]  ;;  %v4034_v20 = vld [vmem:[%s6551_s1 + $0x44] sm:$0xf] }
   0x6   :  { %v2718_v21 = vld [vmem:[%s6551_s1 + $0x48] sm:$0xf0]  ;;  %v2717_v22 = vor.u32 %v4035_v19, %v2716_v18  ;;  %v2860_v23 = vld [vmem:[%s6552_s3 + $0xe0] sm:$0xf]  ;;  %v4072_v24 = vld [vmem:[%s6552_s3 + $0xec] sm:$0xf0] }
   0x7   :  { %v2988_v25 = vld [vmem:[%s6552_s3 + $0x1e0] sm:$0xf]  ;;  %v2721_v26 = vor.u32 %v4034_v20, %v2718_v21  ;;  %v2708_v27 = vld [vmem:[%s6551_s1 + $0x30] sm:$0xf]  ;;  %v4033_v28 = vld [vmem:[%s6551_s1 + $0x34] sm:$0xf0]  ;;  %v2861_v29 = vor.u32 %v4072_v24, %v2860_v23 }
   0x8   :  { %136 = vmatpush.bf16.msra.mxu0 %v2733_v10  ;;  %v4104_v30 = vld [vmem:[%s6552_s3 + $0x1ec] sm:$0xf0]  ;;  %v4032_v31 = vld [vmem:[%s6551_s1 + $0x34] sm:$0xf]  ;;  %v2710_v32 = vld [vmem:[%s6551_s1 + $0x38] sm:$0xf0]  ;;  %v2709_v38 = vor.u32 %v4033_v28, %v2708_v27 }
   0x9   :  { %149 = vmatpush.bf16.msra.mxu1 %v2737_v11  ;;  %v2989_v33 = vor.u32 %v4104_v30, %v2988_v25  ;;  %v2844_v34 = vld [vmem:[%s6552_s3 + $0xc0] sm:$0xf]  ;;  %561 = vmatpush.bf16.msra.mxu2 %v2861_v29  ;;  %v4068_v35 = vld [vmem:[%s6552_s3 + $0xcc] sm:$0xf0]  ;;  %v4031_v40 = vld [vmem:[%s6551_s1 + $0x24] sm:$0xf0]  ;;  %v2713_v43 = vor.u32 %v4032_v31, %v2710_v32 }
   0xa   :  { %v2972_v36 = vld [vmem:[%s6552_s3 + $0x1c0] sm:$0xf]  ;;  %v4100_v37 = vld [vmem:[%s6552_s3 + $0x1cc] sm:$0xf0]  ;;  %v2845_v41 = vor.u32 %v4068_v35, %v2844_v34  ;;  %v4030_v44 = vld [vmem:[%s6551_s1 + $0x24] sm:$0xf] }
   0xb   :  { %v2700_v39 = vld [vmem:[%s6551_s1 + $0x20] sm:$0xf]  ;;  %574 = vmatpush.bf16.msra.mxu3 %v2989_v33  ;;  %v2973_v42 = vor.u32 %v4100_v37, %v2972_v36  ;;  %v4064_v46 = vld [vmem:[%s6552_s3 + $0xac] sm:$0xf0]  ;;  %v2702_v47 = vld [vmem:[%s6551_s1 + $0x28] sm:$0xf0] }
   0xc   :  { %137 = vmatpush.bf16.msra.mxu0 %v2725_v16  ;;  %v2828_v45 = vld [vmem:[%s6552_s3 + $0xa0] sm:$0xf]  ;;  %v4096_v49 = vld [vmem:[%s6552_s3 + $0x1ac] sm:$0xf0]  ;;  %v2701_v51 = vor.u32 %v4031_v40, %v2700_v39  ;;  %v2705_v56 = vor.u32 %v4030_v44, %v2702_v47  ;;  %v4029_v57 = vld [vmem:[%s6551_s1 + $0x14] sm:$0xf0] }
   0xd   :  { %150 = vmatpush.bf16.msra.mxu1 %v2729_v17  ;;  %v2956_v48 = vld [vmem:[%s6552_s3 + $0x1a0] sm:$0xf]  ;;  %562 = vmatpush.bf16.msra.mxu2 %v2845_v41  ;;  %v2829_v50 = vor.u32 %v4064_v46, %v2828_v45  ;;  %v2692_v52 = vld [vmem:[%s6551_s1 + $0x10] sm:$0xf]  ;;  %v4028_v60 = vld [vmem:[%s6551_s1 + $0x14] sm:$0xf] }
   0xe   :  { %v2957_v53 = vor.u32 %v4096_v49, %v2956_v48  ;;  %v2812_v54 = vld [vmem:[%s6552_s3 + $0x80] sm:$0xf]  ;;  %v4060_v55 = vld [vmem:[%s6552_s3 + $0x8c] sm:$0xf0]  ;;  %v2694_v61 = vld [vmem:[%s6551_s1 + $0x18] sm:$0xf0]  ;;  %v2693_v0 = vor.u32 %v4029_v57, %v2692_v52 }
   0xf   :  { %575 = vmatpush.bf16.msra.mxu3 %v2973_v42  ;;  %v2940_v58 = vld [vmem:[%s6552_s3 + $0x180] sm:$0xf]  ;;  %v4092_v59 = vld [vmem:[%s6552_s3 + $0x18c] sm:$0xf0]  ;;  %v2813_v63 = vor.u32 %v4060_v55, %v2812_v54  ;;  %v4027_v1 = vld [vmem:[%s6551_s1 + $0x4] sm:$0xf0]  ;;  %v2697_v5 = vor.u32 %v4028_v60, %v2694_v61 }
  0x10   :  { %138 = vmatpush.bf16.msra.mxu0 %v2717_v22  ;;  %v2684_v62 = vld [vmem:[%s6551_s1] sm:$0xf]  ;;  %v2941_v2 = vor.u32 %v4092_v59, %v2940_v58  ;;  %v4056_v4 = vld [vmem:[%s6552_s3 + $0x6c] sm:$0xf0]  ;;  %v4026_v6 = vld [vmem:[%s6551_s1 + $0x4] sm:$0xf] }
  0x11   :  { %151 = vmatpush.bf16.msra.mxu1 %v2721_v26  ;;  %563 = vmatpush.bf16.msra.mxu2 %v2829_v50  ;;  %v2796_v3 = vld [vmem:[%s6552_s3 + $0x60] sm:$0xf]  ;;  %v4088_v8 = vld [vmem:[%s6552_s3 + $0x16c] sm:$0xf0]  ;;  %v2686_v9 = vld [vmem:[%s6551_s1 + $0x8] sm:$0xf0]  ;;  %v2685_v15 = vor.u32 %v4027_v1, %v2684_v62 }
  0x12   :  { %v2924_v7 = vld [vmem:[%s6552_s3 + $0x160] sm:$0xf]  ;;  %v4070_v10 = vld [vmem:[%s6552_s3 + $0xe4] sm:$0xf]  ;;  %v2862_v11 = vld [vmem:[%s6552_s3 + $0xf0] sm:$0xf0]  ;;  %v2797_v14 = vor.u32 %v4056_v4, %v2796_v3  ;;  %v2689_v19 = vor.u32 %v4026_v6, %v2686_v9 }
  0x13   :  { %576 = vmatpush.bf16.msra.mxu3 %v2957_v53  ;;  %v4102_v12 = vld [vmem:[%s6552_s3 + $0x1e4] sm:$0xf]  ;;  %v2990_v13 = vld [vmem:[%s6552_s3 + $0x1f0] sm:$0xf0]  ;;  %v2925_v16 = vor.u32 %v4088_v8, %v2924_v7  ;;  %v2780_v17 = vld [vmem:[%s6552_s3 + $0x40] sm:$0xf]  ;;  %v2865_v20 = vor.u32 %v4070_v10, %v2862_v11 }
  0x14   :  { %139 = vmatpush.bf16.msra.mxu0 %v2709_v38  ;;  %v4052_v18 = vld [vmem:[%s6552_s3 + $0x4c] sm:$0xf0]  ;;  %v2908_v21 = vld [vmem:[%s6552_s3 + $0x140] sm:$0xf]  ;;  %v2993_v23 = vor.u32 %v4102_v12, %v2990_v13  ;;  %v4066_v24 = vld [vmem:[%s6552_s3 + $0xc4] sm:$0xf] }
  0x15   :  { %152 = vmatpush.bf16.msra.mxu1 %v2713_v43  ;;  %564 = vmatpush.bf16.msra.mxu2 %v2813_v63  ;;  %v4084_v22 = vld [vmem:[%s6552_s3 + $0x14c] sm:$0xf0]  ;;  %v2846_v25 = vld [vmem:[%s6552_s3 + $0xd0] sm:$0xf0]  ;;  %v4098_v26 = vld [vmem:[%s6552_s3 + $0x1c4] sm:$0xf]  ;;  %v2781_v28 = vor.u32 %v4052_v18, %v2780_v17 }
  0x16   :  { %v2974_v27 = vld [vmem:[%s6552_s3 + $0x1d0] sm:$0xf0]  ;;  %v32_v29 = vld [vmem:[%s6553_s0] sm:$0x3]  ;;  %v2909_v30 = vor.u32 %v4084_v22, %v2908_v21  ;;  %v4048_v32 = vld [vmem:[%s6552_s3 + $0x2c] sm:$0xf0]  ;;  %v2849_v33 = vor.u32 %v4066_v24, %v2846_v25 }
  0x17   :  { %577 = vmatpush.bf16.msra.mxu3 %v2941_v2  ;;  %v2764_v31 = vld [vmem:[%s6552_s3 + $0x20] sm:$0xf]  ;;  %v4080_v35 = vld [vmem:[%s6552_s3 + $0x12c] sm:$0xf0]  ;;  %v2977_v36 = vor.u32 %v4098_v26, %v2974_v27  ;;  %v4062_v37 = vld [vmem:[%s6552_s3 + $0xa4] sm:$0xf] }
  0x18   :  { %140 = vmatpush.bf16.msra.mxu0 %v2701_v51  ;;  %v2892_v34 = vld [vmem:[%s6552_s3 + $0x120] sm:$0xf]  ;;  %v2830_v38 = vld [vmem:[%s6552_s3 + $0xb0] sm:$0xf0]  ;;  %v4094_v39 = vld [vmem:[%s6552_s3 + $0x1a4] sm:$0xf]  ;;  %v2765_v41 = vor.u32 %v4048_v32, %v2764_v31 }
  0x19   :  { %153 = vmatpush.bf16.msra.mxu1 %v2705_v56  ;;  %565 = vmatpush.bf16.msra.mxu2 %v2797_v14  ;;  %v2958_v40 = vld [vmem:[%s6552_s3 + $0x1b0] sm:$0xf0]  ;;  %v4058_v42 = vld [vmem:[%s6552_s3 + $0x84] sm:$0xf]  ;;  %v2893_v43 = vor.u32 %v4080_v35, %v2892_v34  ;;  %v2748_v44 = vld [vmem:[%s6552_s3] sm:$0xf]  ;;  %v2833_v47 = vor.u32 %v4062_v37, %v2830_v38 }
  0x1a   :  { %v4044_v45 = vld [vmem:[%s6552_s3 + $0xc] sm:$0xf0]  ;;  %v2876_v46 = vld [vmem:[%s6552_s3 + $0x100] sm:$0xf]  ;;  %v2868_v49 = vld [vmem:[%s6552_s3 + $0xe8] sm:$0xf]  ;;  %v2961_v51 = vor.u32 %v4094_v39, %v2958_v40 }
  0x1b   :  { %578 = vmatpush.bf16.msra.mxu3 %v2925_v16  ;;  %v4076_v48 = vld [vmem:[%s6552_s3 + $0x10c] sm:$0xf0]  ;;  %v4073_v50 = vld [vmem:[%s6552_s3 + $0xf4] sm:$0xf0]  ;;  %v2814_v52 = vld [vmem:[%s6552_s3 + $0x90] sm:$0xf0]  ;;  %v2749_v57 = vor.u32 %v4044_v45, %v2748_v44 }
  0x1c   :  { %141 = vmatpush.bf16.msra.mxu0 %v2693_v0  ;;  %v2996_v53 = vld [vmem:[%s6552_s3 + $0x1e8] sm:$0xf]  ;;  %v4105_v54 = vld [vmem:[%s6552_s3 + $0x1f4] sm:$0xf0]  ;;  %v4090_v55 = vld [vmem:[%s6552_s3 + $0x184] sm:$0xf]  ;;  %v2877_v58 = vor.u32 %v4076_v48, %v2876_v46  ;;  %v2869_v59 = vor.u32 %v4073_v50, %v2868_v49  ;;  %v2817_v60 = vor.u32 %v4058_v42, %v2814_v52 }
  0x1d   :  { %154 = vmatpush.bf16.msra.mxu1 %v2697_v5  ;;  %566 = vmatpush.bf16.msra.mxu2 %v2781_v28  ;;  %v2942_v56 = vld [vmem:[%s6552_s3 + $0x190] sm:$0xf0]  ;;  %v2997_v61 = vor.u32 %v4105_v54, %v2996_v53  ;;  %v4054_v63 = vld [vmem:[%s6552_s3 + $0x64] sm:$0xf]  ;;  %v4071_v21 = vld [vmem:[%s6552_s3 + $0xec] sm:$0xf] }
  0x1e   :  { %v2945_v62 = vor.u32 %v4090_v55, %v2942_v56  ;;  %v2798_v0 = vld [vmem:[%s6552_s3 + $0x70] sm:$0xf0]  ;;  %v4086_v1 = vld [vmem:[%s6552_s3 + $0x164] sm:$0xf]  ;;  %v2870_v22 = vld [vmem:[%s6552_s3 + $0xf8] sm:$0xf0] }
  0x1f   :  { %579 = vmatpush.bf16.msra.mxu3 %v2909_v30  ;;  %v2926_v2 = vld [vmem:[%s6552_s3 + $0x170] sm:$0xf0]  ;;  %v2801_v3 = vor.u32 %v4054_v63, %v2798_v0  ;;  %v4050_v5 = vld [vmem:[%s6552_s3 + $0x44] sm:$0xf]  ;;  %v2998_v24 = vld [vmem:[%s6552_s3 + $0x1f8] sm:$0xf0]  ;;  %v2873_v27 = vor.u32 %v4071_v21, %v2870_v22 }
  0x20   :  { %142 = vmatpush.bf16.msra.mxu0 %v2685_v15  ;;  %v2929_v4 = vor.u32 %v4086_v1, %v2926_v2  ;;  %v2782_v6 = vld [vmem:[%s6552_s3 + $0x50] sm:$0xf0]  ;;  %v4082_v7 = vld [vmem:[%s6552_s3 + $0x144] sm:$0xf]  ;;  %v4069_v30 = vld [vmem:[%s6552_s3 + $0xd4] sm:$0xf0] }
  0x21   :  { %155 = vmatpush.bf16.msra.mxu1 %v2689_v19  ;;  %567 = vmatpush.bf16.msra.mxu2 %v2765_v41  ;;  %v2910_v8 = vld [vmem:[%s6552_s3 + $0x150] sm:$0xf0]  ;;  %v2785_v9 = vor.u32 %v4050_v5, %v2782_v6  ;;  %v4046_v11 = vld [vmem:[%s6552_s3 + $0x24] sm:$0xf]  ;;  %v2980_v31 = vld [vmem:[%s6552_s3 + $0x1c8] sm:$0xf] }
  0x22   :  { %v2913_v10 = vor.u32 %v4082_v7, %v2910_v8  ;;  %v2766_v12 = vld [vmem:[%s6552_s3 + $0x30] sm:$0xf0]  ;;  %v4078_v13 = vld [vmem:[%s6552_s3 + $0x124] sm:$0xf]  ;;  %v4067_v34 = vld [vmem:[%s6552_s3 + $0xcc] sm:$0xf] }
  0x23   :  { %143 = vmatmul.bf16.vlgmr.msra.gmra.mxu0 %v32_v29  ;;  %580 = vmatpush.bf16.msra.mxu3 %v2893_v43  ;;  %v2894_v14 = vld [vmem:[%s6552_s3 + $0x130] sm:$0xf0]  ;;  %v2769_v15 = vor.u32 %v4046_v11, %v2766_v12  ;;  %v4042_v17 = vld [vmem:[%s6552_s3 + $0x4] sm:$0xf]  ;;  %v2854_v35 = vld [vmem:[%s6552_s3 + $0xd8] sm:$0xf0] }
  0x24   :  { %587 = vmatpush.bf16.msrb.mxu0 %v2865_v20  ;;  %156 = vmatmul.bf16.vlgmr.msra.gmra.mxu1 %v32_v29  ;;  %v2897_v16 = vor.u32 %v4078_v13, %v2894_v14  ;;  %v2750_v18 = vld [vmem:[%s6552_s3 + $0x10] sm:$0xf0]  ;;  %v4074_v19 = vld [vmem:[%s6552_s3 + $0x104] sm:$0xf]  ;;  %v2852_v29 = vld [vmem:[%s6552_s3 + $0xc8] sm:$0xf]  ;;  %v2857_v37 = vor.u32 %v4067_v34, %v2854_v35 }
  0x25   :  { %600 = vmatpush.bf16.msrb.mxu1 %v2993_v23  ;;  %568 = vmatpush.bf16.msra.mxu2 %v2749_v57  ;;  %v2878_v20 = vld [vmem:[%s6552_s3 + $0x110] sm:$0xf0]  ;;  %v4103_v23 = vld [vmem:[%s6552_s3 + $0x1ec] sm:$0xf]  ;;  %v2753_v25 = vor.u32 %v4042_v17, %v2750_v18  ;;  %v2853_v32 = vor.u32 %v4069_v30, %v2852_v29  ;;  %v2982_v39 = vld [vmem:[%s6552_s3 + $0x1d8] sm:$0xf0] }
  0x26   :  { %v2881_v26 = vor.u32 %v4074_v19, %v2878_v20  ;;  %v3001_v28 = vor.u32 %v4103_v23, %v2998_v24  ;;  %v4099_v38 = vld [vmem:[%s6552_s3 + $0x1cc] sm:$0xf]  ;;  %v2836_v41 = vld [vmem:[%s6552_s3 + $0xa8] sm:$0xf]  ;;  %v4065_v42 = vld [vmem:[%s6552_s3 + $0xb4] sm:$0xf0] }
  0x27   :  { %581 = vmatpush.bf16.msra.mxu3 %v2877_v58  ;;  %v2985_v40 = vor.u32 %v4099_v38, %v2982_v39  ;;  %v2964_v43 = vld [vmem:[%s6552_s3 + $0x1a8] sm:$0xf]  ;;  %v2837_v44 = vor.u32 %v4065_v42, %v2836_v41  ;;  %v4097_v45 = vld [vmem:[%s6552_s3 + $0x1b4] sm:$0xf0]  ;;  %v4063_v46 = vld [vmem:[%s6552_s3 + $0xac] sm:$0xf] }
  0x28   :  { %588 = vmatpush.bf16.msrb.mxu0 %v2849_v33  ;;  %v4101_v33 = vld [vmem:[%s6552_s3 + $0x1d4] sm:$0xf0]  ;;  %v2965_v48 = vor.u32 %v4097_v45, %v2964_v43  ;;  %v4095_v50 = vld [vmem:[%s6552_s3 + $0x1ac] sm:$0xf]  ;;  %v2820_v53 = vld [vmem:[%s6552_s3 + $0x88] sm:$0xf] }
  0x29   :  { %601 = vmatpush.bf16.msrb.mxu1 %v2977_v36  ;;  %613 = vmatpush.bf16.msrb.mxu2 %v2869_v59  ;;  %v2981_v36 = vor.u32 %v4101_v33, %v2980_v31  ;;  %v4061_v54 = vld [vmem:[%s6552_s3 + $0x94] sm:$0xf0]  ;;  %v2948_v55 = vld [vmem:[%s6552_s3 + $0x188] sm:$0xf]  ;;  %v4059_v58 = vld [vmem:[%s6552_s3 + $0x8c] sm:$0xf] }
  0x2a   :  { %v2821_v56 = vor.u32 %v4061_v54, %v2820_v53  ;;  %v4093_v57 = vld [vmem:[%s6552_s3 + $0x194] sm:$0xf0]  ;;  %v2822_v59 = vld [vmem:[%s6552_s3 + $0x98] sm:$0xf0]  ;;  %v2804_v1 = vld [vmem:[%s6552_s3 + $0x68] sm:$0xf] }
  0x2b   :  { %626 = vmatpush.bf16.msrb.mxu3 %v2997_v61  ;;  %v2825_v61 = vor.u32 %v4059_v58, %v2822_v59  ;;  %v2950_v63 = vld [vmem:[%s6552_s3 + $0x198] sm:$0xf0]  ;;  %v4057_v2 = vld [vmem:[%s6552_s3 + $0x74] sm:$0xf0]  ;;  %v4055_v6 = vld [vmem:[%s6552_s3 + $0x6c] sm:$0xf] }
  0x2c   :  { %589 = vmatpush.bf16.msrb.mxu0 %v2833_v47  ;;  %v2838_v47 = vld [vmem:[%s6552_s3 + $0xb8] sm:$0xf0]  ;;  %v4089_v5 = vld [vmem:[%s6552_s3 + $0x174] sm:$0xf0]  ;;  %v2788_v12 = vld [vmem:[%s6552_s3 + $0x48] sm:$0xf] }
  0x2d   :  { %602 = vmatpush.bf16.msrb.mxu1 %v2961_v51  ;;  %614 = vmatpush.bf16.msrb.mxu2 %v2853_v32  ;;  %v2841_v49 = vor.u32 %v4063_v46, %v2838_v47  ;;  %v2966_v51 = vld [vmem:[%s6552_s3 + $0x1b8] sm:$0xf0]  ;;  %v4053_v14 = vld [vmem:[%s6552_s3 + $0x54] sm:$0xf0]  ;;  %v4051_v19 = vld [vmem:[%s6552_s3 + $0x4c] sm:$0xf] }
  0x2e   :  { %v2969_v52 = vor.u32 %v4095_v50, %v2966_v51  ;;  %v2806_v7 = vld [vmem:[%s6552_s3 + $0x78] sm:$0xf0]  ;;  %v2789_v17 = vor.u32 %v4053_v14, %v2788_v12  ;;  %v4083_v21 = vld [vmem:[%s6552_s3 + $0x14c] sm:$0xf]  ;;  %v2772_v24 = vld [vmem:[%s6552_s3 + $0x28] sm:$0xf] }
  0x2f   :  { %627 = vmatpush.bf16.msrb.mxu3 %v2981_v36  ;;  %v2934_v11 = vld [vmem:[%s6552_s3 + $0x178] sm:$0xf0]  ;;  %v4047_v29 = vld [vmem:[%s6552_s3 + $0x2c] sm:$0xf]  ;;  %v2756_v36 = vld [vmem:[%s6552_s3 + $0x8] sm:$0xf] }
  0x30   :  { %590 = vmatpush.bf16.msrb.mxu0 %v2817_v60  ;;  %v2949_v60 = vor.u32 %v4093_v57, %v2948_v55  ;;  %v2790_v20 = vld [vmem:[%s6552_s3 + $0x58] sm:$0xf0]  ;;  %v4079_v32 = vld [vmem:[%s6552_s3 + $0x12c] sm:$0xf]  ;;  %v2884_v38 = vld [vmem:[%s6552_s3 + $0x108] sm:$0xf] }
  0x31   :  { %603 = vmatpush.bf16.msrb.mxu1 %v2945_v62  ;;  %615 = vmatpush.bf16.msrb.mxu2 %v2837_v44  ;;  %v4091_v62 = vld [vmem:[%s6552_s3 + $0x18c] sm:$0xf]  ;;  %v2793_v22 = vor.u32 %v4051_v19, %v2790_v20  ;;  %v2918_v23 = vld [vmem:[%s6552_s3 + $0x158] sm:$0xf0]  ;;  %v3244_v57 = vld [vmem:[%s6555_s5 + $0x1e0] sm:$0xf] }
  0x32   :  { %v2953_v0 = vor.u32 %v4091_v62, %v2950_v63  ;;  %v2774_v31 = vld [vmem:[%s6552_s3 + $0x38] sm:$0xf0]  ;;  %v4043_v41 = vld [vmem:[%s6552_s3 + $0xc] sm:$0xf]  ;;  %v4168_v58 = vld [vmem:[%s6555_s5 + $0x1ec] sm:$0xf0] }
  0x33   :  { %628 = vmatpush.bf16.msrb.mxu3 %v2965_v48  ;;  %v2902_v33 = vld [vmem:[%s6552_s3 + $0x138] sm:$0xf0]  ;;  %v2777_v35 = vor.u32 %v4047_v29, %v2774_v31  ;;  %v4075_v43 = vld [vmem:[%s6552_s3 + $0x10c] sm:$0xf]  ;;  %v49_v48 = vld [vmem:[%s6554_s2] sm:$0x3] }
  0x34   :  { %591 = vmatpush.bf16.msrb.mxu0 %v2801_v3  ;;  %v2932_v3 = vld [vmem:[%s6552_s3 + $0x168] sm:$0xf]  ;;  %v2905_v39 = vor.u32 %v4079_v32, %v2902_v33  ;;  %v2758_v42 = vld [vmem:[%s6552_s3 + $0x18] sm:$0xf0]  ;;  %v51_v50 = vperm.slane %v49_v48, 0  ;;  %v52_v51 = vperm.slane %v49_v48, 1 }
  0x35   :  { %604 = vmatpush.bf16.msrb.mxu1 %v2929_v4  ;;  %616 = vmatpush.bf16.msrb.mxu2 %v2821_v56  ;;  %v2805_v4 = vor.u32 %v4057_v2, %v2804_v1  ;;  %v2933_v8 = vor.u32 %v4089_v5, %v2932_v3  ;;  %v2886_v44 = vld [vmem:[%s6552_s3 + $0x118] sm:$0xf0]  ;;  %v2761_v47 = vor.u32 %v4043_v41, %v2758_v42  ;;  %v3116_v59 = vld [vmem:[%s6555_s5 + $0xe0] sm:$0xf]  ;;  %v4136_v62 = vld [vmem:[%s6555_s5 + $0xec] sm:$0xf0] }
  0x36   :  { %v3500_v63 = vld [vmem:[%s6555_s5 + $0x3e0] sm:$0xf]  ;;  %v4196_v19 = vld [vmem:[%s6555_s5 + $0x2cc] sm:$0xf0] }
  0x37   :  { %629 = vmatpush.bf16.msrb.mxu3 %v2949_v60  ;;  %v3372_v3 = vld [vmem:[%s6555_s5 + $0x2e0] sm:$0xf]  ;;  %v4224_v29 = vld [vmem:[%s6555_s5 + $0x3ac] sm:$0xf0] }
  0x38   :  { %592 = vmatpush.bf16.msrb.mxu0 %v2785_v9  ;;  %v2809_v9 = vor.u32 %v4055_v6, %v2806_v7  ;;  %v3245_v7 = vor.u32 %v4168_v58, %v3244_v57  ;;  %v3100_v12 = vld [vmem:[%s6555_s5 + $0xc0] sm:$0xf]  ;;  %v4192_v31 = vld [vmem:[%s6555_s5 + $0x2ac] sm:$0xf0] }
  0x39   :  { %605 = vmatpush.bf16.msrb.mxu1 %v2913_v10  ;;  %v4087_v10 = vld [vmem:[%s6552_s3 + $0x16c] sm:$0xf]  ;;  %617 = vmatpush.bf16.msrb.mxu2 %v2805_v4  ;;  %v4200_v4 = vld [vmem:[%s6555_s5 + $0x2ec] sm:$0xf0]  ;;  %v3196_v33 = vld [vmem:[%s6555_s5 + $0x180] sm:$0xf] }
  0x3a   :  { %v2937_v13 = vor.u32 %v4087_v10, %v2934_v11  ;;  %v3117_v10 = vor.u32 %v4136_v62, %v3116_v59  ;;  %v4220_v41 = vld [vmem:[%s6555_s5 + $0x38c] sm:$0xf0]  ;;  %v3324_v42 = vld [vmem:[%s6555_s5 + $0x280] sm:$0xf] }
  0x3b   :  { %630 = vmatpush.bf16.msrb.mxu3 %v2933_v8  ;;  %v3228_v8 = vld [vmem:[%s6555_s5 + $0x1c0] sm:$0xf]  ;;  %v4148_v59 = vld [vmem:[%s6555_s5 + $0x14c] sm:$0xf0] }
  0x3c   :  { %593 = vmatpush.bf16.msrb.mxu0 %v2769_v15  ;;  %v2916_v15 = vld [vmem:[%s6552_s3 + $0x148] sm:$0xf]  ;;  %v3052_v48 = vld [vmem:[%s6555_s5 + $0x60] sm:$0xf] }
  0x3d   :  { %606 = vmatpush.bf16.msrb.mxu1 %v2897_v16  ;;  %v4085_v16 = vld [vmem:[%s6552_s3 + $0x154] sm:$0xf0]  ;;  %618 = vmatpush.bf16.msrb.mxu2 %v2789_v17  ;;  %v4228_v17 = vld [vmem:[%s6555_s5 + $0x3cc] sm:$0xf0]  ;;  %v3164_v57 = vld [vmem:[%s6555_s5 + $0x140] sm:$0xf] }
  0x3e   :  { %v2917_v18 = vor.u32 %v4085_v16, %v2916_v15  ;;  %v3484_v15 = vld [vmem:[%s6555_s5 + $0x3c0] sm:$0xf]  ;;  %v3373_v16 = vor.u32 %v4200_v4, %v3372_v3 }
  0x3f   :  { %v3148_v3 = vld [vmem:[%s6555_s5 + $0x120] sm:$0xf] }
  0x40   :  { %594 = vmatpush.bf16.msrb.mxu0 %v2753_v25  ;;  %v4049_v25 = vld [vmem:[%s6552_s3 + $0x34] sm:$0xf0]  ;;  %631 = vmatpush.bf16.msrb.mxu3 %v2917_v18  ;;  %v3356_v18 = vld [vmem:[%s6555_s5 + $0x2c0] sm:$0xf] }
  0x41   :  { %607 = vmatpush.bf16.msrb.mxu1 %v2881_v26  ;;  %v2921_v26 = vor.u32 %v4083_v21, %v2918_v23  ;;  %v2773_v30 = vor.u32 %v4049_v25, %v2772_v24  ;;  %v3212_v21 = vld [vmem:[%s6555_s5 + $0x1a0] sm:$0xf]  ;;  %v4128_v25 = vld [vmem:[%s6555_s5 + $0xac] sm:$0xf0] }
  0x42   :  { %v3084_v24 = vld [vmem:[%s6555_s5 + $0xa0] sm:$0xf] }
  0x43   :  { %619 = vmatpush.bf16.msrb.mxu2 %v2773_v30  ;;  %v3340_v30 = vld [vmem:[%s6555_s5 + $0x2a0] sm:$0xf] }
  0x44   :  { %639 = vmatpush.bf16.msra.mxu0 %v2873_v27  ;;  %v2900_v27 = vld [vmem:[%s6552_s3 + $0x128] sm:$0xf] }
  0x45   :  { %652 = vmatpush.bf16.msra.mxu1 %v3001_v28  ;;  %v4081_v28 = vld [vmem:[%s6552_s3 + $0x134] sm:$0xf0] }
  0x46   :  { %v2901_v34 = vor.u32 %v4081_v28, %v2900_v27  ;;  %v3468_v27 = vld [vmem:[%s6555_s5 + $0x3a0] sm:$0xf]  ;;  %v3357_v28 = vor.u32 %v4196_v19, %v3356_v18  ;;  %v3246_v19 = vld [vmem:[%s6555_s5 + $0x1f0] sm:$0xf0] }
  0x48   :  { %640 = vmatpush.bf16.msra.mxu0 %v2857_v37  ;;  %v4045_v37 = vld [vmem:[%s6552_s3 + $0x14] sm:$0xf0]  ;;  %632 = vmatpush.bf16.msrb.mxu3 %v2901_v34  ;;  %v4156_v34 = vld [vmem:[%s6555_s5 + $0x18c] sm:$0xf0] }
  0x49   :  { %653 = vmatpush.bf16.msra.mxu1 %v2985_v40  ;;  %v4077_v40 = vld [vmem:[%s6552_s3 + $0x114] sm:$0xf0]  ;;  %v2757_v45 = vor.u32 %v4045_v37, %v2756_v36  ;;  %v3068_v36 = vld [vmem:[%s6555_s5 + $0x80] sm:$0xf]  ;;  %v4124_v37 = vld [vmem:[%s6555_s5 + $0x8c] sm:$0xf0] }
  0x4a   :  { %v2885_v46 = vor.u32 %v4077_v40, %v2884_v38  ;;  %v3469_v38 = vor.u32 %v4224_v29, %v3468_v27  ;;  %v3341_v40 = vor.u32 %v4192_v31, %v3340_v30  ;;  %v3230_v27 = vld [vmem:[%s6555_s5 + $0x1d0] sm:$0xf0] }
  0x4b   :  { %620 = vmatpush.bf16.msrb.mxu2 %v2757_v45  ;;  %v3180_v45 = vld [vmem:[%s6555_s5 + $0x160] sm:$0xf]  ;;  %v3102_v29 = vld [vmem:[%s6555_s5 + $0xd0] sm:$0xf0] }
  0x4c   :  { %641 = vmatpush.bf16.msra.mxu0 %v2841_v49  ;;  %v2889_v49 = vor.u32 %v4075_v43, %v2886_v44  ;;  %633 = vmatpush.bf16.msrb.mxu3 %v2885_v46  ;;  %v4188_v43 = vld [vmem:[%s6555_s5 + $0x28c] sm:$0xf0]  ;;  %v3197_v44 = vor.u32 %v4156_v34, %v3196_v33  ;;  %v3214_v33 = vld [vmem:[%s6555_s5 + $0x1b0] sm:$0xf0] }
  0x4d   :  { %654 = vmatpush.bf16.msra.mxu1 %v2969_v52  ;;  %v4152_v46 = vld [vmem:[%s6555_s5 + $0x16c] sm:$0xf0] }
  0x50   :  { %642 = vmatpush.bf16.msra.mxu0 %v2825_v61 }
  0x51   :  { %655 = vmatpush.bf16.msra.mxu1 %v2953_v0  ;;  %v4232_v0 = vld [vmem:[%s6555_s5 + $0x3ec] sm:$0xf0] }
  0x52   :  { %v3501_v14 = vor.u32 %v4232_v0, %v3500_v63  ;;  %v3420_v0 = vld [vmem:[%s6555_s5 + $0x340] sm:$0xf] }
  0x54   :  { %643 = vmatpush.bf16.msra.mxu0 %v2809_v9  ;;  %v4164_v9 = vld [vmem:[%s6555_s5 + $0x1cc] sm:$0xf0] }
  0x55   :  { %656 = vmatpush.bf16.msra.mxu1 %v2937_v13  ;;  %v4132_v13 = vld [vmem:[%s6555_s5 + $0xcc] sm:$0xf0]  ;;  %v3229_v20 = vor.u32 %v4164_v9, %v3228_v8  ;;  %v3404_v9 = vld [vmem:[%s6555_s5 + $0x320] sm:$0xf] }
  0x56   :  { %v3101_v23 = vor.u32 %v4132_v13, %v3100_v12  ;;  %v3132_v12 = vld [vmem:[%s6555_s5 + $0x100] sm:$0xf]  ;;  %v4140_v13 = vld [vmem:[%s6555_s5 + $0x10c] sm:$0xf0] }
  0x58   :  { %644 = vmatpush.bf16.msra.mxu0 %v2793_v22  ;;  %v4160_v22 = vld [vmem:[%s6555_s5 + $0x1ac] sm:$0xf0] }
  0x59   :  { %657 = vmatpush.bf16.msra.mxu1 %v2921_v26  ;;  %v3485_v26 = vor.u32 %v4228_v17, %v3484_v15  ;;  %v3213_v32 = vor.u32 %v4160_v22, %v3212_v21  ;;  %v4166_v15 = vld [vmem:[%s6555_s5 + $0x1e4] sm:$0xf]  ;;  %v4108_v17 = vld [vmem:[%s6555_s5 + $0xc] sm:$0xf0]  ;;  %v3118_v21 = vld [vmem:[%s6555_s5 + $0xf0] sm:$0xf0]  ;;  %v3133_v22 = vor.u32 %v4140_v13, %v3132_v12 }
  0x5a   :  { %v4222_v12 = vld [vmem:[%s6555_s5 + $0x3a4] sm:$0xf] }
  0x5c   :  { %645 = vmatpush.bf16.msra.mxu0 %v2777_v35  ;;  %v3085_v35 = vor.u32 %v4128_v25, %v3084_v24  ;;  %v3249_v24 = vor.u32 %v4166_v15, %v3246_v19  ;;  %v4162_v25 = vld [vmem:[%s6555_s5 + $0x1c4] sm:$0xf] }
  0x5d   :  { %658 = vmatpush.bf16.msra.mxu1 %v2905_v39  ;;  %v3452_v39 = vld [vmem:[%s6555_s5 + $0x380] sm:$0xf]  ;;  %v3233_v30 = vor.u32 %v4162_v25, %v3230_v27 }
  0x60   :  { %646 = vmatpush.bf16.msra.mxu0 %v2761_v47  ;;  %v3069_v47 = vor.u32 %v4124_v37, %v3068_v36  ;;  %v3198_v36 = vld [vmem:[%s6555_s5 + $0x190] sm:$0xf0] }
  0x61   :  { %659 = vmatpush.bf16.msra.mxu1 %v2889_v49  ;;  %v4120_v49 = vld [vmem:[%s6555_s5 + $0x6c] sm:$0xf0] }
  0x62   :  { %v3053_v58 = vor.u32 %v4120_v49, %v3052_v48  ;;  %v3182_v48 = vld [vmem:[%s6555_s5 + $0x170] sm:$0xf0]  ;;  %v4230_v49 = vld [vmem:[%s6555_s5 + $0x3e4] sm:$0xf] }
  0xa0   :  { %v144_v52 = vpop.f32.mrf.mxu0 }
  0xa1   :  { %v145_v53 = vadd.f32 %v144_v52, %v51_v50  ;;  %v157_v54 = vpop.f32.mrf.mxu1  ;;  %v3453_v50 = vor.u32 %v4220_v41, %v3452_v39  ;;  %v3325_v52 = vor.u32 %v4188_v43, %v3324_v42  ;;  %v4180_v39 = vld [vmem:[%s6555_s5 + $0x24c] sm:$0xf0]  ;;  %v4126_v41 = vld [vmem:[%s6555_s5 + $0xa4] sm:$0xf]  ;;  %v3086_v42 = vld [vmem:[%s6555_s5 + $0xb0] sm:$0xf0] }
  0xa2   :  { %v158_v55 = vadd.f32 %v157_v54, %v52_v51  ;;  %v3436_v51 = vld [vmem:[%s6555_s5 + $0x360] sm:$0xf]  ;;  %v3089_v43 = vor.u32 %v4126_v41, %v3086_v42  ;;  %v3326_v41 = vld [vmem:[%s6555_s5 + $0x290] sm:$0xf0] }
  0xa3   :  { %4362 = vtanh.f32 %v145_v53  ;;  %v4216_v53 = vld [vmem:[%s6555_s5 + $0x36c] sm:$0xf0]  ;;  %v3308_v54 = vld [vmem:[%s6555_s5 + $0x260] sm:$0xf] }
  0xa4   :  { %4364 = vtanh.f32 %v158_v55  ;;  %v4184_v55 = vld [vmem:[%s6555_s5 + $0x26c] sm:$0xf0]  ;;  %v3437_v62 = vor.u32 %v4216_v53, %v3436_v51  ;;  %v3502_v51 = vld [vmem:[%s6555_s5 + $0x3f0] sm:$0xf0] }
  0xa5   :  { %v3309_v63 = vor.u32 %v4184_v55, %v3308_v54  ;;  %v4176_v53 = vld [vmem:[%s6555_s5 + $0x22c] sm:$0xf0]  ;;  %v3505_v54 = vor.u32 %v4230_v49, %v3502_v51  ;;  %v4206_v49 = vld [vmem:[%s6555_s5 + $0x324] sm:$0xf]  ;;  %v5301_v51 = vld [vmem:[%s6556_s4] sm:$0xf] }
  0xa8   :  { %v146_v56 = vpop.f32.mrf.mxu0 }
  0xa9   :  { %v4363_v60 = vpop.eup %4362  ;;  %v159_v61 = vpop.f32.mrf.mxu1  ;;  %v3181_v56 = vor.u32 %v4152_v46, %v3180_v45  ;;  %v4204_v45 = vld [vmem:[%s6555_s5 + $0x30c] sm:$0xf0] }
  0xaa   :  { %v4365_v1 = vpop.eup %4364  ;;  %v163_v2 = vmul.f32 0.25, %v4363_v60  ;;  %v3036_v60 = vld [vmem:[%s6555_s5 + $0x40] sm:$0xf]  ;;  %v4116_v61 = vld [vmem:[%s6555_s5 + $0x4c] sm:$0xf0] }
  0xab   :  { %v164_v5 = vmul.f32 0.25, %v4365_v1  ;;  %v4212_v1 = vld [vmem:[%s6555_s5 + $0x34c] sm:$0xf0]  ;;  %v3037_v4 = vor.u32 %v4116_v61, %v3036_v60  ;;  %v3166_v60 = vld [vmem:[%s6555_s5 + $0x150] sm:$0xf0] }
  0xac   :  { %v4950_v6 = vpack.c.bf16 %v163_v2, %v163_v2  ;;  %v3165_v2 = vor.u32 %v4148_v59, %v3164_v57  ;;  %v3421_v8 = vor.u32 %v4212_v1, %v3420_v0  ;;  %v3070_v57 = vld [vmem:[%s6555_s5 + $0x90] sm:$0xf0]  ;;  %v4146_v59 = vld [vmem:[%s6555_s5 + $0x144] sm:$0xf]  ;;  %v3260_v0 = vld [vmem:[%s6555_s5 + $0x200] sm:$0xf] }
  0xad   :  { %v4958_v11 = vpack.c.bf16 %v164_v5, %v164_v5  ;;  %v4144_v5 = vld [vmem:[%s6555_s5 + $0x12c] sm:$0xf0]  ;;  %v4226_v61 = vld [vmem:[%s6555_s5 + $0x3c4] sm:$0xf] }
  0xae   :  { %569 = vmatmul.bf16.vlgmr.msra.gmra.mxu2 %v4950_v6  ;;  %595 = vmatmul.bf16.vlgmr.msrb.gmra.mxu0 %v4950_v6 }
  0xaf   :  { %582 = vmatmul.bf16.vlgmr.msra.gmra.mxu3 %v4958_v11  ;;  %608 = vmatmul.bf16.vlgmr.msrb.gmra.mxu1 %v4958_v11 }
  0xb0   :  { %1468 = vmatpush.bf16.msra.mxu3 %v3245_v7  ;;  %1455 = vmatpush.bf16.msra.mxu2 %v3117_v10  ;;  %v4112_v7 = vld [vmem:[%s6555_s5 + $0x2c] sm:$0xf0] }
  0xb1   :  { %1494 = vmatpush.bf16.msrb.mxu1 %v3501_v14  ;;  %1481 = vmatpush.bf16.msrb.mxu0 %v3373_v16  ;;  %v4208_v10 = vld [vmem:[%s6555_s5 + $0x32c] sm:$0xf0]  ;;  %v3004_v16 = vld [vmem:[%s6555_s5] sm:$0xf] }
  0xb2   :  { %v3405_v18 = vor.u32 %v4208_v10, %v3404_v9  ;;  %v4142_v10 = vld [vmem:[%s6555_s5 + $0x124] sm:$0xf] }
  0xb4   :  { %1469 = vmatpush.bf16.msra.mxu3 %v3229_v20  ;;  %1456 = vmatpush.bf16.msra.mxu2 %v3101_v23  ;;  %v4134_v20 = vld [vmem:[%s6555_s5 + $0xe4] sm:$0xf]  ;;  %v3005_v23 = vor.u32 %v4108_v17, %v3004_v16  ;;  %v3038_v17 = vld [vmem:[%s6555_s5 + $0x50] sm:$0xf0] }
  0xb5   :  { %1495 = vmatpush.bf16.msrb.mxu1 %v3485_v26  ;;  %1482 = vmatpush.bf16.msrb.mxu0 %v3357_v28  ;;  %v3121_v26 = vor.u32 %v4134_v20, %v3118_v21  ;;  %v4130_v28 = vld [vmem:[%s6555_s5 + $0xc4] sm:$0xf]  ;;  %v3358_v20 = vld [vmem:[%s6555_s5 + $0x2d0] sm:$0xf0] }
  0xb6   :  { %v3105_v31 = vor.u32 %v4130_v28, %v3102_v29  ;;  %v4114_v16 = vld [vmem:[%s6555_s5 + $0x44] sm:$0xf]  ;;  %v3022_v29 = vld [vmem:[%s6555_s5 + $0x30] sm:$0xf0] }
  0xb7   :  { %v3041_v19 = vor.u32 %v4114_v16, %v3038_v17  ;;  %v4110_v28 = vld [vmem:[%s6555_s5 + $0x24] sm:$0xf]  ;;  %v236_v17 = vperm.slane %v5301_v51, 3 }
  0xb8   :  { %1470 = vmatpush.bf16.msra.mxu3 %v3213_v32  ;;  %1457 = vmatpush.bf16.msra.mxu2 %v3085_v35  ;;  %v4158_v32 = vld [vmem:[%s6555_s5 + $0x1a4] sm:$0xf] }
  0xb9   :  { %1496 = vmatpush.bf16.msrb.mxu1 %v3469_v38  ;;  %1483 = vmatpush.bf16.msrb.mxu0 %v3341_v40  ;;  %v3217_v34 = vor.u32 %v4158_v32, %v3214_v33  ;;  %v4154_v35 = vld [vmem:[%s6555_s5 + $0x184] sm:$0xf]  ;;  %v3292_v38 = vld [vmem:[%s6555_s5 + $0x240] sm:$0xf]  ;;  %v3342_v32 = vld [vmem:[%s6555_s5 + $0x2b0] sm:$0xf0] }
  0xba   :  { %v3201_v37 = vor.u32 %v4154_v35, %v3198_v36  ;;  %v3293_v40 = vor.u32 %v4180_v39, %v3292_v38  ;;  %v3438_v35 = vld [vmem:[%s6555_s5 + $0x370] sm:$0xf0]  ;;  %v4186_v39 = vld [vmem:[%s6555_s5 + $0x284] sm:$0xf] }
  0xbb   :  { %v3006_v38 = vld [vmem:[%s6555_s5 + $0x10] sm:$0xf0]  ;;  %v3329_v42 = vor.u32 %v4186_v39, %v3326_v41  ;;  %v4133_v39 = vld [vmem:[%s6555_s5 + $0xd4] sm:$0xf0] }
  0xbc   :  { %1471 = vmatpush.bf16.msra.mxu3 %v3197_v44  ;;  %1458 = vmatpush.bf16.msra.mxu2 %v3069_v47  ;;  %v3388_v44 = vld [vmem:[%s6555_s5 + $0x300] sm:$0xf]  ;;  %v4150_v47 = vld [vmem:[%s6555_s5 + $0x164] sm:$0xf] }
  0xbd   :  { %1497 = vmatpush.bf16.msrb.mxu1 %v3453_v50  ;;  %1484 = vmatpush.bf16.msrb.mxu0 %v3325_v52  ;;  %v3389_v46 = vor.u32 %v4204_v45, %v3388_v44  ;;  %v3185_v50 = vor.u32 %v4150_v47, %v3182_v48  ;;  %v3276_v52 = vld [vmem:[%s6555_s5 + $0x220] sm:$0xf]  ;;  %v3422_v44 = vld [vmem:[%s6555_s5 + $0x350] sm:$0xf0] }
  0xbe   :  { %621 = vmatmul.bf16.vlgmr.msrb.gmra.mxu2 %v4950_v6  ;;  %647 = vmatmul.bf16.vlgmr.msra.gmra.mxu0 %v4950_v6  ;;  %v3020_v6 = vld [vmem:[%s6555_s5 + $0x20] sm:$0xf]  ;;  %v3277_v55 = vor.u32 %v4176_v53, %v3276_v52  ;;  %v3310_v47 = vld [vmem:[%s6555_s5 + $0x270] sm:$0xf0]  ;;  %v4178_v53 = vld [vmem:[%s6555_s5 + $0x244] sm:$0xf] }
  0xbf   :  { %634 = vmatmul.bf16.vlgmr.msrb.gmra.mxu3 %v4958_v11  ;;  %660 = vmatmul.bf16.vlgmr.msra.gmra.mxu1 %v4958_v11  ;;  %v3149_v11 = vor.u32 %v4144_v5, %v3148_v3  ;;  %v3021_v14 = vor.u32 %v4112_v7, %v3020_v6  ;;  %v4118_v3 = vld [vmem:[%s6555_s5 + $0x64] sm:$0xf] }
  0xc0   :  { %1472 = vmatpush.bf16.msra.mxu3 %v3181_v56  ;;  %1459 = vmatpush.bf16.msra.mxu2 %v3053_v58  ;;  %v4122_v56 = vld [vmem:[%s6555_s5 + $0x84] sm:$0xf] }
  0xc1   :  { %1498 = vmatpush.bf16.msrb.mxu1 %v3437_v62  ;;  %1485 = vmatpush.bf16.msrb.mxu0 %v3309_v63  ;;  %v3073_v58 = vor.u32 %v4122_v56, %v3070_v57  ;;  %v3169_v62 = vor.u32 %v4146_v59, %v3166_v60  ;;  %v3486_v63 = vld [vmem:[%s6555_s5 + $0x3d0] sm:$0xf0]  ;;  %v4198_v7 = vld [vmem:[%s6555_s5 + $0x2e4] sm:$0xf]  ;;  %v234_v56 = vperm.slane %v5301_v51, 1 }
  0xc2   :  { %v3489_v1 = vor.u32 %v4226_v61, %v3486_v63  ;;  %v4202_v57 = vld [vmem:[%s6555_s5 + $0x304] sm:$0xf]  ;;  %v3278_v61 = vld [vmem:[%s6555_s5 + $0x230] sm:$0xf0] }
  0xc3   :  { %v4174_v60 = vld [vmem:[%s6555_s5 + $0x224] sm:$0xf] }
  0xc4   :  { %1473 = vmatpush.bf16.msra.mxu3 %v3165_v2  ;;  %1460 = vmatpush.bf16.msra.mxu2 %v3037_v4  ;;  %v4172_v2 = vld [vmem:[%s6555_s5 + $0x20c] sm:$0xf0]  ;;  %v3054_v4 = vld [vmem:[%s6555_s5 + $0x70] sm:$0xf0]  ;;  %v3281_v63 = vor.u32 %v4174_v60, %v3278_v61  ;;  %v3076_v60 = vld [vmem:[%s6555_s5 + $0x88] sm:$0xf] }
  0xc5   :  { %1499 = vmatpush.bf16.msrb.mxu1 %v3421_v8  ;;  %1486 = vmatpush.bf16.msrb.mxu0 %v3293_v40  ;;  %v3261_v5 = vor.u32 %v4172_v2, %v3260_v0  ;;  %v3057_v6 = vor.u32 %v4118_v3, %v3054_v4  ;;  %v3374_v8 = vld [vmem:[%s6555_s5 + $0x2f0] sm:$0xf0]  ;;  %v233_v3 = vperm.slane %v5301_v51, 0  ;;  %v4170_v4 = vld [vmem:[%s6555_s5 + $0x204] sm:$0xf] }
  0xc6   :  { %v3377_v9 = vor.u32 %v4198_v7, %v3374_v8  ;;  %v4125_v61 = vld [vmem:[%s6555_s5 + $0x94] sm:$0xf0] }
  0xc8   :  { %1474 = vmatpush.bf16.msra.mxu3 %v3149_v11  ;;  %1461 = vmatpush.bf16.msra.mxu2 %v3021_v14  ;;  %v3150_v11 = vld [vmem:[%s6555_s5 + $0x130] sm:$0xf0] }
  0xc9   :  { %1500 = vmatpush.bf16.msrb.mxu1 %v3405_v18  ;;  %1487 = vmatpush.bf16.msrb.mxu0 %v3277_v55  ;;  %v3153_v13 = vor.u32 %v4142_v10, %v3150_v11  ;;  %v3470_v14 = vld [vmem:[%s6555_s5 + $0x3b0] sm:$0xf0]  ;;  %v4194_v18 = vld [vmem:[%s6555_s5 + $0x2c4] sm:$0xf] }
  0xca   :  { %v3473_v15 = vor.u32 %v4222_v12, %v3470_v14  ;;  %v3361_v21 = vor.u32 %v4194_v18, %v3358_v20  ;;  %v4169_v14 = vld [vmem:[%s6555_s5 + $0x1f4] sm:$0xf0] }
  0xcc   :  { %1475 = vmatpush.bf16.msra.mxu3 %v3133_v22  ;;  %1462 = vmatpush.bf16.msra.mxu2 %v3005_v23  ;;  %v4138_v22 = vld [vmem:[%s6555_s5 + $0x104] sm:$0xf]  ;;  %v3134_v23 = vld [vmem:[%s6555_s5 + $0x110] sm:$0xf0] }
  0xcd   :  { %1501 = vmatpush.bf16.msrb.mxu1 %v3389_v46  ;;  %1488 = vmatpush.bf16.msrb.mxu0 %v3261_v5  ;;  %v3137_v25 = vor.u32 %v4138_v22, %v3134_v23  ;;  %v4182_v46 = vld [vmem:[%s6555_s5 + $0x264] sm:$0xf]  ;;  %v3262_v5 = vld [vmem:[%s6555_s5 + $0x210] sm:$0xf0]  ;;  %v4165_v22 = vld [vmem:[%s6555_s5 + $0x1d4] sm:$0xf0] }
  0xce   :  { %v3313_v48 = vor.u32 %v4182_v46, %v3310_v47 }
  0xd0   :  { %1520 = vmatpush.bf16.msrb.mxu3 %v3249_v24  ;;  %1507 = vmatpush.bf16.msrb.mxu2 %v3121_v26  ;;  %v4218_v24 = vld [vmem:[%s6555_s5 + $0x384] sm:$0xf]  ;;  %v3454_v26 = vld [vmem:[%s6555_s5 + $0x390] sm:$0xf0] }
  0xd1   :  { %1546 = vmatpush.bf16.msra.mxu1 %v3505_v54  ;;  %1533 = vmatpush.bf16.msra.mxu0 %v3377_v9  ;;  %v3457_v27 = vor.u32 %v4218_v24, %v3454_v26  ;;  %v3294_v54 = vld [vmem:[%s6555_s5 + $0x250] sm:$0xf0]  ;;  %v4137_v26 = vld [vmem:[%s6555_s5 + $0xf4] sm:$0xf0] }
  0xd2   :  { %v3297_v55 = vor.u32 %v4178_v53, %v3294_v54  ;;  %v3188_v53 = vld [vmem:[%s6555_s5 + $0x168] sm:$0xf]  ;;  %v4153_v54 = vld [vmem:[%s6555_s5 + $0x174] sm:$0xf0] }
  0xd4   :  { %1521 = vmatpush.bf16.msrb.mxu3 %v3233_v30  ;;  %1508 = vmatpush.bf16.msrb.mxu2 %v3105_v31  ;;  %v4190_v30 = vld [vmem:[%s6555_s5 + $0x2a4] sm:$0xf]  ;;  %v3025_v31 = vor.u32 %v4110_v28, %v3022_v29 }
  0xd5   :  { %1547 = vmatpush.bf16.msra.mxu1 %v3489_v1  ;;  %1534 = vmatpush.bf16.msra.mxu0 %v3361_v21  ;;  %v3345_v33 = vor.u32 %v4190_v30, %v3342_v32  ;;  %v3236_v21 = vld [vmem:[%s6555_s5 + $0x1c8] sm:$0xf] }
  0xd6   :  { %v3237_v30 = vor.u32 %v4165_v22, %v3236_v21  ;;  %v3220_v32 = vld [vmem:[%s6555_s5 + $0x1a8] sm:$0xf] }
  0xd8   :  { %1522 = vmatpush.bf16.msrb.mxu3 %v3217_v34  ;;  %1509 = vmatpush.bf16.msrb.mxu2 %v3089_v43  ;;  %v4214_v34 = vld [vmem:[%s6555_s5 + $0x364] sm:$0xf] }
  0xd9   :  { %1548 = vmatpush.bf16.msra.mxu1 %v3473_v15  ;;  %v3441_v36 = vor.u32 %v4214_v34, %v3438_v35  ;;  %1535 = vmatpush.bf16.msra.mxu0 %v3345_v33  ;;  %v4210_v43 = vld [vmem:[%s6555_s5 + $0x344] sm:$0xf]  ;;  %v4161_v33 = vld [vmem:[%s6555_s5 + $0x1b4] sm:$0xf0]  ;;  %v235_v35 = vperm.slane %v5301_v51, 2 }
  0xda   :  { %v3425_v45 = vor.u32 %v4210_v43, %v3422_v44  ;;  %v4157_v43 = vld [vmem:[%s6555_s5 + $0x194] sm:$0xf0] }
  0xdc   :  { %1523 = vmatpush.bf16.msrb.mxu3 %v3201_v37  ;;  %1510 = vmatpush.bf16.msrb.mxu2 %v3073_v58  ;;  %v4106_v37 = vld [vmem:[%s6555_s5 + $0x4] sm:$0xf]  ;;  %v3390_v58 = vld [vmem:[%s6555_s5 + $0x310] sm:$0xf0] }
  0xdd   :  { %1549 = vmatpush.bf16.msra.mxu1 %v3457_v27  ;;  %v3009_v40 = vor.u32 %v4106_v37, %v3006_v38  ;;  %1536 = vmatpush.bf16.msra.mxu0 %v3329_v42  ;;  %v3393_v59 = vor.u32 %v4202_v57, %v3390_v58  ;;  %v3108_v38 = vld [vmem:[%s6555_s5 + $0xc8] sm:$0xf] }
  0xde   :  { %v3204_v42 = vld [vmem:[%s6555_s5 + $0x188] sm:$0xf]  ;;  %v3109_v46 = vor.u32 %v4133_v39, %v3108_v38  ;;  %v3254_v38 = vld [vmem:[%s6555_s5 + $0x1f8] sm:$0xf0] }
  0xdf   :  { %v3028_v39 = vld [vmem:[%s6555_s5 + $0x28] sm:$0xf] }
  0xe0   :  { %1524 = vmatpush.bf16.msrb.mxu3 %v3185_v50  ;;  %1511 = vmatpush.bf16.msrb.mxu2 %v3057_v6  ;;  %v3406_v50 = vld [vmem:[%s6555_s5 + $0x330] sm:$0xf0]  ;;  %v3265_v6 = vor.u32 %v4170_v4, %v3262_v5  ;;  %v3492_v4 = vld [vmem:[%s6555_s5 + $0x3c8] sm:$0xf]  ;;  %v4229_v5 = vld [vmem:[%s6555_s5 + $0x3d4] sm:$0xf0] }
  0xe1   :  { %1550 = vmatpush.bf16.msra.mxu1 %v3441_v36  ;;  %v3409_v52 = vor.u32 %v4206_v49, %v3406_v50  ;;  %1537 = vmatpush.bf16.msra.mxu0 %v3313_v48  ;;  %v3092_v48 = vld [vmem:[%s6555_s5 + $0xa8] sm:$0xf]  ;;  %v4129_v49 = vld [vmem:[%s6555_s5 + $0xb4] sm:$0xf0] }
  0xe2   :  { %v3093_v58 = vor.u32 %v4129_v49, %v3092_v48 }
  0xe4   :  { %1525 = vmatpush.bf16.msrb.mxu3 %v3169_v62  ;;  %1512 = vmatpush.bf16.msrb.mxu2 %v3041_v19 }
  0xe5   :  { %1551 = vmatpush.bf16.msra.mxu1 %v3425_v45  ;;  %1538 = vmatpush.bf16.msra.mxu0 %v3297_v55  ;;  %v3508_v55 = vld [vmem:[%s6555_s5 + $0x3e8] sm:$0xf] }
  0xe8   :  { %1526 = vmatpush.bf16.msrb.mxu3 %v3153_v13  ;;  %1513 = vmatpush.bf16.msrb.mxu2 %v3025_v31  ;;  %v3252_v13 = vld [vmem:[%s6555_s5 + $0x1e8] sm:$0xf] }
  0xe9   :  { %1552 = vmatpush.bf16.msra.mxu1 %v3409_v52  ;;  %1539 = vmatpush.bf16.msra.mxu0 %v3281_v63  ;;  %v3253_v18 = vor.u32 %v4169_v14, %v3252_v13  ;;  %v3205_v52 = vor.u32 %v4157_v43, %v3204_v42  ;;  %v3493_v14 = vor.u32 %v4229_v5, %v3492_v4  ;;  %v4193_v42 = vld [vmem:[%s6555_s5 + $0x2b4] sm:$0xf0]  ;;  %v3316_v4 = vld [vmem:[%s6555_s5 + $0x268] sm:$0xf] }
  0xea   :  { %v4185_v5 = vld [vmem:[%s6555_s5 + $0x274] sm:$0xf0] }
  0xec   :  { %1527 = vmatpush.bf16.msrb.mxu3 %v3137_v25  ;;  %1514 = vmatpush.bf16.msrb.mxu2 %v3009_v40  ;;  %v3124_v25 = vld [vmem:[%s6555_s5 + $0xe8] sm:$0xf]  ;;  %v3221_v40 = vor.u32 %v4161_v33, %v3220_v32  ;;  %v4221_v33 = vld [vmem:[%s6555_s5 + $0x394] sm:$0xf0] }
  0xed   :  { %1553 = vmatpush.bf16.msra.mxu1 %v3393_v59  ;;  %1540 = vmatpush.bf16.msra.mxu0 %v3265_v6  ;;  %v3125_v36 = vor.u32 %v4137_v26, %v3124_v25  ;;  %v4117_v25 = vld [vmem:[%s6555_s5 + $0x54] sm:$0xf0]  ;;  %v3364_v26 = vld [vmem:[%s6555_s5 + $0x2c8] sm:$0xf] }
  0xee   :  { %v3460_v32 = vld [vmem:[%s6555_s5 + $0x388] sm:$0xf] }
 0x12b   :  { %v596_v62 = vpop.f32.mrf.mxu0 }
 0x12c   :  { %v597_v0 = vadd.f32 %v596_v62, %v234_v56  ;;  %v609_v1 = vpop.f32.mrf.mxu1  ;;  %v4233_v56 = vld [vmem:[%s6555_s5 + $0x3f4] sm:$0xf0]  ;;  %v3189_v62 = vor.u32 %v4153_v54, %v3188_v53  ;;  %v3332_v54 = vld [vmem:[%s6555_s5 + $0x288] sm:$0xf] }
 0x12d   :  { %v3509_v63 = vor.u32 %v4233_v56, %v3508_v55  ;;  %v4109_v53 = vld [vmem:[%s6555_s5 + $0x14] sm:$0xf0] }
 0x12e   :  { %v610_v2 = vadd.f32 %v609_v1, %v597_v0  ;;  %v3172_v0 = vld [vmem:[%s6555_s5 + $0x148] sm:$0xf]  ;;  %v4189_v55 = vld [vmem:[%s6555_s5 + $0x294] sm:$0xf0] }
 0x130   :  { %4366 = vtanh.f32 %v610_v2 }
 0x131   :  { %v570_v7 = vpop.f32.mrf.mxu2 }
 0x132   :  { %v571_v8 = vadd.f32 %v570_v7, %v233_v3  ;;  %v583_v9 = vpop.f32.mrf.mxu3  ;;  %v4149_v3 = vld [vmem:[%s6555_s5 + $0x154] sm:$0xf0]  ;;  %v3077_v7 = vor.u32 %v4125_v61, %v3076_v60  ;;  %v3428_v60 = vld [vmem:[%s6555_s5 + $0x348] sm:$0xf] }
 0x133   :  { %v598_v10 = vpop.f32.mrf.mxu0  ;;  %v3173_v13 = vor.u32 %v4149_v3, %v3172_v0  ;;  %v4213_v61 = vld [vmem:[%s6555_s5 + $0x354] sm:$0xf0]  ;;  %v4159_v0 = vld [vmem:[%s6555_s5 + $0x1ac] sm:$0xf] }
 0x134   :  { %v584_v11 = vadd.f32 %v583_v9, %v571_v8  ;;  %v611_v12 = vpop.f32.mrf.mxu1  ;;  %v3060_v8 = vld [vmem:[%s6555_s5 + $0x68] sm:$0xf]  ;;  %v4121_v9 = vld [vmem:[%s6555_s5 + $0x74] sm:$0xf0] }
 0x135   :  { %v3380_v10 = vld [vmem:[%s6555_s5 + $0x2e8] sm:$0xf]  ;;  %v3061_v21 = vor.u32 %v4121_v9, %v3060_v8  ;;  %v3110_v8 = vld [vmem:[%s6555_s5 + $0xd8] sm:$0xf0] }
 0x136   :  { %v4367_v15 = vpop.eup %4366  ;;  %4368 = vtanh.f32 %v584_v11  ;;  %v4201_v11 = vld [vmem:[%s6555_s5 + $0x2f4] sm:$0xf0] }
 0x137   :  { %v670_v16 = vmul.f32 0.25, %v4367_v15  ;;  %v3156_v15 = vld [vmem:[%s6555_s5 + $0x128] sm:$0xf]  ;;  %v3381_v22 = vor.u32 %v4201_v11, %v3380_v10  ;;  %v4209_v11 = vld [vmem:[%s6555_s5 + $0x334] sm:$0xf0] }
 0x138   :  { %v3412_v10 = vld [vmem:[%s6555_s5 + $0x328] sm:$0xf] }
 0x139   :  { %v5336_v19 = vpack.c.bf16 %v670_v16, %v670_v16  ;;  %v572_v20 = vpop.f32.mrf.mxu2  ;;  %v4145_v16 = vld [vmem:[%s6555_s5 + $0x134] sm:$0xf0] }
 0x13a   :  { %v585_v23 = vpop.f32.mrf.mxu3  ;;  %v4225_v20 = vld [vmem:[%s6555_s5 + $0x3b4] sm:$0xf0] }
 0x13b   :  { %v648_v24 = vpop.f32.mrf.mxu0  ;;  %1476 = vmatmul.bf16.vlgmr.msra.gmra.mxu3 %v5336_v19  ;;  %v3044_v23 = vld [vmem:[%s6555_s5 + $0x48] sm:$0xf] }
 0x13c   :  { %v4369_v27 = vpop.eup %4368  ;;  %v649_v28 = vadd.f32 %v648_v24, %v236_v17  ;;  %v661_v29 = vpop.f32.mrf.mxu1  ;;  %1572 = vmatpush.bf16.msra.mxu3 %v3253_v18  ;;  %v3476_v18 = vld [vmem:[%s6555_s5 + $0x3a8] sm:$0xf] }
 0x13d   :  { %v669_v31 = vmul.f32 0.25, %v4369_v27  ;;  %v4197_v27 = vld [vmem:[%s6555_s5 + $0x2d4] sm:$0xf0] }
 0x13e   :  { %v662_v34 = vadd.f32 %v661_v29, %v649_v28  ;;  %v3157_v28 = vor.u32 %v4145_v16, %v3156_v15  ;;  %v3477_v29 = vor.u32 %v4225_v20, %v3476_v18  ;;  %v3300_v16 = vld [vmem:[%s6555_s5 + $0x248] sm:$0xf]  ;;  %v3413_v18 = vor.u32 %v4209_v11, %v3412_v10  ;;  %v4127_v20 = vld [vmem:[%s6555_s5 + $0xac] sm:$0xf]  ;;  %v3030_v11 = vld [vmem:[%s6555_s5 + $0x38] sm:$0xf0] }
 0x13f   :  { %v5358_v37 = vpack.c.bf16 %v669_v31, %v669_v31  ;;  %v4141_v31 = vld [vmem:[%s6555_s5 + $0x114] sm:$0xf0]  ;;  %v4111_v10 = vld [vmem:[%s6555_s5 + $0x2c] sm:$0xf] }
 0x140   :  { %4370 = vtanh.f32 %v662_v34  ;;  %1573 = vmatpush.bf16.msra.mxu3 %v3237_v30  ;;  %v3140_v30 = vld [vmem:[%s6555_s5 + $0x108] sm:$0xf]  ;;  %v3045_v34 = vor.u32 %v4117_v25, %v3044_v23  ;;  %v4205_v25 = vld [vmem:[%s6555_s5 + $0x314] sm:$0xf0] }
 0x141   :  { %v622_v41 = vpop.f32.mrf.mxu2  ;;  %1463 = vmatmul.bf16.vlgmr.msra.gmra.mxu2 %v5358_v37  ;;  %v3141_v43 = vor.u32 %v4141_v31, %v3140_v30  ;;  %v3396_v23 = vld [vmem:[%s6555_s5 + $0x308] sm:$0xf]  ;;  %v3510_v30 = vld [vmem:[%s6555_s5 + $0x3f8] sm:$0xf0] }
 0x142   :  { %v623_v44 = vadd.f32 %v622_v41, %v235_v35  ;;  %v635_v45 = vpop.f32.mrf.mxu3  ;;  %1559 = vmatpush.bf16.msra.mxu2 %v3125_v36  ;;  %v3365_v35 = vor.u32 %v4197_v27, %v3364_v26  ;;  %v4167_v36 = vld [vmem:[%s6555_s5 + $0x1ec] sm:$0xf]  ;;  %v3348_v41 = vld [vmem:[%s6555_s5 + $0x2a8] sm:$0xf] }
 0x143   :  { %v650_v47 = vpop.f32.mrf.mxu0  ;;  %v3349_v49 = vor.u32 %v4193_v42, %v3348_v41  ;;  %v4151_v26 = vld [vmem:[%s6555_s5 + $0x16c] sm:$0xf]  ;;  %v3174_v42 = vld [vmem:[%s6555_s5 + $0x158] sm:$0xf0] }
 0x144   :  { %v636_v50 = vadd.f32 %v635_v45, %v623_v44  ;;  %v663_v51 = vpop.f32.mrf.mxu1  ;;  %1574 = vmatpush.bf16.msra.mxu3 %v3221_v40  ;;  %v4113_v40 = vld [vmem:[%s6555_s5 + $0x34] sm:$0xf0]  ;;  %v3461_v44 = vor.u32 %v4221_v33, %v3460_v32  ;;  %v3257_v45 = vor.u32 %v4167_v36, %v3254_v38  ;;  %v3284_v32 = vld [vmem:[%s6555_s5 + $0x228] sm:$0xf]  ;;  %v3078_v36 = vld [vmem:[%s6555_s5 + $0x98] sm:$0xf0] }
 0x145   :  { %v4217_v47 = vld [vmem:[%s6555_s5 + $0x374] sm:$0xf0]  ;;  %v3029_v48 = vor.u32 %v4113_v40, %v3028_v39  ;;  %v3238_v51 = vld [vmem:[%s6555_s5 + $0x1d8] sm:$0xf0]  ;;  %v4147_v40 = vld [vmem:[%s6555_s5 + $0x14c] sm:$0xf] }
 0x146   :  { %v4371_v57 = vpop.eup %4370  ;;  %4372 = vtanh.f32 %v636_v50  ;;  %1560 = vmatpush.bf16.msra.mxu2 %v3109_v46  ;;  %v3444_v46 = vld [vmem:[%s6555_s5 + $0x368] sm:$0xf]  ;;  %v4163_v50 = vld [vmem:[%s6555_s5 + $0x1cc] sm:$0xf]  ;;  %v4177_v33 = vld [vmem:[%s6555_s5 + $0x234] sm:$0xf0] }
 0x147   :  { %v672_v59 = vmul.f32 0.25, %v4371_v57  ;;  %v3445_v56 = vor.u32 %v4217_v47, %v3444_v46  ;;  %v4135_v57 = vld [vmem:[%s6555_s5 + $0xec] sm:$0xf]  ;;  %v3285_v41 = vor.u32 %v4177_v33, %v3284_v32  ;;  %v3268_v46 = vld [vmem:[%s6555_s5 + $0x208] sm:$0xf] }
 0x148   :  { %1575 = vmatpush.bf16.msra.mxu3 %v3205_v52  ;;  %v3012_v52 = vld [vmem:[%s6555_s5 + $0x8] sm:$0xf]  ;;  %v4173_v47 = vld [vmem:[%s6555_s5 + $0x214] sm:$0xf0]  ;;  %v3628_v32 = vld [vmem:[%s6557_s7 + $0xe0] sm:$0xf] }
 0x149   :  { %v5400_v1 = vpack.c.bf16 %v672_v59, %v672_v59  ;;  %v624_v2 = vpop.f32.mrf.mxu2  ;;  %v3241_v59 = vor.u32 %v4163_v50, %v3238_v51  ;;  %v4199_v50 = vld [vmem:[%s6555_s5 + $0x2ec] sm:$0xf]  ;;  %v3382_v51 = vld [vmem:[%s6555_s5 + $0x2f8] sm:$0xf0]  ;;  %v4264_v33 = vld [vmem:[%s6557_s7 + $0xec] sm:$0xf0] }
 0x14a   :  { %v637_v6 = vpop.f32.mrf.mxu3  ;;  %1561 = vmatpush.bf16.msra.mxu2 %v3093_v58  ;;  %v3126_v58 = vld [vmem:[%s6555_s5 + $0xf8] sm:$0xf0] }
 0x14b   :  { %1502 = vmatmul.bf16.vlgmr.msrb.gmra.mxu1 %v5400_v1  ;;  %1528 = vmatmul.bf16.vlgmr.msrb.gmra.mxu3 %v5336_v19  ;;  %v3222_v2 = vld [vmem:[%s6555_s5 + $0x1b8] sm:$0xf0]  ;;  %v3129_v3 = vor.u32 %v4135_v57, %v3126_v58  ;;  %v3429_v6 = vor.u32 %v4213_v61, %v3428_v60  ;;  %v4223_v57 = vld [vmem:[%s6555_s5 + $0x3ac] sm:$0xf]  ;;  %v3385_v60 = vor.u32 %v4199_v50, %v3382_v51 }
 0x14c   :  { %v4373_v12 = vpop.eup %4372  ;;  %1576 = vmatpush.bf16.msra.mxu3 %v3189_v62  ;;  %1598 = vmatpush.bf16.msrb.mxu1 %v3509_v63  ;;  %v3013_v62 = vor.u32 %v4109_v53, %v3012_v52  ;;  %v3333_v63 = vor.u32 %v4189_v55, %v3332_v54  ;;  %v3225_v9 = vor.u32 %v4159_v0, %v3222_v2  ;;  %v4143_v54 = vld [vmem:[%s6555_s5 + $0x12c] sm:$0xf]  ;;  %v3478_v58 = vld [vmem:[%s6555_s5 + $0x3b8] sm:$0xf0] }
 0x14d   :  { %v671_v17 = vmul.f32 0.25, %v4373_v12  ;;  %v3317_v12 = vor.u32 %v4185_v5, %v3316_v4  ;;  %v3177_v52 = vor.u32 %v4147_v40, %v3174_v42  ;;  %v3269_v55 = vor.u32 %v4173_v47, %v3268_v46  ;;  %v4115_v61 = vld [vmem:[%s6555_s5 + $0x4c] sm:$0xf]  ;;  %v3366_v0 = vld [vmem:[%s6555_s5 + $0x2d8] sm:$0xf0] }
 0x14e   :  { %1562 = vmatpush.bf16.msra.mxu2 %v3077_v7  ;;  %v4131_v7 = vld [vmem:[%s6555_s5 + $0xcc] sm:$0xf]  ;;  %v3142_v5 = vld [vmem:[%s6555_s5 + $0x118] sm:$0xf0]  ;;  %v3724_v40 = vld [vmem:[%s6557_s7 + $0x1a0] sm:$0xf] }
 0x14f   :  { %v5440_v24 = vpack.c.bf16 %v671_v17, %v671_v17  ;;  %v3113_v15 = vor.u32 %v4131_v7, %v3110_v8  ;;  %v4181_v17 = vld [vmem:[%s6555_s5 + $0x254] sm:$0xf0]  ;;  %v4139_v4 = vld [vmem:[%s6555_s5 + $0x10c] sm:$0xf]  ;;  %v3462_v7 = vld [vmem:[%s6555_s5 + $0x398] sm:$0xf0] }
 0x150   :  { %1577 = vmatpush.bf16.msra.mxu3 %v3173_v13  ;;  %1599 = vmatpush.bf16.msrb.mxu1 %v3493_v14  ;;  %v4155_v13 = vld [vmem:[%s6555_s5 + $0x18c] sm:$0xf]  ;;  %v3206_v14 = vld [vmem:[%s6555_s5 + $0x198] sm:$0xf0]  ;;  %v3301_v27 = vor.u32 %v4181_v17, %v3300_v16  ;;  %v3756_v16 = vld [vmem:[%s6557_s7 + $0x1e0] sm:$0xf] }
 0x151   :  { %1489 = vmatmul.bf16.vlgmr.msrb.gmra.mxu0 %v5440_v24  ;;  %1515 = vmatmul.bf16.vlgmr.msrb.gmra.mxu2 %v5358_v37  ;;  %v4296_v17 = vld [vmem:[%s6557_s7 + $0x1ec] sm:$0xf0]  ;;  %v4183_v42 = vld [vmem:[%s6555_s5 + $0x26c] sm:$0xf]  ;;  %v3612_v46 = vld [vmem:[%s6557_s7 + $0xc0] sm:$0xf] }
 0x152   :  { %1563 = vmatpush.bf16.msra.mxu2 %v3061_v21  ;;  %1585 = vmatpush.bf16.msrb.mxu0 %v3381_v22  ;;  %v3094_v21 = vld [vmem:[%s6555_s5 + $0xb8] sm:$0xf0]  ;;  %v3209_v22 = vor.u32 %v4155_v13, %v3206_v14  ;;  %v3145_v14 = vor.u32 %v4139_v4, %v3142_v5  ;;  %v4260_v47 = vld [vmem:[%s6557_s7 + $0xcc] sm:$0xf0]  ;;  %v4179_v51 = vld [vmem:[%s6555_s5 + $0x24c] sm:$0xf] }
 0x153   :  { %v3097_v31 = vor.u32 %v4127_v20, %v3094_v21  ;;  %v3350_v13 = vld [vmem:[%s6555_s5 + $0x2b8] sm:$0xf0]  ;;  %v3757_v21 = vor.u32 %v4296_v17, %v3756_v16  ;;  %v4236_v16 = vld [vmem:[%s6557_s7 + $0xc] sm:$0xf0]  ;;  %v3708_v17 = vld [vmem:[%s6557_s7 + $0x180] sm:$0xf] }
 0x154   :  { %1578 = vmatpush.bf16.msra.mxu3 %v3157_v28  ;;  %1600 = vmatpush.bf16.msrb.mxu1 %v3477_v29  ;;  %v3190_v28 = vld [vmem:[%s6555_s5 + $0x178] sm:$0xf0]  ;;  %v4231_v29 = vld [vmem:[%s6555_s5 + $0x3ec] sm:$0xf] }
 0x155   :  { %v3193_v38 = vor.u32 %v4151_v26, %v3190_v28  ;;  %v3513_v39 = vor.u32 %v4231_v29, %v3510_v30  ;;  %v3446_v20 = vld [vmem:[%s6555_s5 + $0x378] sm:$0xf0]  ;;  %v3740_v26 = vld [vmem:[%s6557_s7 + $0x1c0] sm:$0xf]  ;;  %v4187_v29 = vld [vmem:[%s6555_s5 + $0x28c] sm:$0xf] }
 0x156   :  { %1564 = vmatpush.bf16.msra.mxu2 %v3045_v34  ;;  %1586 = vmatpush.bf16.msrb.mxu0 %v3365_v35  ;;  %v3397_v34 = vor.u32 %v4205_v25, %v3396_v23  ;;  %v4123_v35 = vld [vmem:[%s6555_s5 + $0x8c] sm:$0xf]  ;;  %v3014_v28 = vld [vmem:[%s6555_s5 + $0x18] sm:$0xf0] }
 0x157   :  { %v4107_v25 = vld [vmem:[%s6555_s5 + $0xc] sm:$0xf]  ;;  %v3334_v30 = vld [vmem:[%s6555_s5 + $0x298] sm:$0xf0] }
 0x158   :  { %1579 = vmatpush.bf16.msra.mxu3 %v3141_v43  ;;  %1601 = vmatpush.bf16.msrb.mxu1 %v3461_v44  ;;  %v4227_v43 = vld [vmem:[%s6555_s5 + $0x3cc] sm:$0xf]  ;;  %v3494_v44 = vld [vmem:[%s6555_s5 + $0x3d8] sm:$0xf0] }
 0x159   :  { %v3497_v53 = vor.u32 %v4227_v43, %v3494_v44  ;;  %v3318_v43 = vld [vmem:[%s6555_s5 + $0x278] sm:$0xf0]  ;;  %v3629_v44 = vor.u32 %v4264_v33, %v3628_v32 }
 0x15a   :  { %1565 = vmatpush.bf16.msra.mxu2 %v3029_v48  ;;  %1587 = vmatpush.bf16.msrb.mxu0 %v3349_v49  ;;  %v4119_v48 = vld [vmem:[%s6555_s5 + $0x6c] sm:$0xf]  ;;  %v3062_v49 = vld [vmem:[%s6555_s5 + $0x78] sm:$0xf0]  ;;  %v3321_v50 = vor.u32 %v4183_v42, %v3318_v43 }
 0x15b   :  { %1554 = vmatmul.bf16.vlgmr.msra.gmra.mxu1 %v5400_v1  ;;  %1580 = vmatmul.bf16.vlgmr.msra.gmra.mxu3 %v5336_v19  ;;  %v3270_v4 = vld [vmem:[%s6555_s5 + $0x218] sm:$0xf0] }
 0x15c   :  { %1624 = vmatpush.bf16.msrb.mxu3 %v3257_v45  ;;  %1602 = vmatpush.bf16.msrb.mxu1 %v3445_v56  ;;  %v3081_v45 = vor.u32 %v4123_v35, %v3078_v36  ;;  %v3158_v56 = vld [vmem:[%s6555_s5 + $0x138] sm:$0xf0] }
 0x15d   :  { %v3161_v2 = vor.u32 %v4143_v54, %v3158_v56  ;;  %v3430_v35 = vld [vmem:[%s6555_s5 + $0x358] sm:$0xf0]  ;;  %v4256_v56 = vld [vmem:[%s6557_s7 + $0xac] sm:$0xf0] }
 0x15e   :  { %1566 = vmatpush.bf16.msra.mxu2 %v3013_v62  ;;  %1588 = vmatpush.bf16.msrb.mxu0 %v3333_v63  ;;  %v3046_v62 = vld [vmem:[%s6555_s5 + $0x58] sm:$0xf0]  ;;  %v4195_v63 = vld [vmem:[%s6555_s5 + $0x2cc] sm:$0xf] }
 0x15f   :  { %v3049_v8 = vor.u32 %v4115_v61, %v3046_v62  ;;  %v3286_v61 = vld [vmem:[%s6555_s5 + $0x238] sm:$0xf0] }
 0x160   :  { %1625 = vmatpush.bf16.msrb.mxu3 %v3241_v59  ;;  %1603 = vmatpush.bf16.msrb.mxu1 %v3429_v6  ;;  %v3065_v59 = vor.u32 %v4119_v48, %v3062_v49  ;;  %v4219_v6 = vld [vmem:[%s6555_s5 + $0x38c] sm:$0xf]  ;;  %v3414_v48 = vld [vmem:[%s6555_s5 + $0x338] sm:$0xf0] }
 0x161   :  { %1541 = vmatmul.bf16.vlgmr.msra.gmra.mxu0 %v5440_v24  ;;  %1567 = vmatmul.bf16.vlgmr.msra.gmra.mxu2 %v5358_v37 }
 0x162   :  { %1611 = vmatpush.bf16.msrb.mxu2 %v3129_v3  ;;  %1589 = vmatpush.bf16.msrb.mxu0 %v3317_v12  ;;  %v3481_v3 = vor.u32 %v4223_v57, %v3478_v58  ;;  %v4191_v12 = vld [vmem:[%s6555_s5 + $0x2ac] sm:$0xf]  ;;  %v3398_v58 = vld [vmem:[%s6555_s5 + $0x318] sm:$0xf0] }
 0x163   :  { %v3353_v23 = vor.u32 %v4191_v12, %v3350_v13  ;;  %v4203_v57 = vld [vmem:[%s6555_s5 + $0x30c] sm:$0xf]  ;;  %v3532_v13 = vld [vmem:[%s6557_s7 + $0x20] sm:$0xf] }
 0x164   :  { %1626 = vmatpush.bf16.msrb.mxu3 %v3225_v9  ;;  %1604 = vmatpush.bf16.msrb.mxu1 %v3413_v18  ;;  %v3369_v9 = vor.u32 %v4195_v63, %v3366_v0  ;;  %v4215_v18 = vld [vmem:[%s6555_s5 + $0x36c] sm:$0xf]  ;;  %v3401_v62 = vor.u32 %v4203_v57, %v3398_v58  ;;  %v3580_v63 = vld [vmem:[%s6557_s7 + $0x80] sm:$0xf]  ;;  %v4252_v0 = vld [vmem:[%s6557_s7 + $0x8c] sm:$0xf0] }
 0x165   :  { %v3581_v5 = vor.u32 %v4252_v0, %v3580_v63  ;;  %v4246_v57 = vld [vmem:[%s6557_s7 + $0x64] sm:$0xf]  ;;  %v3566_v58 = vld [vmem:[%s6557_s7 + $0x70] sm:$0xf0]  ;;  %v3820_v63 = vld [vmem:[%s6557_s7 + $0x260] sm:$0xf] }
 0x166   :  { %1612 = vmatpush.bf16.msrb.mxu2 %v3113_v15  ;;  %1590 = vmatpush.bf16.msrb.mxu0 %v3301_v27  ;;  %v3465_v15 = vor.u32 %v4219_v6, %v3462_v7  ;;  %v4292_v27 = vld [vmem:[%s6557_s7 + $0x1cc] sm:$0xf0]  ;;  %v3564_v6 = vld [vmem:[%s6557_s7 + $0x60] sm:$0xf] }
 0x167   :  { %v3741_v36 = vor.u32 %v4292_v27, %v3740_v26  ;;  %v4248_v7 = vld [vmem:[%s6557_s7 + $0x6c] sm:$0xf0]  ;;  %v3884_v27 = vld [vmem:[%s6557_s7 + $0x2e0] sm:$0xf] }
 0x168   :  { %1627 = vmatpush.bf16.msrb.mxu3 %v3209_v22  ;;  %1605 = vmatpush.bf16.msrb.mxu1 %v3397_v34  ;;  %v3033_v22 = vor.u32 %v4111_v10, %v3030_v11  ;;  %v4211_v34 = vld [vmem:[%s6555_s5 + $0x34c] sm:$0xf]  ;;  %v3548_v10 = vld [vmem:[%s6557_s7 + $0x40] sm:$0xf]  ;;  %v4244_v11 = vld [vmem:[%s6557_s7 + $0x4c] sm:$0xf0] }
 0x169   :  { %v3549_v12 = vor.u32 %v4244_v11, %v3548_v10  ;;  %v4280_v26 = vld [vmem:[%s6557_s7 + $0x16c] sm:$0xf0] }
 0x16a   :  { %1613 = vmatpush.bf16.msrb.mxu2 %v3097_v31  ;;  %1591 = vmatpush.bf16.msrb.mxu0 %v3285_v41  ;;  %v3449_v31 = vor.u32 %v4215_v18, %v3446_v20  ;;  %v4288_v41 = vld [vmem:[%s6557_s7 + $0x1ac] sm:$0xf0]  ;;  %v4262_v20 = vld [vmem:[%s6557_s7 + $0xe4] sm:$0xf] }
 0x16b   :  { %1606 = vmatmul.bf16.vlgmr.msrb.gmra.mxu1 %v5400_v1  ;;  %v3725_v49 = vor.u32 %v4288_v41, %v3724_v40  ;;  %v4254_v40 = vld [vmem:[%s6557_s7 + $0xa4] sm:$0xf]  ;;  %v3598_v41 = vld [vmem:[%s6557_s7 + $0xb0] sm:$0xf0]  ;;  %v4312_v0 = vld [vmem:[%s6557_s7 + $0x26c] sm:$0xf0] }
 0x16c   :  { %1628 = vmatpush.bf16.msrb.mxu3 %v3193_v38  ;;  %1650 = vmatpush.bf16.msra.mxu1 %v3513_v39  ;;  %v3017_v38 = vor.u32 %v4107_v25, %v3014_v28  ;;  %v3337_v39 = vor.u32 %v4187_v29, %v3334_v30  ;;  %v3692_v25 = vld [vmem:[%s6557_s7 + $0x160] sm:$0xf]  ;;  %v4328_v29 = vld [vmem:[%s6557_s7 + $0x2ec] sm:$0xf0]  ;;  %v4258_v30 = vld [vmem:[%s6557_s7 + $0xc4] sm:$0xf]  ;;  %v3601_v43 = vor.u32 %v4254_v40, %v3598_v41 }
 0x16d   :  { %v3693_v28 = vor.u32 %v4280_v26, %v3692_v25  ;;  %v3885_v32 = vor.u32 %v4328_v29, %v3884_v27  ;;  %v4308_v10 = vld [vmem:[%s6557_s7 + $0x24c] sm:$0xf0]  ;;  %v3710_v25 = vld [vmem:[%s6557_s7 + $0x190] sm:$0xf0]  ;;  %v5976_v41 = vld [vmem:[%s6558_s6] sm:$0xf] }
 0x16e   :  { %1614 = vmatpush.bf16.msrb.mxu2 %v3081_v45  ;;  %1592 = vmatpush.bf16.msrb.mxu0 %v3269_v55  ;;  %v3433_v45 = vor.u32 %v4211_v34, %v3430_v35  ;;  %v3596_v55 = vld [vmem:[%s6557_s7 + $0xa0] sm:$0xf]  ;;  %v4276_v35 = vld [vmem:[%s6557_s7 + $0x14c] sm:$0xf0] }
 0x16f   :  { %v3676_v34 = vld [vmem:[%s6557_s7 + $0x140] sm:$0xf]  ;;  %v4300_v29 = vld [vmem:[%s6557_s7 + $0x20c] sm:$0xf0] }
 0x170   :  { %1629 = vmatpush.bf16.msrb.mxu3 %v3177_v52  ;;  %1651 = vmatpush.bf16.msra.mxu1 %v3497_v53  ;;  %v3302_v52 = vld [vmem:[%s6555_s5 + $0x258] sm:$0xf0]  ;;  %v3613_v53 = vor.u32 %v4260_v47, %v3612_v46  ;;  %v3852_v46 = vld [vmem:[%s6557_s7 + $0x2a0] sm:$0xf] }
 0x171   :  { %1593 = vmatmul.bf16.vlgmr.msrb.gmra.mxu0 %v5440_v24 }
 0x172   :  { %1615 = vmatpush.bf16.msrb.mxu2 %v3065_v59  ;;  %1637 = vmatpush.bf16.msra.mxu0 %v3385_v60  ;;  %v3305_v59 = vor.u32 %v4179_v51, %v3302_v52  ;;  %v4175_v60 = vld [vmem:[%s6555_s5 + $0x22c] sm:$0xf]  ;;  %v3644_v52 = vld [vmem:[%s6557_s7 + $0x100] sm:$0xf] }
 0x174   :  { %1630 = vmatpush.bf16.msrb.mxu3 %v3161_v2  ;;  %1652 = vmatpush.bf16.msra.mxu1 %v3481_v3  ;;  %v3289_v2 = vor.u32 %v4175_v60, %v3286_v61  ;;  %v4171_v3 = vld [vmem:[%s6555_s5 + $0x20c] sm:$0xf]  ;;  %v3569_v60 = vor.u32 %v4246_v57, %v3566_v58  ;;  %v4294_v61 = vld [vmem:[%s6557_s7 + $0x1e4] sm:$0xf]  ;;  %v3662_v57 = vld [vmem:[%s6557_s7 + $0x130] sm:$0xf0] }
 0x175   :  { %v4318_v58 = vld [vmem:[%s6557_s7 + $0x2a4] sm:$0xf] }
 0x176   :  { %1616 = vmatpush.bf16.msrb.mxu2 %v3049_v8  ;;  %1638 = vmatpush.bf16.msra.mxu0 %v3369_v9  ;;  %v3273_v8 = vor.u32 %v4171_v3, %v3270_v4  ;;  %v3565_v9 = vor.u32 %v4248_v7, %v3564_v6  ;;  %v4242_v3 = vld [vmem:[%s6557_s7 + $0x44] sm:$0xf]  ;;  %v3550_v4 = vld [vmem:[%s6557_s7 + $0x50] sm:$0xf0] }
 0x177   :  { %v3553_v6 = vor.u32 %v4242_v3, %v3550_v4  ;;  %v3742_v7 = vld [vmem:[%s6557_s7 + $0x1d0] sm:$0xf0]  ;;  %v4266_v3 = vld [vmem:[%s6557_s7 + $0x104] sm:$0xf] }
 0x178   :  { %1631 = vmatpush.bf16.msrb.mxu3 %v3145_v14  ;;  %1653 = vmatpush.bf16.msra.mxu1 %v3465_v15  ;;  %v3516_v15 = vld [vmem:[%s6557_s7] sm:$0xf]  ;;  %v3646_v4 = vld [vmem:[%s6557_s7 + $0x110] sm:$0xf0] }
 0x179   :  { %v3517_v18 = vor.u32 %v4236_v16, %v3516_v15  ;;  %v3726_v15 = vld [vmem:[%s6557_s7 + $0x1b0] sm:$0xf0] }
 0x17a   :  { %1617 = vmatpush.bf16.msrb.mxu2 %v3033_v22  ;;  %1639 = vmatpush.bf16.msra.mxu0 %v3353_v23 }
 0x17b   :  { %1632 = vmatmul.bf16.vlgmr.msrb.gmra.mxu3 %v5336_v19  ;;  %v4207_v19 = vld [vmem:[%s6555_s5 + $0x32c] sm:$0xf] }
 0x17c   :  { %2466 = vmatpush.bf16.msra.mxu3 %v3757_v21  ;;  %1654 = vmatpush.bf16.msra.mxu1 %v3449_v31  ;;  %v3417_v54 = vor.u32 %v4207_v19, %v3414_v48  ;;  %v3630_v21 = vld [vmem:[%s6557_s7 + $0xf0] sm:$0xf0]  ;;  %v4320_v19 = vld [vmem:[%s6557_s7 + $0x2ac] sm:$0xf0]  ;;  %v4250_v48 = vld [vmem:[%s6557_s7 + $0x84] sm:$0xf] }
 0x17d   :  { %v3633_v23 = vor.u32 %v4262_v20, %v3630_v21  ;;  %v3614_v31 = vld [vmem:[%s6557_s7 + $0xd0] sm:$0xf0]  ;;  %v4234_v20 = vld [vmem:[%s6557_s7 + $0x4] sm:$0xf] }
 0x17e   :  { %1618 = vmatpush.bf16.msrb.mxu2 %v3017_v38  ;;  %1640 = vmatpush.bf16.msra.mxu0 %v3337_v39  ;;  %v3617_v33 = vor.u32 %v4258_v30, %v3614_v31  ;;  %v3677_v38 = vor.u32 %v4276_v35, %v3676_v34  ;;  %v4324_v39 = vld [vmem:[%s6557_s7 + $0x2cc] sm:$0xf0]  ;;  %v3518_v21 = vld [vmem:[%s6557_s7 + $0x10] sm:$0xf0]  ;;  %v4012_v30 = vld [vmem:[%s6557_s7 + $0x3e0] sm:$0xf] }
 0x17f   :  { %v3694_v34 = vld [vmem:[%s6557_s7 + $0x170] sm:$0xf0] }
 0x180   :  { %2467 = vmatpush.bf16.msra.mxu3 %v3741_v36  ;;  %1655 = vmatpush.bf16.msra.mxu1 %v3433_v45  ;;  %v3868_v36 = vld [vmem:[%s6557_s7 + $0x2c0] sm:$0xf]  ;;  %v4272_v45 = vld [vmem:[%s6557_s7 + $0x12c] sm:$0xf0] }
 0x181   :  { %1619 = vmatmul.bf16.vlgmr.msrb.gmra.mxu2 %v5358_v37  ;;  %v3597_v37 = vor.u32 %v4256_v56, %v3596_v55  ;;  %v3869_v42 = vor.u32 %v4324_v39, %v3868_v36  ;;  %v4316_v56 = vld [vmem:[%s6557_s7 + $0x28c] sm:$0xf0]  ;;  %v3886_v39 = vld [vmem:[%s6557_s7 + $0x2f0] sm:$0xf0] }
 0x182   :  { %2453 = vmatpush.bf16.msra.mxu2 %v3629_v44  ;;  %1641 = vmatpush.bf16.msra.mxu0 %v3321_v50  ;;  %v3660_v44 = vld [vmem:[%s6557_s7 + $0x120] sm:$0xf]  ;;  %v3853_v50 = vor.u32 %v4320_v19, %v3852_v46  ;;  %v3678_v46 = vld [vmem:[%s6557_s7 + $0x150] sm:$0xf0] }
 0x183   :  { %v3661_v47 = vor.u32 %v4272_v45, %v3660_v44  ;;  %v4274_v45 = vld [vmem:[%s6557_s7 + $0x144] sm:$0xf] }
 0x184   :  { %2468 = vmatpush.bf16.msra.mxu3 %v3725_v49  ;;  %1656 = vmatpush.bf16.msra.mxu1 %v3417_v54  ;;  %v3582_v49 = vld [vmem:[%s6557_s7 + $0x90] sm:$0xf0]  ;;  %v3836_v54 = vld [vmem:[%s6557_s7 + $0x280] sm:$0xf] }
 0x185   :  { %v3585_v51 = vor.u32 %v4250_v48, %v3582_v49  ;;  %v3681_v48 = vor.u32 %v4274_v45, %v3678_v46  ;;  %v3870_v49 = vld [vmem:[%s6557_s7 + $0x2d0] sm:$0xf0]  ;;  %v3900_v46 = vld [vmem:[%s6557_s7 + $0x300] sm:$0xf] }
 0x186   :  { %2454 = vmatpush.bf16.msra.mxu2 %v3613_v53  ;;  %1642 = vmatpush.bf16.msra.mxu0 %v3305_v59  ;;  %v4268_v53 = vld [vmem:[%s6557_s7 + $0x10c] sm:$0xf0]  ;;  %v3837_v59 = vor.u32 %v4316_v56, %v3836_v54  ;;  %v4270_v56 = vld [vmem:[%s6557_s7 + $0x124] sm:$0xf] }
 0x187   :  { %v3645_v55 = vor.u32 %v4268_v53, %v3644_v52  ;;  %v3980_v53 = vld [vmem:[%s6557_s7 + $0x3a0] sm:$0xf]  ;;  %v4352_v54 = vld [vmem:[%s6557_s7 + $0x3ac] sm:$0xf0] }
 0x188   :  { %1657 = vmatpush.bf16.msra.mxu1 %v3401_v62 }
 0x18a   :  { %2455 = vmatpush.bf16.msra.mxu2 %v3597_v37  ;;  %1643 = vmatpush.bf16.msra.mxu0 %v3289_v2  ;;  %v3758_v37 = vld [vmem:[%s6557_s7 + $0x1f0] sm:$0xf0]  ;;  %v3821_v2 = vor.u32 %v4312_v0, %v3820_v63  ;;  %v3964_v63 = vld [vmem:[%s6557_s7 + $0x380] sm:$0xf]  ;;  %v4348_v0 = vld [vmem:[%s6557_s7 + $0x38c] sm:$0xf0] }
 0x18b   :  { %1658 = vmatmul.bf16.vlgmr.msra.gmra.mxu1 %v5400_v1  ;;  %v4240_v1 = vld [vmem:[%s6557_s7 + $0x2c] sm:$0xf0]  ;;  %v3761_v62 = vor.u32 %v4294_v61, %v3758_v37  ;;  %v3854_v61 = vld [vmem:[%s6557_s7 + $0x2b0] sm:$0xf0] }
 0x18c   :  { %v3533_v14 = vor.u32 %v4240_v1, %v3532_v13  ;;  %v3534_v13 = vld [vmem:[%s6557_s7 + $0x30] sm:$0xf0]  ;;  %v4286_v1 = vld [vmem:[%s6557_s7 + $0x1a4] sm:$0xf] }
 0x18d   :  { %v3729_v16 = vor.u32 %v4286_v1, %v3726_v15  ;;  %v4344_v1 = vld [vmem:[%s6557_s7 + $0x36c] sm:$0xf0] }
 0x18e   :  { %2456 = vmatpush.bf16.msra.mxu2 %v3581_v5  ;;  %1644 = vmatpush.bf16.msra.mxu0 %v3273_v8  ;;  %v4290_v5 = vld [vmem:[%s6557_s7 + $0x1c4] sm:$0xf] }
 0x18f   :  { %v3745_v8 = vor.u32 %v4290_v5, %v3742_v7  ;;  %v4314_v5 = vld [vmem:[%s6557_s7 + $0x284] sm:$0xf]  ;;  %v3649_v7 = vor.u32 %v4266_v3, %v3646_v4  ;;  %v3998_v4 = vld [vmem:[%s6557_s7 + $0x3d0] sm:$0xf0] }
 0x190   :  { %v4354_v3 = vld [vmem:[%s6557_s7 + $0x3c4] sm:$0xf] }
 0x191   :  { %1645 = vmatmul.bf16.vlgmr.msra.gmra.mxu0 %v5440_v24  ;;  %v4284_v24 = vld [vmem:[%s6557_s7 + $0x18c] sm:$0xf0] }
 0x192   :  { %2457 = vmatpush.bf16.msra.mxu2 %v3565_v9  ;;  %v3709_v22 = vor.u32 %v4284_v24, %v3708_v17  ;;  %2479 = vmatpush.bf16.msrb.mxu0 %v3885_v32  ;;  %v3804_v9 = vld [vmem:[%s6557_s7 + $0x240] sm:$0xf]  ;;  %v4360_v32 = vld [vmem:[%s6557_s7 + $0x3ec] sm:$0xf0] }
 0x193   :  { %v3805_v11 = vor.u32 %v4308_v10, %v3804_v9  ;;  %v3788_v17 = vld [vmem:[%s6557_s7 + $0x220] sm:$0xf]  ;;  %v4013_v35 = vor.u32 %v4360_v32, %v4012_v30 }
 0x194   :  { %2469 = vmatpush.bf16.msra.mxu3 %v3709_v22  ;;  %v4282_v22 = vld [vmem:[%s6557_s7 + $0x184] sm:$0xf]  ;;  %v3916_v32 = vld [vmem:[%s6557_s7 + $0x320] sm:$0xf] }
 0x195   :  { %v3713_v26 = vor.u32 %v4282_v22, %v3710_v25  ;;  %2492 = vmatpush.bf16.msrb.mxu1 %v4013_v35  ;;  %v4340_v22 = vld [vmem:[%s6557_s7 + $0x34c] sm:$0xf0]  ;;  %v4306_v25 = vld [vmem:[%s6557_s7 + $0x244] sm:$0xf] }
 0x196   :  { %2458 = vmatpush.bf16.msra.mxu2 %v3549_v12  ;;  %2480 = vmatpush.bf16.msrb.mxu0 %v3869_v42  ;;  %v4238_v12 = vld [vmem:[%s6557_s7 + $0x24] sm:$0xf]  ;;  %v3996_v42 = vld [vmem:[%s6557_s7 + $0x3c0] sm:$0xf] }
 0x197   :  { %v4302_v35 = vld [vmem:[%s6557_s7 + $0x224] sm:$0xf] }
 0x198   :  { %2470 = vmatpush.bf16.msra.mxu3 %v3693_v28  ;;  %v3772_v28 = vld [vmem:[%s6557_s7 + $0x200] sm:$0xf] }
 0x199   :  { %v3773_v31 = vor.u32 %v4300_v29, %v3772_v28  ;;  %v808_v29 = vperm.slane %v5976_v41, 1 }
 0x19a   :  { %2459 = vmatpush.bf16.msra.mxu2 %v3533_v14  ;;  %2481 = vmatpush.bf16.msrb.mxu0 %v3853_v50  ;;  %v3537_v14 = vor.u32 %v4238_v12, %v3534_v13  ;;  %v807_v50 = vperm.slane %v5976_v41, 0  ;;  %v3948_v13 = vld [vmem:[%s6557_s7 + $0x360] sm:$0xf] }
 0x19b   :  { %v3949_v15 = vor.u32 %v4344_v1, %v3948_v13  ;;  %v809_v1 = vperm.slane %v5976_v41, 2 }
 0x19c   :  { %2471 = vmatpush.bf16.msra.mxu3 %v3677_v38  ;;  %v4326_v38 = vld [vmem:[%s6557_s7 + $0x2e4] sm:$0xf] }
 0x19d   :  { %v3889_v40 = vor.u32 %v4326_v38, %v3886_v39  ;;  %v3636_v39 = vld [vmem:[%s6557_s7 + $0xe8] sm:$0xf] }
 0x19e   :  { %2460 = vmatpush.bf16.msra.mxu2 %v3517_v18  ;;  %2482 = vmatpush.bf16.msrb.mxu0 %v3837_v59  ;;  %v4304_v18 = vld [vmem:[%s6557_s7 + $0x22c] sm:$0xf0] }
 0x19f   :  { %v3789_v24 = vor.u32 %v4304_v18, %v3788_v17  ;;  %v3822_v17 = vld [vmem:[%s6557_s7 + $0x270] sm:$0xf0] }
 0x1a0   :  { %2472 = vmatpush.bf16.msra.mxu3 %v3661_v47  ;;  %v4322_v47 = vld [vmem:[%s6557_s7 + $0x2c4] sm:$0xf] }
 0x1a2   :  { %2505 = vmatpush.bf16.msrb.mxu2 %v3633_v23  ;;  %2483 = vmatpush.bf16.msrb.mxu0 %v3821_v2  ;;  %v3521_v23 = vor.u32 %v4234_v20, %v3518_v21  ;;  %v3965_v2 = vor.u32 %v4348_v0, %v3964_v63  ;;  %v3932_v21 = vld [vmem:[%s6557_s7 + $0x340] sm:$0xf]  ;;  %v3604_v63 = vld [vmem:[%s6557_s7 + $0xa8] sm:$0xf] }
 0x1a4   :  { %2473 = vmatpush.bf16.msra.mxu3 %v3645_v55  ;;  %v3981_v55 = vor.u32 %v4352_v54, %v3980_v53  ;;  %v3620_v54 = vld [vmem:[%s6557_s7 + $0xc8] sm:$0xf] }
 0x1a6   :  { %2506 = vmatpush.bf16.msrb.mxu2 %v3617_v33  ;;  %2484 = vmatpush.bf16.msrb.mxu0 %v3805_v11  ;;  %v4278_v33 = vld [vmem:[%s6557_s7 + $0x164] sm:$0xf] }
 0x1a7   :  { %v3697_v36 = vor.u32 %v4278_v33, %v3694_v34  ;;  %v4336_v33 = vld [vmem:[%s6557_s7 + $0x32c] sm:$0xf0] }
 0x1a8   :  { %2518 = vmatpush.bf16.msrb.mxu3 %v3761_v62  ;;  %v3857_v62 = vor.u32 %v4318_v58, %v3854_v61  ;;  %v3917_v34 = vor.u32 %v4336_v33, %v3916_v32  ;;  %v4245_v32 = vld [vmem:[%s6557_s7 + $0x54] sm:$0xf0]  ;;  %v3748_v33 = vld [vmem:[%s6557_s7 + $0x1c8] sm:$0xf] }
 0x1aa   :  { %2507 = vmatpush.bf16.msrb.mxu2 %v3601_v43  ;;  %2485 = vmatpush.bf16.msrb.mxu0 %v3789_v24  ;;  %v4356_v43 = vld [vmem:[%s6557_s7 + $0x3cc] sm:$0xf0] }
 0x1ab   :  { %v3997_v44 = vor.u32 %v4356_v43, %v3996_v42 }
 0x1ac   :  { %2519 = vmatpush.bf16.msrb.mxu3 %v3745_v8  ;;  %v3838_v8 = vld [vmem:[%s6557_s7 + $0x290] sm:$0xf0] }
 0x1ad   :  { %2493 = vmatpush.bf16.msrb.mxu1 %v3997_v44  ;;  %v3841_v10 = vor.u32 %v4314_v5, %v3838_v8  ;;  %v3588_v8 = vld [vmem:[%s6557_s7 + $0x88] sm:$0xf] }
 0x1ae   :  { %2508 = vmatpush.bf16.msrb.mxu2 %v3585_v51  ;;  %2486 = vmatpush.bf16.msrb.mxu0 %v3773_v31  ;;  %v3873_v51 = vor.u32 %v4322_v47, %v3870_v49  ;;  %v4332_v47 = vld [vmem:[%s6557_s7 + $0x30c] sm:$0xf0]  ;;  %v4298_v49 = vld [vmem:[%s6557_s7 + $0x204] sm:$0xf] }
 0x1b0   :  { %2520 = vmatpush.bf16.msrb.mxu3 %v3729_v16  ;;  %v4310_v16 = vld [vmem:[%s6557_s7 + $0x264] sm:$0xf] }
 0x1b1   :  { %2494 = vmatpush.bf16.msrb.mxu1 %v3981_v55  ;;  %v3825_v24 = vor.u32 %v4310_v16, %v3822_v17  ;;  %v4261_v55 = vld [vmem:[%s6557_s7 + $0xd4] sm:$0xf0]  ;;  %v3572_v17 = vld [vmem:[%s6557_s7 + $0x68] sm:$0xf] }
 0x1b2   :  { %2509 = vmatpush.bf16.msrb.mxu2 %v3569_v60  ;;  %2531 = vmatpush.bf16.msra.mxu0 %v3889_v40  ;;  %v3665_v60 = vor.u32 %v4270_v56, %v3662_v57  ;;  %v4265_v40 = vld [vmem:[%s6557_s7 + $0xf4] sm:$0xf0]  ;;  %v4014_v57 = vld [vmem:[%s6557_s7 + $0x3f0] sm:$0xf0] }
 0x1b4   :  { %2521 = vmatpush.bf16.msrb.mxu3 %v3713_v26  ;;  %v3806_v26 = vld [vmem:[%s6557_s7 + $0x250] sm:$0xf0] }
 0x1b5   :  { %2495 = vmatpush.bf16.msrb.mxu1 %v3965_v2  ;;  %v3809_v28 = vor.u32 %v4306_v25, %v3806_v26  ;;  %v4257_v2 = vld [vmem:[%s6557_s7 + $0xb4] sm:$0xf0] }
 0x1b6   :  { %2510 = vmatpush.bf16.msrb.mxu2 %v3553_v6  ;;  %2532 = vmatpush.bf16.msra.mxu0 %v3873_v51  ;;  %v4358_v51 = vld [vmem:[%s6557_s7 + $0x3e4] sm:$0xf] }
 0x1b8   :  { %2522 = vmatpush.bf16.msrb.mxu3 %v3697_v36  ;;  %v3790_v36 = vld [vmem:[%s6557_s7 + $0x230] sm:$0xf0] }
 0x1b9   :  { %2496 = vmatpush.bf16.msrb.mxu1 %v3949_v15  ;;  %v3793_v42 = vor.u32 %v4302_v35, %v3790_v36  ;;  %v4293_v35 = vld [vmem:[%s6557_s7 + $0x1d4] sm:$0xf0]  ;;  %v4342_v36 = vld [vmem:[%s6557_s7 + $0x364] sm:$0xf] }
 0x1ba   :  { %2511 = vmatpush.bf16.msrb.mxu2 %v3537_v14  ;;  %2533 = vmatpush.bf16.msra.mxu0 %v3857_v62  ;;  %v3621_v62 = vor.u32 %v4261_v55, %v3620_v54 }
 0x1bc   :  { %2523 = vmatpush.bf16.msrb.mxu3 %v3681_v48  ;;  %v3901_v48 = vor.u32 %v4332_v47, %v3900_v46  ;;  %v3540_v46 = vld [vmem:[%s6557_s7 + $0x28] sm:$0xf]  ;;  %v4241_v47 = vld [vmem:[%s6557_s7 + $0x34] sm:$0xf0] }
 0x1be   :  { %v1477_v27 = vpop.f32.mrf.mxu3  ;;  %2512 = vmatpush.bf16.msrb.mxu2 %v3521_v23  ;;  %2534 = vmatpush.bf16.msra.mxu0 %v3841_v10  ;;  %v3933_v23 = vor.u32 %v4340_v22, %v3932_v21  ;;  %v4350_v10 = vld [vmem:[%s6557_s7 + $0x3a4] sm:$0xf]  ;;  %v4297_v21 = vld [vmem:[%s6557_s7 + $0x1f4] sm:$0xf0] }
 0x1bf   :  { %v4346_v22 = vld [vmem:[%s6557_s7 + $0x384] sm:$0xf] }
 0x1c0   :  { %2524 = vmatpush.bf16.msrb.mxu3 %v3665_v60  ;;  %2497 = vmatpush.bf16.msrb.mxu1 %v3933_v23  ;;  %v3966_v23 = vld [vmem:[%s6557_s7 + $0x390] sm:$0xf0] }
 0x1c1   :  { %v3969_v26 = vor.u32 %v4346_v22, %v3966_v23  ;;  %v4277_v22 = vld [vmem:[%s6557_s7 + $0x154] sm:$0xf0]  ;;  %v3876_v23 = vld [vmem:[%s6557_s7 + $0x2c8] sm:$0xf] }
 0x1c2   :  { %2535 = vmatpush.bf16.msra.mxu0 %v3825_v24  ;;  %v3764_v24 = vld [vmem:[%s6557_s7 + $0x1e8] sm:$0xf] }
 0x1c4   :  { %v1464_v19 = vpop.f32.mrf.mxu2  ;;  %2525 = vmatpush.bf16.msrb.mxu3 %v3649_v7  ;;  %2498 = vmatpush.bf16.msrb.mxu1 %v3917_v34  ;;  %v3605_v7 = vor.u32 %v4257_v2, %v3604_v63  ;;  %v4263_v63 = vld [vmem:[%s6557_s7 + $0xec] sm:$0xf] }
 0x1c5   :  { %v1465_v37 = vadd.f32 %v1464_v19, %v807_v50  ;;  %v3637_v19 = vor.u32 %v4265_v40, %v3636_v39  ;;  %v3774_v50 = vld [vmem:[%s6557_s7 + $0x210] sm:$0xf0] }
 0x1c6   :  { %v1479_v52 = vpop.f32.mrf.mxu3  ;;  %2536 = vmatpush.bf16.msra.mxu0 %v3809_v28  ;;  %v3777_v56 = vor.u32 %v4298_v49, %v3774_v50  ;;  %v4289_v50 = vld [vmem:[%s6557_s7 + $0x1b4] sm:$0xf0] }
 0x1c7   :  { %v1478_v9 = vadd.f32 %v1477_v27, %v1465_v37 }
 0x1c8   :  { %v1503_v59 = vpop.f32.mrf.mxu1  ;;  %2499 = vmatpush.bf16.msrb.mxu1 %v3901_v48 }
 0x1ca   :  { %2537 = vmatpush.bf16.msra.mxu0 %v3793_v42 }
 0x1cc   :  { %v1466_v6 = vpop.f32.mrf.mxu2 }
 0x1cd   :  { %v4001_v6 = vor.u32 %v4354_v3, %v3998_v4 }
 0x1ce   :  { %v1490_v11 = vpop.f32.mrf.mxu0  ;;  %v1529_v12 = vpop.f32.mrf.mxu3  ;;  %2538 = vmatpush.bf16.msra.mxu0 %v3777_v56  ;;  %v3541_v56 = vor.u32 %v4241_v47, %v3540_v46  ;;  %v3652_v47 = vld [vmem:[%s6557_s7 + $0x108] sm:$0xf] }
 0x1cf   :  { %v1491_v14 = vadd.f32 %v1490_v11, %v1478_v9  ;;  %v4253_v9 = vld [vmem:[%s6557_s7 + $0x94] sm:$0xf0]  ;;  %v3982_v11 = vld [vmem:[%s6557_s7 + $0x3b0] sm:$0xf0] }
 0x1d0   :  { %v1505_v18 = vpop.f32.mrf.mxu1  ;;  %v3985_v13 = vor.u32 %v4350_v10, %v3982_v11  ;;  %v3589_v16 = vor.u32 %v4253_v9, %v3588_v8  ;;  %v3892_v9 = vld [vmem:[%s6557_s7 + $0x2e8] sm:$0xf]  ;;  %v4330_v10 = vld [vmem:[%s6557_s7 + $0x304] sm:$0xf]  ;;  %v3902_v11 = vld [vmem:[%s6557_s7 + $0x310] sm:$0xf0] }
 0x1d1   :  { %v1504_v20 = vadd.f32 %v1503_v59, %v1491_v14  ;;  %v4017_v59 = vor.u32 %v4358_v51, %v4014_v57  ;;  %v4249_v18 = vld [vmem:[%s6557_s7 + $0x74] sm:$0xf0]  ;;  %v4338_v51 = vld [vmem:[%s6557_s7 + $0x344] sm:$0xf] }
 0x1d3   :  { %4374 = vtanh.f32 %v1504_v20  ;;  %2544 = vmatpush.bf16.msra.mxu1 %v4017_v59  ;;  %v4237_v59 = vld [vmem:[%s6557_s7 + $0x14] sm:$0xf0] }
 0x1d4   :  { %v1516_v27 = vpop.f32.mrf.mxu2 }
 0x1d5   :  { %v1517_v44 = vadd.f32 %v1516_v27, %v808_v29  ;;  %v3573_v29 = vor.u32 %v4249_v18, %v3572_v17 }
 0x1d6   :  { %v1492_v30 = vpop.f32.mrf.mxu0  ;;  %v1531_v31 = vpop.f32.mrf.mxu3 }
 0x1d7   :  { %v1530_v58 = vadd.f32 %v1529_v12, %v1517_v44  ;;  %2545 = vmatpush.bf16.msra.mxu1 %v4001_v6  ;;  %v3765_v30 = vor.u32 %v4297_v21, %v3764_v24  ;;  %v3556_v31 = vld [vmem:[%s6557_s7 + $0x48] sm:$0xf] }
 0x1d8   :  { %v1555_v38 = vpop.f32.mrf.mxu1  ;;  %v3557_v44 = vor.u32 %v4245_v32, %v3556_v31  ;;  %v3700_v6 = vld [vmem:[%s6557_s7 + $0x168] sm:$0xf] }
 0x1d9   :  { %v4375_v43 = vpop.eup %4374  ;;  %v3684_v21 = vld [vmem:[%s6557_s7 + $0x148] sm:$0xf] }
 0x1da   :  { %v1667_v45 = vmul.f32 0.25, %v4375_v43  ;;  %v3668_v32 = vld [vmem:[%s6557_s7 + $0x128] sm:$0xf] }
 0x1db   :  { %2546 = vmatpush.bf16.msra.mxu1 %v3985_v13  ;;  %v4259_v13 = vld [vmem:[%s6557_s7 + $0xcc] sm:$0xf] }
 0x1dc   :  { %v6091_v52 = vpack.c.bf16 %v1667_v45, %v1667_v45  ;;  %v1518_v53 = vpop.f32.mrf.mxu2  ;;  %v3749_v45 = vor.u32 %v4293_v35, %v3748_v33  ;;  %v4273_v33 = vld [vmem:[%s6557_s7 + $0x134] sm:$0xf0]  ;;  %v3860_v35 = vld [vmem:[%s6557_s7 + $0x2a8] sm:$0xf] }
 0x1dd   :  { %v3934_v53 = vld [vmem:[%s6557_s7 + $0x350] sm:$0xf0] }
 0x1de   :  { %v1542_v60 = vpop.f32.mrf.mxu0  ;;  %v1581_v61 = vpop.f32.mrf.mxu3  ;;  %2461 = vmatmul.bf16.vlgmr.msra.gmra.mxu2 %v6091_v52  ;;  %v3937_v54 = vor.u32 %v4338_v51, %v3934_v53  ;;  %v3574_v51 = vld [vmem:[%s6557_s7 + $0x78] sm:$0xf0] }
 0x1df   :  { %v1543_v37 = vadd.f32 %v1542_v60, %v1530_v58  ;;  %2557 = vmatpush.bf16.msra.mxu2 %v3637_v19  ;;  %2547 = vmatpush.bf16.msra.mxu1 %v3969_v26  ;;  %v3732_v19 = vld [vmem:[%s6557_s7 + $0x1a8] sm:$0xf]  ;;  %v4325_v26 = vld [vmem:[%s6557_s7 + $0x2d4] sm:$0xf0] }
 0x1e0   :  { %v1557_v0 = vpop.f32.mrf.mxu1  ;;  %v3733_v57 = vor.u32 %v4289_v50, %v3732_v19  ;;  %v3524_v58 = vld [vmem:[%s6557_s7 + $0x8] sm:$0xf]  ;;  %v4269_v19 = vld [vmem:[%s6557_s7 + $0x114] sm:$0xf0]  ;;  %v4247_v50 = vld [vmem:[%s6557_s7 + $0x6c] sm:$0xf] }
 0x1e1   :  { %v1556_v5 = vadd.f32 %v1555_v38, %v1543_v37  ;;  %v3950_v38 = vld [vmem:[%s6557_s7 + $0x370] sm:$0xf0]  ;;  %v3716_v60 = vld [vmem:[%s6557_s7 + $0x188] sm:$0xf]  ;;  %v4334_v37 = vld [vmem:[%s6557_s7 + $0x324] sm:$0xf]  ;;  %v3525_v4 = vor.u32 %v4237_v59, %v3524_v58  ;;  %v3577_v58 = vor.u32 %v4247_v50, %v3574_v51 }
 0x1e2   :  { %v3953_v40 = vor.u32 %v4342_v36, %v3950_v38  ;;  %v3638_v0 = vld [vmem:[%s6557_s7 + $0xf8] sm:$0xf0]  ;;  %v4321_v38 = vld [vmem:[%s6557_s7 + $0x2b4] sm:$0xf0]  ;;  %v3828_v59 = vld [vmem:[%s6557_s7 + $0x268] sm:$0xf] }
 0x1e3   :  { %4376 = vtanh.f32 %v1556_v5  ;;  %2558 = vmatpush.bf16.msra.mxu2 %v3621_v62  ;;  %v3918_v62 = vld [vmem:[%s6557_s7 + $0x330] sm:$0xf0]  ;;  %v3641_v8 = vor.u32 %v4263_v63, %v3638_v0  ;;  %v3558_v63 = vld [vmem:[%s6557_s7 + $0x58] sm:$0xf0]  ;;  %v4323_v51 = vld [vmem:[%s6557_s7 + $0x2cc] sm:$0xf] }
 0x1e4   :  { %v1568_v12 = vpop.f32.mrf.mxu2  ;;  %2548 = vmatpush.bf16.msra.mxu1 %v3953_v40  ;;  %v3921_v2 = vor.u32 %v4334_v37, %v3918_v62  ;;  %v3590_v40 = vld [vmem:[%s6557_s7 + $0x98] sm:$0xf0]  ;;  %v4313_v37 = vld [vmem:[%s6557_s7 + $0x274] sm:$0xf0]  ;;  %v4243_v62 = vld [vmem:[%s6557_s7 + $0x4c] sm:$0xf] }
 0x1e5   :  { %v1569_v28 = vadd.f32 %v1568_v12, %v809_v1  ;;  %v4329_v12 = vld [vmem:[%s6557_s7 + $0x2f4] sm:$0xf0]  ;;  %v3622_v1 = vld [vmem:[%s6557_s7 + $0xd8] sm:$0xf0] }
 0x1e6   :  { %v1544_v14 = vpop.f32.mrf.mxu0  ;;  %v1583_v15 = vpop.f32.mrf.mxu3  ;;  %v3893_v24 = vor.u32 %v4329_v12, %v3892_v9  ;;  %v4239_v12 = vld [vmem:[%s6557_s7 + $0x2c] sm:$0xf]  ;;  %v3686_v50 = vld [vmem:[%s6557_s7 + $0x158] sm:$0xf0] }
 0x1e7   :  { %2559 = vmatpush.bf16.msra.mxu2 %v3605_v7  ;;  %v1582_v42 = vadd.f32 %v1581_v61, %v1569_v28  ;;  %v4285_v61 = vld [vmem:[%s6557_s7 + $0x194] sm:$0xf0]  ;;  %v3905_v14 = vor.u32 %v4330_v10, %v3902_v11  ;;  %v3606_v28 = vld [vmem:[%s6557_s7 + $0xb8] sm:$0xf0] }
 0x1e8   :  { %v1607_v20 = vpop.f32.mrf.mxu1  ;;  %2549 = vmatpush.bf16.msra.mxu1 %v3937_v54  ;;  %v3717_v5 = vor.u32 %v4285_v61, %v3716_v60  ;;  %v4281_v7 = vld [vmem:[%s6557_s7 + $0x174] sm:$0xf0]  ;;  %v4295_v54 = vld [vmem:[%s6557_s7 + $0x1ec] sm:$0xf] }
 0x1e9   :  { %v4377_v25 = vpop.eup %4376  ;;  %v3701_v18 = vor.u32 %v4281_v7, %v3700_v6  ;;  %v3829_v6 = vor.u32 %v4313_v37, %v3828_v59  ;;  %v3561_v7 = vor.u32 %v4243_v62, %v3558_v63  ;;  %v4309_v11 = vld [vmem:[%s6557_s7 + $0x254] sm:$0xf0]  ;;  %v4271_v59 = vld [vmem:[%s6557_s7 + $0x12c] sm:$0xf] }
 0x1ea   :  { %v1668_v27 = vmul.f32 0.25, %v4377_v25 }
 0x1eb   :  { %2560 = vmatpush.bf16.msra.mxu2 %v3589_v16 }
 0x1ec   :  { %v6155_v34 = vpack.c.bf16 %v1668_v27, %v1668_v27  ;;  %v1570_v39 = vpop.f32.mrf.mxu2  ;;  %2550 = vmatpush.bf16.msra.mxu1 %v3921_v2  ;;  %v4255_v27 = vld [vmem:[%s6557_s7 + $0xac] sm:$0xf] }
 0x1ed   :  { %v3609_v31 = vor.u32 %v4255_v27, %v3606_v28  ;;  %v4251_v39 = vld [vmem:[%s6557_s7 + $0x8c] sm:$0xf] }
 0x1ee   :  { %2474 = vmatmul.bf16.vlgmr.msra.gmra.mxu3 %v6155_v34  ;;  %2513 = vmatmul.bf16.vlgmr.msrb.gmra.mxu2 %v6091_v52  ;;  %v1594_v43 = vpop.f32.mrf.mxu0  ;;  %v3593_v46 = vor.u32 %v4251_v39, %v3590_v40  ;;  %v4291_v2 = vld [vmem:[%s6557_s7 + $0x1cc] sm:$0xf]  ;;  %v3702_v39 = vld [vmem:[%s6557_s7 + $0x178] sm:$0xf0] }
 0x1ef   :  { %2561 = vmatpush.bf16.msra.mxu2 %v3573_v29  ;;  %2570 = vmatpush.bf16.msra.mxu3 %v3765_v30  ;;  %v1595_v48 = vadd.f32 %v1594_v43, %v1582_v42  ;;  %v3685_v29 = vor.u32 %v4277_v22, %v3684_v21  ;;  %v3877_v30 = vor.u32 %v4325_v26, %v3876_v23  ;;  %v810_v42 = vperm.slane %v5976_v41, 3  ;;  %v4235_v21 = vld [vmem:[%s6557_s7 + $0xc] sm:$0xf]  ;;  %v3526_v22 = vld [vmem:[%s6557_s7 + $0x18] sm:$0xf0] }
 0x1f0   :  { %v1609_v49 = vpop.f32.mrf.mxu1  ;;  %2551 = vmatpush.bf16.msra.mxu1 %v3905_v14  ;;  %v4287_v14 = vld [vmem:[%s6557_s7 + $0x1ac] sm:$0xf]  ;;  %v3718_v26 = vld [vmem:[%s6557_s7 + $0x198] sm:$0xf0] }
 0x1f1   :  { %v1608_v55 = vadd.f32 %v1607_v20, %v1595_v48  ;;  %v3625_v20 = vor.u32 %v4259_v13, %v3622_v1  ;;  %v3844_v48 = vld [vmem:[%s6557_s7 + $0x288] sm:$0xf]  ;;  %v4317_v49 = vld [vmem:[%s6557_s7 + $0x294] sm:$0xf0]  ;;  %v3542_v13 = vld [vmem:[%s6557_s7 + $0x38] sm:$0xf0] }
 0x1f2   :  { %v4283_v23 = vld [vmem:[%s6557_s7 + $0x18c] sm:$0xf] }
 0x1f3   :  { %2562 = vmatpush.bf16.msra.mxu2 %v3557_v44  ;;  %2571 = vmatpush.bf16.msra.mxu3 %v3749_v45  ;;  %4378 = vtanh.f32 %v1608_v55  ;;  %v3669_v44 = vor.u32 %v4273_v33, %v3668_v32  ;;  %v3861_v45 = vor.u32 %v4321_v38, %v3860_v35  ;;  %v3766_v55 = vld [vmem:[%s6557_s7 + $0x1f8] sm:$0xf0]  ;;  %v3721_v32 = vor.u32 %v4283_v23, %v3718_v26  ;;  %v4020_v33 = vld [vmem:[%s6557_s7 + $0x3e8] sm:$0xf]  ;;  %v4361_v35 = vld [vmem:[%s6557_s7 + $0x3f4] sm:$0xf0] }
 0x1f4   :  { %v3769_v61 = vor.u32 %v4295_v54, %v3766_v55  ;;  %v4327_v40 = vld [vmem:[%s6557_s7 + $0x2ec] sm:$0xf]  ;;  %v3798_v26 = vld [vmem:[%s6557_s7 + $0x238] sm:$0xf0] }
 0x1f5   :  { %v4303_v23 = vld [vmem:[%s6557_s7 + $0x22c] sm:$0xf] }
 0x1f6   :  { %v1596_v3 = vpop.f32.mrf.mxu0 }
 0x1f7   :  { %2563 = vmatpush.bf16.msra.mxu2 %v3541_v56  ;;  %2572 = vmatpush.bf16.msra.mxu3 %v3733_v57  ;;  %v3653_v56 = vor.u32 %v4269_v19, %v3652_v47  ;;  %v3845_v57 = vor.u32 %v4317_v49, %v3844_v48  ;;  %v3750_v3 = vld [vmem:[%s6557_s7 + $0x1d8] sm:$0xf0]  ;;  %v4004_v48 = vld [vmem:[%s6557_s7 + $0x3c8] sm:$0xf]  ;;  %v4275_v49 = vld [vmem:[%s6557_s7 + $0x14c] sm:$0xf] }
 0x1f8   :  { %v3753_v10 = vor.u32 %v4291_v2, %v3750_v3  ;;  %v3689_v55 = vor.u32 %v4275_v49, %v3686_v50  ;;  %v4349_v2 = vld [vmem:[%s6557_s7 + $0x394] sm:$0xf0]  ;;  %v4267_v3 = vld [vmem:[%s6557_s7 + $0x10c] sm:$0xf] }
 0x1f9   :  { %v4379_v15 = vpop.eup %4378  ;;  %v4339_v50 = vld [vmem:[%s6557_s7 + $0x34c] sm:$0xf] }
 0x1fa   :  { %v1669_v16 = vmul.f32 0.25, %v4379_v15  ;;  %v3734_v15 = vld [vmem:[%s6557_s7 + $0x1b8] sm:$0xf0] }
 0x1fb   :  { %2564 = vmatpush.bf16.msra.mxu2 %v3525_v4  ;;  %2573 = vmatpush.bf16.msra.mxu3 %v3717_v5 }
 0x1fc   :  { %v6243_v25 = vpack.c.bf16 %v1669_v16, %v1669_v16 }
 0x1fe   :  { %v1633_v17 = vpop.f32.mrf.mxu3  ;;  %2526 = vmatmul.bf16.vlgmr.msrb.gmra.mxu3 %v6155_v34  ;;  %2565 = vmatmul.bf16.vlgmr.msra.gmra.mxu2 %v6091_v52 }
 0x1ff   :  { %2609 = vmatpush.bf16.msrb.mxu2 %v3641_v8  ;;  %2487 = vmatmul.bf16.vlgmr.msrb.gmra.mxu0 %v6243_v25  ;;  %v3812_v8 = vld [vmem:[%s6557_s7 + $0x248] sm:$0xf] }
 0x200   :  { %2574 = vmatpush.bf16.msra.mxu3 %v3701_v18  ;;  %2583 = vmatpush.bf16.msrb.mxu0 %v3893_v24  ;;  %v3813_v16 = vor.u32 %v4309_v11, %v3812_v8  ;;  %v3796_v18 = vld [vmem:[%s6557_s7 + $0x228] sm:$0xf]  ;;  %v3737_v24 = vor.u32 %v4287_v14, %v3734_v15  ;;  %v4345_v11 = vld [vmem:[%s6557_s7 + $0x374] sm:$0xf0] }
 0x201   :  { %v3940_v15 = vld [vmem:[%s6557_s7 + $0x348] sm:$0xf] }
 0x203   :  { %2610 = vmatpush.bf16.msrb.mxu2 %v3625_v20  ;;  %v4305_v20 = vld [vmem:[%s6557_s7 + $0x234] sm:$0xf0] }
 0x204   :  { %v1620_v36 = vpop.f32.mrf.mxu2  ;;  %2575 = vmatpush.bf16.msra.mxu3 %v3685_v29  ;;  %2584 = vmatpush.bf16.msrb.mxu0 %v3877_v30  ;;  %v3797_v28 = vor.u32 %v4305_v20, %v3796_v18  ;;  %v3529_v29 = vor.u32 %v4235_v21, %v3526_v22  ;;  %v3780_v30 = vld [vmem:[%s6557_s7 + $0x208] sm:$0xf]  ;;  %v3814_v18 = vld [vmem:[%s6557_s7 + $0x258] sm:$0xf0]  ;;  %v4337_v22 = vld [vmem:[%s6557_s7 + $0x334] sm:$0xf0] }
 0x205   :  { %v1621_v53 = vadd.f32 %v1620_v36, %v810_v42  ;;  %v4279_v36 = vld [vmem:[%s6557_s7 + $0x16c] sm:$0xf]  ;;  %v3894_v42 = vld [vmem:[%s6557_s7 + $0x2f8] sm:$0xf0]  ;;  %v3924_v21 = vld [vmem:[%s6557_s7 + $0x328] sm:$0xf] }
 0x206   :  { %v1635_v43 = vpop.f32.mrf.mxu3  ;;  %v3705_v47 = vor.u32 %v4279_v36, %v3702_v39  ;;  %v3897_v19 = vor.u32 %v4327_v40, %v3894_v42  ;;  %v4355_v39 = vld [vmem:[%s6557_s7 + $0x3cc] sm:$0xf]  ;;  %v4006_v40 = vld [vmem:[%s6557_s7 + $0x3d8] sm:$0xf0] }
 0x207   :  { %2611 = vmatpush.bf16.msrb.mxu2 %v3609_v31  ;;  %v1634_v0 = vadd.f32 %v1633_v17, %v1621_v53  ;;  %v3545_v17 = vor.u32 %v4239_v12, %v3542_v13  ;;  %v4301_v31 = vld [vmem:[%s6557_s7 + $0x214] sm:$0xf0]  ;;  %v3878_v53 = vld [vmem:[%s6557_s7 + $0x2d8] sm:$0xf0]  ;;  %v4311_v12 = vld [vmem:[%s6557_s7 + $0x26c] sm:$0xf]  ;;  %v4009_v42 = vor.u32 %v4355_v39, %v4006_v40 }
 0x208   :  { %v1659_v41 = vpop.f32.mrf.mxu1  ;;  %2576 = vmatpush.bf16.msra.mxu3 %v3669_v44  ;;  %2585 = vmatpush.bf16.msrb.mxu0 %v3861_v45  ;;  %v3781_v44 = vor.u32 %v4301_v31, %v3780_v30  ;;  %v4021_v45 = vor.u32 %v4361_v35, %v4020_v33  ;;  %v3830_v13 = vld [vmem:[%s6557_s7 + $0x278] sm:$0xf0]  ;;  %v4299_v30 = vld [vmem:[%s6557_s7 + $0x20c] sm:$0xf] }
 0x209   :  { %v3833_v14 = vor.u32 %v4311_v12, %v3830_v13  ;;  %v3782_v31 = vld [vmem:[%s6557_s7 + $0x218] sm:$0xf0] }
 0x20a   :  { %v4022_v33 = vld [vmem:[%s6557_s7 + $0x3f8] sm:$0xf0]  ;;  %v3785_v36 = vor.u32 %v4299_v30, %v3782_v31 }
 0x20b   :  { %2612 = vmatpush.bf16.msrb.mxu2 %v3593_v46 }
 0x20c   :  { %v1622_v60 = vpop.f32.mrf.mxu2  ;;  %2577 = vmatpush.bf16.msra.mxu3 %v3653_v56  ;;  %2586 = vmatpush.bf16.msrb.mxu0 %v3845_v57  ;;  %v3881_v56 = vor.u32 %v4323_v51, %v3878_v53  ;;  %v3988_v57 = vld [vmem:[%s6557_s7 + $0x3a8] sm:$0xf]  ;;  %v3942_v51 = vld [vmem:[%s6557_s7 + $0x358] sm:$0xf0] }
 0x20d   :  { %v4319_v60 = vld [vmem:[%s6557_s7 + $0x2ac] sm:$0xf]  ;;  %v3945_v53 = vor.u32 %v4339_v50, %v3942_v51 }
 0x20e   :  { %v1646_v4 = vpop.f32.mrf.mxu0 }
 0x20f   :  { %v1647_v5 = vadd.f32 %v1646_v4, %v1634_v0  ;;  %2613 = vmatpush.bf16.msrb.mxu2 %v3577_v58  ;;  %2578 = vmatmul.bf16.vlgmr.msra.gmra.mxu3 %v6155_v34  ;;  %v4353_v58 = vld [vmem:[%s6557_s7 + $0x3b4] sm:$0xf0]  ;;  %v3972_v0 = vld [vmem:[%s6557_s7 + $0x388] sm:$0xf]  ;;  %v3654_v4 = vld [vmem:[%s6557_s7 + $0x118] sm:$0xf0] }
 0x210   :  { %2622 = vmatpush.bf16.msrb.mxu3 %v3769_v61  ;;  %v1661_v9 = vpop.f32.mrf.mxu1  ;;  %2539 = vmatmul.bf16.vlgmr.msra.gmra.mxu0 %v6243_v25  ;;  %v3862_v61 = vld [vmem:[%s6557_s7 + $0x2b8] sm:$0xf0]  ;;  %v3989_v37 = vor.u32 %v4353_v58, %v3988_v57  ;;  %v3657_v8 = vor.u32 %v4267_v3, %v3654_v4  ;;  %v4331_v57 = vld [vmem:[%s6557_s7 + $0x30c] sm:$0xf] }
 0x211   :  { %v1660_v1 = vadd.f32 %v1659_v41, %v1647_v5  ;;  %2587 = vmatpush.bf16.msrb.mxu0 %v3829_v6  ;;  %v4357_v41 = vld [vmem:[%s6557_s7 + $0x3d4] sm:$0xf0]  ;;  %v3865_v63 = vor.u32 %v4319_v60, %v3862_v61  ;;  %v4315_v5 = vld [vmem:[%s6557_s7 + $0x28c] sm:$0xf]  ;;  %v3846_v6 = vld [vmem:[%s6557_s7 + $0x298] sm:$0xf0] }
 0x212   :  { %v4005_v54 = vor.u32 %v4357_v41, %v4004_v48  ;;  %v3849_v9 = vor.u32 %v4315_v5, %v3846_v6  ;;  %v4343_v41 = vld [vmem:[%s6557_s7 + $0x36c] sm:$0xf]  ;;  %v3910_v58 = vld [vmem:[%s6557_s7 + $0x318] sm:$0xf0] }
 0x213   :  { %4380 = vtanh.f32 %v1660_v1  ;;  %2614 = vmatpush.bf16.msrb.mxu2 %v3561_v7  ;;  %v3973_v7 = vor.u32 %v4349_v2, %v3972_v0 }
 0x214   :  { %2623 = vmatpush.bf16.msrb.mxu3 %v3753_v10  ;;  %v3956_v10 = vld [vmem:[%s6557_s7 + $0x368] sm:$0xf] }
 0x215   :  { %2588 = vmatpush.bf16.msrb.mxu0 %v3813_v16  ;;  %v3957_v1 = vor.u32 %v4345_v11, %v3956_v10  ;;  %v4341_v16 = vld [vmem:[%s6557_s7 + $0x354] sm:$0xf0] }
 0x216   :  { %v1648_v27 = vpop.f32.mrf.mxu0 }
 0x217   :  { %2615 = vmatpush.bf16.msrb.mxu2 %v3545_v17  ;;  %v4307_v17 = vld [vmem:[%s6557_s7 + $0x24c] sm:$0xf]  ;;  %v3801_v27 = vor.u32 %v4303_v23, %v3798_v26 }
 0x218   :  { %2624 = vmatpush.bf16.msrb.mxu3 %v3737_v24  ;;  %v3941_v24 = vor.u32 %v4341_v16, %v3940_v15  ;;  %v3817_v20 = vor.u32 %v4307_v17, %v3814_v18 }
 0x219   :  { %v4381_v38 = vpop.eup %4380  ;;  %2589 = vmatpush.bf16.msrb.mxu0 %v3797_v28  ;;  %v3908_v28 = vld [vmem:[%s6557_s7 + $0x308] sm:$0xf] }
 0x21a   :  { %v1670_v43 = vmul.f32 0.25, %v4381_v38 }
 0x21b   :  { %2616 = vmatpush.bf16.msrb.mxu2 %v3529_v29  ;;  %v4333_v29 = vld [vmem:[%s6557_s7 + $0x314] sm:$0xf0] }
 0x21c   :  { %v6380_v46 = vpack.c.bf16 %v1670_v43, %v1670_v43  ;;  %2625 = vmatpush.bf16.msrb.mxu3 %v3721_v32  ;;  %v4359_v32 = vld [vmem:[%s6557_s7 + $0x3ec] sm:$0xf]  ;;  %v3909_v35 = vor.u32 %v4333_v29, %v3908_v28 }
 0x21d   :  { %2590 = vmatpush.bf16.msrb.mxu0 %v3781_v44  ;;  %v4025_v38 = vor.u32 %v4359_v32, %v4022_v33  ;;  %v4351_v43 = vld [vmem:[%s6557_s7 + $0x3ac] sm:$0xf]  ;;  %v3990_v44 = vld [vmem:[%s6557_s7 + $0x3b8] sm:$0xf0] }
 0x21e   :  { %2500 = vmatmul.bf16.vlgmr.msrb.gmra.mxu1 %v6380_v46  ;;  %2617 = vmatmul.bf16.vlgmr.msrb.gmra.mxu2 %v6091_v52  ;;  %v3670_v52 = vld [vmem:[%s6557_s7 + $0x138] sm:$0xf0] }
 0x21f   :  { %2596 = vmatpush.bf16.msrb.mxu1 %v4021_v45  ;;  %v3673_v62 = vor.u32 %v4271_v59, %v3670_v52  ;;  %v3993_v45 = vor.u32 %v4351_v43, %v3990_v44  ;;  %v3913_v59 = vor.u32 %v4331_v57, %v3910_v58 }
 0x220   :  { %2626 = vmatpush.bf16.msrb.mxu3 %v3705_v47  ;;  %2591 = vmatmul.bf16.vlgmr.msrb.gmra.mxu0 %v6243_v25  ;;  %v4347_v47 = vld [vmem:[%s6557_s7 + $0x38c] sm:$0xf] }
 0x221   :  { %2635 = vmatpush.bf16.msra.mxu0 %v3897_v19  ;;  %v3974_v19 = vld [vmem:[%s6557_s7 + $0x398] sm:$0xf0] }
 0x222   :  { %v3977_v48 = vor.u32 %v4347_v47, %v3974_v19 }
 0x223   :  { %2597 = vmatpush.bf16.msrb.mxu1 %v4005_v54  ;;  %v4335_v54 = vld [vmem:[%s6557_s7 + $0x32c] sm:$0xf] }
 0x224   :  { %2627 = vmatpush.bf16.msrb.mxu3 %v3689_v55  ;;  %v3926_v55 = vld [vmem:[%s6557_s7 + $0x338] sm:$0xf0] }
 0x225   :  { %2636 = vmatpush.bf16.msra.mxu0 %v3881_v56  ;;  %v3929_v56 = vor.u32 %v4335_v54, %v3926_v55 }
 0x227   :  { %2598 = vmatpush.bf16.msrb.mxu1 %v3989_v37 }
 0x228   :  { %2628 = vmatpush.bf16.msrb.mxu3 %v3673_v62 }
 0x229   :  { %2637 = vmatpush.bf16.msra.mxu0 %v3865_v63 }
 0x22b   :  { %2599 = vmatpush.bf16.msrb.mxu1 %v3973_v7  ;;  %v1803_v7 = vld [vmem:[%s6559_s8] sm:$0xf] }
 0x22c   :  { %2629 = vmatpush.bf16.msrb.mxu3 %v3657_v8  ;;  %v1807_v8 = vperm.slane %v1803_v7, 2  ;;  %v1805_v16 = vperm.slane %v1803_v7, 0  ;;  %v1806_v17 = vperm.slane %v1803_v7, 1 }
 0x22d   :  { %2638 = vmatpush.bf16.msra.mxu0 %v3849_v9 }
 0x22e   :  { %2552 = vmatmul.bf16.vlgmr.msra.gmra.mxu1 %v6380_v46 }
 0x22f   :  { %2600 = vmatpush.bf16.msrb.mxu1 %v3957_v1  ;;  %2630 = vmatmul.bf16.vlgmr.msrb.gmra.mxu3 %v6155_v34  ;;  %v3925_v34 = vor.u32 %v4337_v22, %v3924_v21 }
 0x231   :  { %2639 = vmatpush.bf16.msra.mxu0 %v3833_v14 }
 0x233   :  { %2601 = vmatpush.bf16.msrb.mxu1 %v3941_v24 }
 0x235   :  { %2640 = vmatpush.bf16.msra.mxu0 %v3817_v20 }
 0x237   :  { %2602 = vmatpush.bf16.msrb.mxu1 %v3925_v34 }
 0x239   :  { %2641 = vmatpush.bf16.msra.mxu0 %v3801_v27 }
 0x23b   :  { %2603 = vmatpush.bf16.msrb.mxu1 %v3909_v35 }
 0x23d   :  { %2642 = vmatpush.bf16.msra.mxu0 %v3785_v36 }
 0x23e   :  { %2604 = vmatmul.bf16.vlgmr.msrb.gmra.mxu1 %v6380_v46 }
 0x23f   :  { %2648 = vmatpush.bf16.msra.mxu1 %v4025_v38 }
 0x240   :  { %2643 = vmatmul.bf16.vlgmr.msra.gmra.mxu0 %v6243_v25  ;;  %v3958_v25 = vld [vmem:[%s6557_s7 + $0x378] sm:$0xf0] }
 0x241   :  { %v3961_v49 = vor.u32 %v4343_v41, %v3958_v25 }
 0x243   :  { %2649 = vmatpush.bf16.msra.mxu1 %v4009_v42 }
 0x247   :  { %2650 = vmatpush.bf16.msra.mxu1 %v3993_v45  ;;  %v1808_v45 = vperm.slane %v1803_v7, 3 }
 0x24b   :  { %2651 = vmatpush.bf16.msra.mxu1 %v3977_v48 }
 0x24f   :  { %2652 = vmatpush.bf16.msra.mxu1 %v3961_v49 }
 0x253   :  { %2653 = vmatpush.bf16.msra.mxu1 %v3945_v53 }
 0x257   :  { %2654 = vmatpush.bf16.msra.mxu1 %v3929_v56 }
 0x25b   :  { %2655 = vmatpush.bf16.msra.mxu1 %v3913_v59 }
 0x25e   :  { %2656 = vmatmul.bf16.vlgmr.msra.gmra.mxu1 %v6380_v46 }
 0x261   :  { %v2462_v52 = vpop.f32.mrf.mxu2 }
 0x262   :  { %v2463_v24 = vadd.f32 %v2462_v52, %v1805_v16 }
 0x269   :  { %v2464_v60 = vpop.f32.mrf.mxu2 }
 0x271   :  { %v2475_v61 = vpop.f32.mrf.mxu3  ;;  %v2514_v37 = vpop.f32.mrf.mxu2 }
 0x272   :  { %v2515_v20 = vadd.f32 %v2514_v37, %v1806_v17  ;;  %v2476_v22 = vadd.f32 %v2475_v61, %v2463_v24 }
 0x279   :  { %v2477_v62 = vpop.f32.mrf.mxu3  ;;  %v2516_v63 = vpop.f32.mrf.mxu2 }
 0x27c   :  { %v2488_v0 = vpop.f32.mrf.mxu0 }
 0x27d   :  { %v2489_v34 = vadd.f32 %v2488_v0, %v2476_v22 }
 0x281   :  { %v2527_v2 = vpop.f32.mrf.mxu3  ;;  %v2566_v3 = vpop.f32.mrf.mxu2 }
 0x282   :  { %v2567_v10 = vadd.f32 %v2566_v3, %v1807_v8  ;;  %v2528_v23 = vadd.f32 %v2527_v2, %v2515_v20 }
 0x284   :  { %v2490_v4 = vpop.f32.mrf.mxu0 }
 0x289   :  { %v2529_v5 = vpop.f32.mrf.mxu3  ;;  %v2568_v6 = vpop.f32.mrf.mxu2 }
 0x28d   :  { %v2540_v9 = vpop.f32.mrf.mxu0 }
 0x28e   :  { %v2541_v27 = vadd.f32 %v2540_v9, %v2528_v23 }
 0x292   :  { %v2579_v46 = vpop.f32.mrf.mxu3 }
 0x293   :  { %v2580_v11 = vadd.f32 %v2579_v46, %v2567_v10 }
 0x295   :  { %v2542_v12 = vpop.f32.mrf.mxu0 }
 0x29a   :  { %v2581_v1 = vpop.f32.mrf.mxu3 }
 0x29b   :  { %v2501_v13 = vpop.f32.mrf.mxu1 }
 0x29c   :  { %v2502_v29 = vadd.f32 %v2501_v13, %v2489_v34 }
 0x29d   :  { %v2592_v14 = vpop.f32.mrf.mxu0 }
 0x29e   :  { %v2593_v48 = vadd.f32 %v2592_v14, %v2580_v11 }
 0x2a1   :  { %v2618_v15 = vpop.f32.mrf.mxu2 }
 0x2a2   :  { %v2619_v47 = vadd.f32 %v2618_v15, %v1808_v45 }
 0x2a3   :  { %v2503_v18 = vpop.f32.mrf.mxu1 }
 0x2a5   :  { %v2594_v21 = vpop.f32.mrf.mxu0 }
 0x2a9   :  { %v2620_v26 = vpop.f32.mrf.mxu2 }
 0x2ab   :  { %v2553_v28 = vpop.f32.mrf.mxu1 }
 0x2ac   :  { %v2554_v30 = vadd.f32 %v2553_v28, %v2541_v27 }
 0x2ae   :  { %4382 = vtanh.f32 %v2554_v30 }
 0x2af   :  { %4384 = vtanh.f32 %v2502_v29 }
 0x2b2   :  { %v2631_v31 = vpop.f32.mrf.mxu3 }
 0x2b3   :  { %v2555_v32 = vpop.f32.mrf.mxu1  ;;  %v2632_v19 = vadd.f32 %v2631_v31, %v2619_v47 }
 0x2b4   :  { %v4383_v33 = vpop.eup %4382 }
 0x2b5   :  { %v2669_v35 = vrot.slane %v4383_v33, 4  ;;  %v4385_v36 = vpop.eup %4384 }
 0x2b7   :  { %v2672_v38 = vsel %vm2671_vm0, %v4385_v36, %v2669_v35 }
 0x2b8   :  { %2676 = vst [vmem:[%s6560_s9] sm:$0x77] %v2672_v38 }
 0x2ba   :  { %v2633_v39 = vpop.f32.mrf.mxu3 }
 0x2bb   :  { %v2605_v40 = vpop.f32.mrf.mxu1 }
 0x2bc   :  { %v2606_v49 = vadd.f32 %v2605_v40, %v2593_v48 }
 0x2bd   :  { %v2644_v42 = vpop.f32.mrf.mxu0 }
 0x2be   :  { %v2645_v41 = vadd.f32 %v2644_v42, %v2632_v19 }
 0x2c3   :  { %v2607_v43 = vpop.f32.mrf.mxu1 }
 0x2c5   :  { %v2646_v44 = vpop.f32.mrf.mxu0 }
 0x2db   :  { %v2657_v25 = vpop.f32.mrf.mxu1 }
 0x2dc   :  { %v2658_v50 = vadd.f32 %v2657_v25, %v2645_v41 }
 0x2de   :  { %4386 = vtanh.f32 %v2658_v50 }
 0x2df   :  { %4388 = vtanh.f32 %v2606_v49 }
 0x2e3   :  { %v2659_v51 = vpop.f32.mrf.mxu1 }
 0x2e4   :  { %v4387_v53 = vpop.eup %4386 }
 0x2e5   :  { %v2670_v54 = vrot.slane %v4387_v53, 4  ;;  %v4389_v55 = vpop.eup %4388 }
 0x2e7   :  { %v2673_v56 = vsel %vm2671_vm0, %v4389_v55, %v2670_v54 }
 0x2e8   :  { %2677 = vst [vmem:[%s6560_s9 + $0x8] sm:$0x77] %v2673_v56 }

// kernel: reverse.16
= control target key start
LH: loop header
LB: loop body
LE: loop exit
PB: predicated region body
PF: predicated region fallthrough
CT: control target
= control target key end

     0   :  { %v2_v0 = vlaneseq  ;;  %s293_s0 = inlined_call_operand.vmem [shape: f32[1,256], index: 0, kind: input, shape index: {}]   ;;  %s294_s1 = inlined_call_operand.vmem [shape: f32[1,256], index: 1, kind: output, shape index: {}]  }
   0x2   :  { %v3_v1 = vsub.s32 127, %v2_v0 }
   0x4   :  { %4 = vset.pattern.permute.xlu0 %v3_v1 }
   0x5   :  { %s253_s6 = smov 0   ;;  %s255_s7 = smov 0  }
   0x6   :  { %s257_s8 = smov 0  }
   0x7 LB: > { %s189_s9 = sadd.s32 4294967295, %s241_s8   ;;  %s19_s10 = sadd.s32 1, %s237_s7  ;;  %s241_s8 = sphi %s257_s8, %s10_s8   ;;  %s237_s7 = sphi %s255_s7, %s296_s7   ;;  %s233_s6 = sphi %s253_s6, %s295_s6  }
   0x8   : > { %p20_p0 = scmp.ge.s32.totalorder %s19_s10, 2  ;;  %p191_p1 = scmp.ge.s32.totalorder %s241_s8, 2 }
   0x9   : > { %s38_s11 = sand.u32 (!%p191_p1), 1, %s241_s8   ;;  %s40_s12 = ssub.s32 (!%p191_p1), 1, %s237_s7 }
   0xa   : > { %s298_s10 = smov (%p20_p0, %s19_s10), 0  ;;  %36 = sbr.rel (%p191_p1) target bundleno = 17 (0x11), region = 16 }
   0xb   : > { %s43_s15 = scalar_lea.vmem (!%p191_p1), %s293_s0, %s40_s12  ;;  %s39_s16 = scalar_lea.vmem (!%p191_p1), [#allocation1], %s38_s11 }
   0xf   : > { %v60_v2 = vld [vmem:[%s43_s15] sm:$0x1] }
  0x10   : > { %61 = vst [vmem:[%s39_s16] sm:$0x1] %v60_v2 }
  0x11 PF: > { %p192_p2 = scmp.ge.s32.totalorder %s241_s8, 1  ;;  %p78_p3 = scmp.lt.s32.totalorder %s241_s8, 3 }
  0x13   : > { %p79_p4 = pnand %p192_p2, %p78_p3 }
  0x14   : > { %s88_s17 = sand.u32 (!%p79_p4), 1, %s189_s9   ;;  %s113_s22 = scalar_lea.vmem (!%p79_p4), %s294_s1, %s233_s6 }
  0x15   : > { %82 = sbr.rel (%p79_p4) target bundleno = 167 (0xa7), region = 50  ;;  %s89_s18 = scalar_lea.vmem (!%p79_p4), [#allocation1], %s88_s17 }
  0x16   : > { %s92_s19 = scalar_lea.vmem (!%p79_p4), [#allocation3], %s88_s17 }
  0x1a   : > { %v95_v3 = vld [vmem:[%s89_s18] sm:$0x1] }
  0x1b   : > { %96 = vst [vmem:[#allocation0] sm:$0x1] %v95_v3 }
  0x22   : > { %v98_v4 = vld [vmem:[#allocation0] sm:$0xff] }
  0x23   : > { %99 = vperm.xlu0 %4, %v98_v4  }
  0x95   : > { %v100_v5 = vpop.permute.xlu0 %99 }
  0x96   : > { %101 = vst [vmem:[#allocation2] sm:$0xff] %v100_v5 }
  0x9d   : > { %v104_v6 = vld [vmem:[#allocation2] sm:$0x1] }
  0x9e   : > { %107 = vst [vmem:[%s92_s19] sm:$0x1] %v104_v6 }
  0xa5   : > { %v130_v7 = vld [vmem:[%s92_s19] sm:$0x1] }
  0xa6   : > { %131 = vst [vmem:[%s113_s22] sm:$0x1] %v130_v7 }
  0xa7 PF: > { %s10_s8 = sadd.s32 1, %s241_s8   ;;  %s295_s6 = smov %s237_s7 }
  0xa8   : > { %p7_p5 = scmp.ge.s32.totalorder %s10_s8, 4   ;;  %s296_s7 = smov %s298_s10 }
  0xaa   :  { %9 = sbr.rel (!%p7_p5) target bundleno = 7 (0x7), region = 110 }

// kernel: mul.26
= control target key start
LH: loop header
LB: loop body
LE: loop exit
PB: predicated region body
PF: predicated region fallthrough
CT: control target
= control target key end

     0   :  { %s100_s0 = inlined_call_operand.vmem [shape: f32[1,512], index: 0, kind: input, shape index: {}]   ;;  %s101_s1 = inlined_call_operand.vmem [shape: f32[1,512], index: 1, kind: input, shape index: {}]   ;;  %s102_s2 = inlined_call_operand.vmem [shape: f32[1,512], index: 2, kind: output, shape index: {}]  }
   0x1   :  { %v3_v0 = vld [vmem:[%s100_s0] sm:$0x1]  ;;  %v40_v2 = vld [vmem:[%s100_s0 + $0x1] sm:$0x1]  ;;  %v43_v5 = vld [vmem:[%s100_s0 + $0x2] sm:$0x1] }
   0x2   :  { %v4_v1 = vld [vmem:[%s101_s1] sm:$0x1]  ;;  %v41_v4 = vld [vmem:[%s101_s1 + $0x1] sm:$0x1]  ;;  %v44_v6 = vld [vmem:[%s101_s1 + $0x2] sm:$0x1] }
   0x3   :  { %v7_v3 = vmul.f32 %v4_v1, %v3_v0  ;;  %v16_v7 = vmul.f32 %v41_v4, %v40_v2  ;;  %v26_v8 = vmul.f32 %v44_v6, %v43_v5  ;;  %v46_v9 = vld [vmem:[%s100_s0 + $0x3] sm:$0x1] }
   0x4   :  { %v47_v10 = vld [vmem:[%s101_s1 + $0x3] sm:$0x1] }
   0x5   :  { %9 = vst [vmem:[%s102_s2] sm:$0x1] %v7_v3  ;;  %v36_v11 = vmul.f32 %v47_v10, %v46_v9 }
   0x6   :  { %42 = vst [vmem:[%s102_s2 + $0x1] sm:$0x1] %v16_v7 }
   0x7   :  { %45 = vst [vmem:[%s102_s2 + $0x2] sm:$0x1] %v26_v8 }
   0x8   :  { %48 = vst [vmem:[%s102_s2 + $0x3] sm:$0x1] %v36_v11 }

// kernel: cud_net_forward.13
= control target key start
LH: loop header
LB: loop body
LE: loop exit
PB: predicated region body
PF: predicated region fallthrough
CT: control target
= control target key end

     0   :  { %vm603_vm0 = vcmask 1040384   ;;  %vm605_vm1 = vcmask 1042434   ;;  %vm607_vm2 = vcmask 1041408   ;;  %s1269_s1 = inlined_call_operand.vmem [shape: bf16[512,128], index: 1, kind: input, shape index: {}]   ;;  %s1270_s0 = inlined_call_operand.vmem [shape: bf16[1,512], index: 0, kind: input, shape index: {}]   ;;  %s1271_s3 = inlined_call_operand.vmem [shape: bf16[128,512], index: 3, kind: input, shape index: {}]   ;;  %s1272_s2 = inlined_call_operand.vmem [shape: f32[1,128], index: 2, kind: input, shape index: {}]   ;;  %s1273_s4 = inlined_call_operand.vmem [shape: f32[1,512], index: 4, kind: input, shape index: {}]   ;;  %s1274_s5 = inlined_call_operand.vmem [shape: f32[1,512], index: 5, kind: output, shape index: {}]  }
   0x1   :  { %v882_v0 = vld [vmem:[%s1269_s1 + $0x38] sm:$0xff]  ;;  %v881_v4 = vld [vmem:[%s1269_s1 + $0x30] sm:$0xff]  ;;  %v880_v8 = vld [vmem:[%s1269_s1 + $0x28] sm:$0xff] }
   0x2   :  { %v890_v1 = vld [vmem:[%s1269_s1 + $0x78] sm:$0xff]  ;;  %288 = vmatpush.bf16.msra.mxu0 %v882_v0  ;;  %v889_v5 = vld [vmem:[%s1269_s1 + $0x70] sm:$0xff]  ;;  %v888_v9 = vld [vmem:[%s1269_s1 + $0x68] sm:$0xff] }
   0x3   :  { %v898_v2 = vld [vmem:[%s1269_s1 + $0xb8] sm:$0xff]  ;;  %301 = vmatpush.bf16.msra.mxu1 %v890_v1  ;;  %v897_v6 = vld [vmem:[%s1269_s1 + $0xb0] sm:$0xff]  ;;  %v896_v10 = vld [vmem:[%s1269_s1 + $0xa8] sm:$0xff] }
   0x4   :  { %v906_v3 = vld [vmem:[%s1269_s1 + $0xf8] sm:$0xff]  ;;  %314 = vmatpush.bf16.msra.mxu2 %v898_v2  ;;  %v905_v7 = vld [vmem:[%s1269_s1 + $0xf0] sm:$0xff]  ;;  %v904_v11 = vld [vmem:[%s1269_s1 + $0xe8] sm:$0xff] }
   0x5   :  { %327 = vmatpush.bf16.msra.mxu3 %v906_v3  ;;  %v879_v12 = vld [vmem:[%s1269_s1 + $0x20] sm:$0xff]  ;;  %v878_v17 = vld [vmem:[%s1269_s1 + $0x18] sm:$0xff]  ;;  %v877_v21 = vld [vmem:[%s1269_s1 + $0x10] sm:$0xff] }
   0x6   :  { %289 = vmatpush.bf16.msra.mxu0 %v881_v4  ;;  %v887_v13 = vld [vmem:[%s1269_s1 + $0x60] sm:$0xff]  ;;  %v886_v18 = vld [vmem:[%s1269_s1 + $0x58] sm:$0xff]  ;;  %v885_v22 = vld [vmem:[%s1269_s1 + $0x50] sm:$0xff] }
   0x7   :  { %302 = vmatpush.bf16.msra.mxu1 %v889_v5  ;;  %v20_v14 = vld [vmem:[%s1270_s0] sm:$0xf]  ;;  %v894_v19 = vld [vmem:[%s1269_s1 + $0x98] sm:$0xff]  ;;  %v893_v23 = vld [vmem:[%s1269_s1 + $0x90] sm:$0xff] }
   0x8   :  { %315 = vmatpush.bf16.msra.mxu2 %v897_v6  ;;  %v895_v15 = vld [vmem:[%s1269_s1 + $0xa0] sm:$0xff]  ;;  %87 = vst [vmem:[#allocation1] ss:$9 sm:$0xff] %v20_v14  ;;  %v902_v20 = vld [vmem:[%s1269_s1 + $0xd8] sm:$0xff]  ;;  %v901_v24 = vld [vmem:[%s1269_s1 + $0xd0] sm:$0xff] }
   0x9   :  { %328 = vmatpush.bf16.msra.mxu3 %v905_v7  ;;  %v903_v16 = vld [vmem:[%s1269_s1 + $0xe0] sm:$0xff]  ;;  %v876_v25 = vld [vmem:[%s1269_s1 + $0x8] sm:$0xff]  ;;  %v937_v30 = vld [vmem:[%s1271_s3 + $0xec] sm:$0xf0] }
   0xa   :  { %290 = vmatpush.bf16.msra.mxu0 %v880_v8  ;;  %v884_v26 = vld [vmem:[%s1269_s1 + $0x48] sm:$0xff]  ;;  %v861_v29 = vld [vmem:[%s1271_s3 + $0xe0] sm:$0xf]  ;;  %v935_v31 = vld [vmem:[%s1271_s3 + $0xe4] sm:$0xf] }
   0xb   :  { %303 = vmatpush.bf16.msra.mxu1 %v888_v9  ;;  %v892_v27 = vld [vmem:[%s1269_s1 + $0x88] sm:$0xff]  ;;  %v863_v32 = vld [vmem:[%s1271_s3 + $0xf0] sm:$0xf0]  ;;  %v875_v33 = vld [vmem:[%s1269_s1] sm:$0xff]  ;;  %v862_v39 = vor.u32 %v937_v30, %v861_v29 }
   0xc   :  { %316 = vmatpush.bf16.msra.mxu2 %v896_v10  ;;  %v900_v28 = vld [vmem:[%s1269_s1 + $0xc8] sm:$0xff]  ;;  %v883_v34 = vld [vmem:[%s1269_s1 + $0x40] sm:$0xff]  ;;  %v938_v38 = vld [vmem:[%s1271_s3 + $0xf4] sm:$0xf0]  ;;  %v866_v40 = vor.u32 %v935_v31, %v863_v32 }
   0xd   :  { %329 = vmatpush.bf16.msra.mxu3 %v904_v11  ;;  %v891_v35 = vld [vmem:[%s1269_s1 + $0x80] sm:$0xff]  ;;  %v869_v37 = vld [vmem:[%s1271_s3 + $0xe8] sm:$0xf]  ;;  %v936_v41 = vld [vmem:[%s1271_s3 + $0xec] sm:$0xf] }
   0xe   :  { %291 = vmatpush.bf16.msra.mxu0 %v879_v12  ;;  %v899_v36 = vld [vmem:[%s1269_s1 + $0xc0] sm:$0xff]  ;;  %v871_v42 = vld [vmem:[%s1271_s3 + $0xf8] sm:$0xf0]  ;;  %v933_v44 = vld [vmem:[%s1271_s3 + $0xcc] sm:$0xf0]  ;;  %v870_v52 = vor.u32 %v938_v38, %v869_v37 }
   0xf   :  { %304 = vmatpush.bf16.msra.mxu1 %v887_v13  ;;  %v845_v43 = vld [vmem:[%s1271_s3 + $0xc0] sm:$0xf]  ;;  %v931_v45 = vld [vmem:[%s1271_s3 + $0xc4] sm:$0xf]  ;;  %v847_v46 = vld [vmem:[%s1271_s3 + $0xd0] sm:$0xf0]  ;;  %v874_v53 = vor.u32 %v936_v41, %v871_v42 }
  0x10   :  { %317 = vmatpush.bf16.msra.mxu2 %v895_v15  ;;  %v88_v47 = vld [vmem:[#allocation1] sm:$0xff]  ;;  %v89_v48 = vld [vmem:[#allocation1 + $0x9] sm:$0xff]  ;;  %v90_v50 = vld [vmem:[#allocation1 + $0x12] sm:$0xff]  ;;  %v846_v55 = vor.u32 %v933_v44, %v845_v43  ;;  %v850_v56 = vor.u32 %v931_v45, %v847_v46 }
  0x11   :  { %330 = vmatpush.bf16.msra.mxu3 %v903_v16  ;;  %v853_v49 = vld [vmem:[%s1271_s3 + $0xc8] sm:$0xf]  ;;  %v91_v51 = vld [vmem:[#allocation1 + $0x1b] sm:$0xff]  ;;  %v932_v57 = vld [vmem:[%s1271_s3 + $0xcc] sm:$0xf] }
  0x12   :  { %292 = vmatpush.bf16.msra.mxu0 %v878_v17  ;;  %v934_v54 = vld [vmem:[%s1271_s3 + $0xd4] sm:$0xf0]  ;;  %v855_v58 = vld [vmem:[%s1271_s3 + $0xd8] sm:$0xf0]  ;;  %v829_v59 = vld [vmem:[%s1271_s3 + $0xa0] sm:$0xf] }
  0x13   :  { %305 = vmatpush.bf16.msra.mxu1 %v886_v18  ;;  %v929_v60 = vld [vmem:[%s1271_s3 + $0xac] sm:$0xf0]  ;;  %v927_v61 = vld [vmem:[%s1271_s3 + $0xa4] sm:$0xf]  ;;  %v831_v62 = vld [vmem:[%s1271_s3 + $0xb0] sm:$0xf0]  ;;  %v854_v63 = vor.u32 %v934_v54, %v853_v49  ;;  %v858_v0 = vor.u32 %v932_v57, %v855_v58 }
  0x14   :  { %318 = vmatpush.bf16.msra.mxu2 %v894_v19  ;;  %v837_v1 = vld [vmem:[%s1271_s3 + $0xa8] sm:$0xf]  ;;  %v930_v2 = vld [vmem:[%s1271_s3 + $0xb4] sm:$0xf0]  ;;  %v830_v3 = vor.u32 %v929_v60, %v829_v59  ;;  %v834_v4 = vor.u32 %v927_v61, %v831_v62  ;;  %v928_v5 = vld [vmem:[%s1271_s3 + $0xac] sm:$0xf] }
  0x15   :  { %331 = vmatpush.bf16.msra.mxu3 %v902_v20  ;;  %v839_v6 = vld [vmem:[%s1271_s3 + $0xb8] sm:$0xf0]  ;;  %v813_v7 = vld [vmem:[%s1271_s3 + $0x80] sm:$0xf]  ;;  %v925_v8 = vld [vmem:[%s1271_s3 + $0x8c] sm:$0xf0]  ;;  %v838_v11 = vor.u32 %v930_v2, %v837_v1 }
  0x16   :  { %293 = vmatpush.bf16.msra.mxu0 %v877_v21  ;;  %v923_v9 = vld [vmem:[%s1271_s3 + $0x84] sm:$0xf]  ;;  %v815_v10 = vld [vmem:[%s1271_s3 + $0x90] sm:$0xf0]  ;;  %v842_v12 = vor.u32 %v928_v5, %v839_v6  ;;  %v821_v13 = vld [vmem:[%s1271_s3 + $0x88] sm:$0xf]  ;;  %v814_v14 = vor.u32 %v925_v8, %v813_v7 }
  0x17   :  { %306 = vmatpush.bf16.msra.mxu1 %v885_v22  ;;  %v818_v15 = vor.u32 %v923_v9, %v815_v10  ;;  %v926_v16 = vld [vmem:[%s1271_s3 + $0x94] sm:$0xf0]  ;;  %v924_v17 = vld [vmem:[%s1271_s3 + $0x8c] sm:$0xf]  ;;  %v823_v18 = vld [vmem:[%s1271_s3 + $0x98] sm:$0xf0] }
  0x18   :  { %319 = vmatpush.bf16.msra.mxu2 %v893_v23  ;;  %v822_v19 = vor.u32 %v926_v16, %v821_v13  ;;  %v826_v20 = vor.u32 %v924_v17, %v823_v18  ;;  %v797_v21 = vld [vmem:[%s1271_s3 + $0x60] sm:$0xf]  ;;  %v921_v22 = vld [vmem:[%s1271_s3 + $0x6c] sm:$0xf0]  ;;  %v919_v23 = vld [vmem:[%s1271_s3 + $0x64] sm:$0xf] }
  0x19   :  { %332 = vmatpush.bf16.msra.mxu3 %v901_v24  ;;  %v798_v24 = vor.u32 %v921_v22, %v797_v21  ;;  %v920_v30 = vld [vmem:[%s1271_s3 + $0x6c] sm:$0xf]  ;;  %v807_v31 = vld [vmem:[%s1271_s3 + $0x78] sm:$0xf0]  ;;  %v783_v37 = vld [vmem:[%s1271_s3 + $0x50] sm:$0xf0] }
  0x1a   :  { %294 = vmatpush.bf16.msra.mxu0 %v876_v25  ;;  %v799_v25 = vld [vmem:[%s1271_s3 + $0x70] sm:$0xf0]  ;;  %v810_v32 = vor.u32 %v920_v30, %v807_v31  ;;  %v789_v38 = vld [vmem:[%s1271_s3 + $0x48] sm:$0xf]  ;;  %v916_v42 = vld [vmem:[%s1271_s3 + $0x4c] sm:$0xf]  ;;  %v610_v30 = vlaneseq }
  0x1b   :  { %307 = vmatpush.bf16.msra.mxu1 %v884_v26  ;;  %v805_v26 = vld [vmem:[%s1271_s3 + $0x68] sm:$0xf]  ;;  %v791_v43 = vld [vmem:[%s1271_s3 + $0x58] sm:$0xf0]  ;;  %v765_v45 = vld [vmem:[%s1271_s3 + $0x20] sm:$0xf] }
  0x1c   :  { %320 = vmatpush.bf16.msra.mxu2 %v892_v27  ;;  %v922_v27 = vld [vmem:[%s1271_s3 + $0x74] sm:$0xf0]  ;;  %v794_v44 = vor.u32 %v916_v42, %v791_v43  ;;  %v913_v46 = vld [vmem:[%s1271_s3 + $0x2c] sm:$0xf0]  ;;  %v767_v49 = vld [vmem:[%s1271_s3 + $0x30] sm:$0xf0] }
  0x1d   :  { %333 = vmatpush.bf16.msra.mxu3 %v900_v28  ;;  %v802_v28 = vor.u32 %v919_v23, %v799_v25  ;;  %v806_v29 = vor.u32 %v922_v27, %v805_v26  ;;  %v912_v54 = vld [vmem:[%s1271_s3 + $0x2c] sm:$0xf]  ;;  %v749_v57 = vld [vmem:[%s1271_s3] sm:$0xf]  ;;  %v909_v58 = vld [vmem:[%s1271_s3 + $0xc] sm:$0xf0] }
  0x1e   :  { %295 = vmatpush.bf16.msra.mxu0 %v875_v33  ;;  %v781_v33 = vld [vmem:[%s1271_s3 + $0x40] sm:$0xf]  ;;  %v907_v59 = vld [vmem:[%s1271_s3 + $0x4] sm:$0xf]  ;;  %v750_v60 = vor.u32 %v909_v58, %v749_v57  ;;  %v751_v61 = vld [vmem:[%s1271_s3 + $0x10] sm:$0xf0] }
  0x1f   :  { %308 = vmatpush.bf16.msra.mxu1 %v883_v34  ;;  %v917_v34 = vld [vmem:[%s1271_s3 + $0x4c] sm:$0xf0]  ;;  %v757_v62 = vld [vmem:[%s1271_s3 + $0x8] sm:$0xf]  ;;  %v908_v2 = vld [vmem:[%s1271_s3 + $0xc] sm:$0xf] }
  0x20   :  { %321 = vmatpush.bf16.msra.mxu2 %v891_v35  ;;  %v915_v35 = vld [vmem:[%s1271_s3 + $0x44] sm:$0xf]  ;;  %v85_v5 = vld [vmem:[%s1272_s2] sm:$0x1]  ;;  %vm612_vm3 = vcmp.lt.s32.totalorder %v610_v30, 512 }
  0x21   :  { %334 = vmatpush.bf16.msra.mxu3 %v899_v36  ;;  %296 = vmatmul.bf16.vlgmr.msra.gmra.mxu0 %v88_v47  ;;  %v782_v36 = vor.u32 %v917_v34, %v781_v33  ;;  %v911_v47 = vld [vmem:[%s1271_s3 + $0x24] sm:$0xf] }
  0x22   :  { %544 = vmatpush.bf16.msrb.mxu0 %v862_v39  ;;  %309 = vmatmul.bf16.vlgmr.msra.gmra.mxu1 %v89_v48  ;;  %v918_v39 = vld [vmem:[%s1271_s3 + $0x54] sm:$0xf0]  ;;  %v766_v48 = vor.u32 %v913_v46, %v765_v45 }
  0x23   :  { %557 = vmatpush.bf16.msrb.mxu1 %v866_v40  ;;  %322 = vmatmul.bf16.vlgmr.msra.gmra.mxu2 %v90_v50  ;;  %v786_v40 = vor.u32 %v915_v35, %v783_v37  ;;  %v790_v41 = vor.u32 %v918_v39, %v789_v38  ;;  %v773_v50 = vld [vmem:[%s1271_s3 + $0x28] sm:$0xf] }
  0x24   :  { %335 = vmatmul.bf16.vlgmr.msra.gmra.mxu3 %v91_v51  ;;  %570 = vmatpush.bf16.msrb.mxu2 %v870_v52  ;;  %v914_v51 = vld [vmem:[%s1271_s3 + $0x34] sm:$0xf0]  ;;  %v770_v52 = vor.u32 %v911_v47, %v767_v49 }
  0x25   :  { %583 = vmatpush.bf16.msrb.mxu3 %v874_v53  ;;  %v774_v53 = vor.u32 %v914_v51, %v773_v50 }
  0x26   :  { %545 = vmatpush.bf16.msrb.mxu0 %v846_v55  ;;  %v775_v55 = vld [vmem:[%s1271_s3 + $0x38] sm:$0xf0] }
  0x27   :  { %558 = vmatpush.bf16.msrb.mxu1 %v850_v56  ;;  %v778_v56 = vor.u32 %v912_v54, %v775_v55 }
  0x28   :  { %571 = vmatpush.bf16.msrb.mxu2 %v854_v63  ;;  %v910_v63 = vld [vmem:[%s1271_s3 + $0x14] sm:$0xf0] }
  0x29   :  { %584 = vmatpush.bf16.msrb.mxu3 %v858_v0  ;;  %v754_v0 = vor.u32 %v907_v59, %v751_v61  ;;  %v758_v1 = vor.u32 %v910_v63, %v757_v62 }
  0x2a   :  { %546 = vmatpush.bf16.msrb.mxu0 %v830_v3  ;;  %v759_v3 = vld [vmem:[%s1271_s3 + $0x18] sm:$0xf0] }
  0x2b   :  { %559 = vmatpush.bf16.msrb.mxu1 %v834_v4  ;;  %v762_v4 = vor.u32 %v908_v2, %v759_v3 }
  0x2c   :  { %572 = vmatpush.bf16.msrb.mxu2 %v838_v11 }
  0x2d   :  { %585 = vmatpush.bf16.msrb.mxu3 %v842_v12 }
  0x2e   :  { %547 = vmatpush.bf16.msrb.mxu0 %v814_v14 }
  0x2f   :  { %560 = vmatpush.bf16.msrb.mxu1 %v818_v15 }
  0x30   :  { %573 = vmatpush.bf16.msrb.mxu2 %v822_v19 }
  0x31   :  { %586 = vmatpush.bf16.msrb.mxu3 %v826_v20  ;;  %v374_v20 = vld [vmem:[%s1273_s4] sm:$0xf] }
  0x32   :  { %548 = vmatpush.bf16.msrb.mxu0 %v798_v24  ;;  %v537_v22 = vperm.slane %v374_v20, 1  ;;  %v538_v25 = vperm.slane %v374_v20, 2  ;;  %v539_v26 = vperm.slane %v374_v20, 3  ;;  %v536_v27 = vperm.slane %v374_v20, 0 }
  0x33   :  { %561 = vmatpush.bf16.msrb.mxu1 %v802_v28 }
  0x34   :  { %574 = vmatpush.bf16.msrb.mxu2 %v806_v29 }
  0x35   :  { %587 = vmatpush.bf16.msrb.mxu3 %v810_v32 }
  0x36   :  { %549 = vmatpush.bf16.msrb.mxu0 %v782_v36 }
  0x37   :  { %562 = vmatpush.bf16.msrb.mxu1 %v786_v40 }
  0x38   :  { %575 = vmatpush.bf16.msrb.mxu2 %v790_v41 }
  0x39   :  { %588 = vmatpush.bf16.msrb.mxu3 %v794_v44 }
  0x3a   :  { %550 = vmatpush.bf16.msrb.mxu0 %v766_v48 }
  0x3b   :  { %563 = vmatpush.bf16.msrb.mxu1 %v770_v52 }
  0x3c   :  { %576 = vmatpush.bf16.msrb.mxu2 %v774_v53 }
  0x3d   :  { %589 = vmatpush.bf16.msrb.mxu3 %v778_v56 }
  0x3e   :  { %551 = vmatpush.bf16.msrb.mxu0 %v750_v60 }
  0x3f   :  { %564 = vmatpush.bf16.msrb.mxu1 %v754_v0 }
  0x40   :  { %577 = vmatpush.bf16.msrb.mxu2 %v758_v1 }
  0x41   :  { %590 = vmatpush.bf16.msrb.mxu3 %v762_v4 }
  0x9e   :  { %v297_v6 = vpop.f32.mrf.mxu0 }
  0x9f   :  { %v310_v7 = vpop.f32.mrf.mxu1  ;;  %v298_v8 = vadd.f32 %v297_v6, %v85_v5 }
  0xa1   :  { %v311_v9 = vadd.f32 %v310_v7, %v298_v8 }
  0xa6   :  { %v323_v10 = vpop.f32.mrf.mxu2  ;;  %v299_v13 = vpop.f32.mrf.mxu0 }
  0xa7   :  { %v336_v11 = vpop.f32.mrf.mxu3  ;;  %v324_v12 = vadd.f32 %v323_v10, %v311_v9  ;;  %v312_v14 = vpop.f32.mrf.mxu1 }
  0xa9   :  { %v337_v15 = vadd.f32 %v336_v11, %v324_v12 }
  0xab   :  { %v340_v16 = vmax.f32 %v337_v15, 0.0 }
  0xad   :  { %v341_v17 = vpack.c.bf16 %v340_v16, %v340_v16 }
  0xae   :  { %v325_v18 = vpop.f32.mrf.mxu2 }
  0xaf   :  { %v338_v19 = vpop.f32.mrf.mxu3  ;;  %552 = vmatmul.bf16.vlgmr.msrb.gmra.mxu0 %v341_v17  ;;  %565 = vmatmul.bf16.vlgmr.msrb.gmra.mxu1 %v341_v17 }
  0xb0   :  { %578 = vmatmul.bf16.vlgmr.msrb.gmra.mxu2 %v341_v17  ;;  %591 = vmatmul.bf16.vlgmr.msrb.gmra.mxu3 %v341_v17 }
 0x12c   :  { %v553_v21 = vpop.f32.mrf.mxu0  ;;  %v566_v23 = vpop.f32.mrf.mxu1 }
 0x12d   :  { %v567_v24 = vadd.f32 %v566_v23, %v537_v22  ;;  %v554_v36 = vadd.f32 %v553_v21, %v536_v27 }
 0x12f   :  { %v600_v31 = vrot.slane %v567_v24, 7 }
 0x131   :  { %v604_v39 = vsel %vm603_vm0, %v554_v36, %v600_v31 }
 0x133   :  { %v579_v28 = vpop.f32.mrf.mxu2  ;;  %v592_v29 = vpop.f32.mrf.mxu3 }
 0x134   :  { %v580_v32 = vadd.f32 %v579_v28, %v538_v25  ;;  %v593_v33 = vadd.f32 %v592_v29, %v539_v26  ;;  %v555_v34 = vpop.f32.mrf.mxu0  ;;  %v568_v35 = vpop.f32.mrf.mxu1 }
 0x136   :  { %v601_v37 = vrot.slane %v580_v32, 6  ;;  %v602_v38 = vrot.slane %v593_v33, 5 }
 0x138   :  { %v606_v40 = vsel %vm605_vm1, %v601_v37, %v602_v38 }
 0x139   :  { %v608_v41 = vsel %vm607_vm2, %v604_v39, %v606_v40 }
 0x13a   :  { %614 = vst.msk [vmem:[%s1274_s5] sm:$0xf] %vm612_vm3, %v608_v41 }
 0x13b   :  { %v581_v42 = vpop.f32.mrf.mxu2  ;;  %v594_v43 = vpop.f32.mrf.mxu3 }

// kernel: cud_net_forward.14
= control target key start
LH: loop header
LB: loop body
LE: loop exit
PB: predicated region body
PF: predicated region fallthrough
CT: control target
= control target key end

     0   :  { %vm650_vm0 = vcmask 516096   ;;  %s1197_s1 = inlined_call_operand.vmem [shape: bf16[1024,64], index: 1, kind: input, shape index: {}]   ;;  %s1198_s0 = inlined_call_operand.vmem [shape: bf16[1,1024], index: 0, kind: input, shape index: {}]   ;;  %s1199_s2 = inlined_call_operand.vmem [shape: f32[1,64], index: 2, kind: input, shape index: {}]   ;;  %s1200_s3 = inlined_call_operand.vmem [shape: f32[1,64], index: 3, kind: output, shape index: {}]  }
   0x1   :  { %v919_v0 = vld [vmem:[%s1197_s1 + $0x38] sm:$0xff]  ;;  %v918_v4 = vld [vmem:[%s1197_s1 + $0x30] sm:$0xff]  ;;  %v917_v8 = vld [vmem:[%s1197_s1 + $0x28] sm:$0xff] }
   0x2   :  { %v927_v1 = vld [vmem:[%s1197_s1 + $0x78] sm:$0xff]  ;;  %546 = vmatpush.bf16.msra.mxu0 %v919_v0  ;;  %v926_v5 = vld [vmem:[%s1197_s1 + $0x70] sm:$0xff]  ;;  %v925_v9 = vld [vmem:[%s1197_s1 + $0x68] sm:$0xff] }
   0x3   :  { %v935_v2 = vld [vmem:[%s1197_s1 + $0xb8] sm:$0xff]  ;;  %559 = vmatpush.bf16.msra.mxu1 %v927_v1  ;;  %v934_v6 = vld [vmem:[%s1197_s1 + $0xb0] sm:$0xff]  ;;  %v933_v10 = vld [vmem:[%s1197_s1 + $0xa8] sm:$0xff] }
   0x4   :  { %v943_v3 = vld [vmem:[%s1197_s1 + $0xf8] sm:$0xff]  ;;  %572 = vmatpush.bf16.msra.mxu2 %v935_v2  ;;  %v942_v7 = vld [vmem:[%s1197_s1 + $0xf0] sm:$0xff]  ;;  %v941_v11 = vld [vmem:[%s1197_s1 + $0xe8] sm:$0xff] }
   0x5   :  { %585 = vmatpush.bf16.msra.mxu3 %v943_v3  ;;  %v916_v12 = vld [vmem:[%s1197_s1 + $0x20] sm:$0xff]  ;;  %v915_v17 = vld [vmem:[%s1197_s1 + $0x18] sm:$0xff]  ;;  %v914_v21 = vld [vmem:[%s1197_s1 + $0x10] sm:$0xff] }
   0x6   :  { %547 = vmatpush.bf16.msra.mxu0 %v918_v4  ;;  %v924_v13 = vld [vmem:[%s1197_s1 + $0x60] sm:$0xff]  ;;  %v923_v18 = vld [vmem:[%s1197_s1 + $0x58] sm:$0xff]  ;;  %v922_v22 = vld [vmem:[%s1197_s1 + $0x50] sm:$0xff] }
   0x7   :  { %560 = vmatpush.bf16.msra.mxu1 %v926_v5  ;;  %v932_v14 = vld [vmem:[%s1197_s1 + $0xa0] sm:$0xff]  ;;  %v931_v19 = vld [vmem:[%s1197_s1 + $0x98] sm:$0xff]  ;;  %v930_v23 = vld [vmem:[%s1197_s1 + $0x90] sm:$0xff] }
   0x8   :  { %573 = vmatpush.bf16.msra.mxu2 %v934_v6  ;;  %v940_v15 = vld [vmem:[%s1197_s1 + $0xe0] sm:$0xff]  ;;  %v939_v20 = vld [vmem:[%s1197_s1 + $0xd8] sm:$0xff]  ;;  %v938_v24 = vld [vmem:[%s1197_s1 + $0xd0] sm:$0xff] }
   0x9   :  { %586 = vmatpush.bf16.msra.mxu3 %v942_v7  ;;  %v14_v16 = vld [vmem:[%s1198_s0] sm:$0xff]  ;;  %v913_v25 = vld [vmem:[%s1197_s1 + $0x8] sm:$0xff]  ;;  %v951_v33 = vld [vmem:[%s1197_s1 + $0x138] sm:$0xff] }
   0xa   :  { %548 = vmatpush.bf16.msra.mxu0 %v917_v8  ;;  %145 = vst [vmem:[#allocation1] ss:$9 sm:$0xff] %v14_v16  ;;  %v921_v26 = vld [vmem:[%s1197_s1 + $0x48] sm:$0xff]  ;;  %v912_v29 = vld [vmem:[%s1197_s1] sm:$0xff]  ;;  %v959_v34 = vld [vmem:[%s1197_s1 + $0x178] sm:$0xff] }
   0xb   :  { %561 = vmatpush.bf16.msra.mxu1 %v925_v9  ;;  %v929_v27 = vld [vmem:[%s1197_s1 + $0x88] sm:$0xff]  ;;  %v920_v30 = vld [vmem:[%s1197_s1 + $0x40] sm:$0xff]  ;;  %v967_v35 = vld [vmem:[%s1197_s1 + $0x1b8] sm:$0xff] }
   0xc   :  { %574 = vmatpush.bf16.msra.mxu2 %v933_v10  ;;  %v937_v28 = vld [vmem:[%s1197_s1 + $0xc8] sm:$0xff]  ;;  %v928_v31 = vld [vmem:[%s1197_s1 + $0x80] sm:$0xff]  ;;  %v975_v36 = vld [vmem:[%s1197_s1 + $0x1f8] sm:$0xff] }
   0xd   :  { %587 = vmatpush.bf16.msra.mxu3 %v941_v11  ;;  %v936_v32 = vld [vmem:[%s1197_s1 + $0xc0] sm:$0xff]  ;;  %v950_v37 = vld [vmem:[%s1197_s1 + $0x130] sm:$0xff]  ;;  %v949_v45 = vld [vmem:[%s1197_s1 + $0x128] sm:$0xff] }
   0xe   :  { %549 = vmatpush.bf16.msra.mxu0 %v916_v12  ;;  %v958_v40 = vld [vmem:[%s1197_s1 + $0x170] sm:$0xff]  ;;  %v957_v46 = vld [vmem:[%s1197_s1 + $0x168] sm:$0xff]  ;;  %v948_v49 = vld [vmem:[%s1197_s1 + $0x120] sm:$0xff] }
   0xf   :  { %562 = vmatpush.bf16.msra.mxu1 %v924_v13  ;;  %v966_v43 = vld [vmem:[%s1197_s1 + $0x1b0] sm:$0xff]  ;;  %v965_v47 = vld [vmem:[%s1197_s1 + $0x1a8] sm:$0xff]  ;;  %v956_v50 = vld [vmem:[%s1197_s1 + $0x160] sm:$0xff] }
  0x10   :  { %575 = vmatpush.bf16.msra.mxu2 %v932_v14  ;;  %v974_v44 = vld [vmem:[%s1197_s1 + $0x1f0] sm:$0xff]  ;;  %v973_v48 = vld [vmem:[%s1197_s1 + $0x1e8] sm:$0xff]  ;;  %v964_v51 = vld [vmem:[%s1197_s1 + $0x1a0] sm:$0xff] }
  0x11   :  { %588 = vmatpush.bf16.msra.mxu3 %v940_v15  ;;  %v148_v38 = vld [vmem:[#allocation1 + $0x12] sm:$0xff]  ;;  %v149_v39 = vld [vmem:[#allocation1 + $0x1b] sm:$0xff]  ;;  %v147_v42 = vld [vmem:[#allocation1 + $0x9] sm:$0xff] }
  0x12   :  { %550 = vmatpush.bf16.msra.mxu0 %v915_v17  ;;  %v146_v41 = vld [vmem:[#allocation1] sm:$0xff]  ;;  %v947_v53 = vld [vmem:[%s1197_s1 + $0x118] sm:$0xff]  ;;  %v946_v57 = vld [vmem:[%s1197_s1 + $0x110] sm:$0xff] }
  0x13   :  { %563 = vmatpush.bf16.msra.mxu1 %v923_v18  ;;  %v972_v52 = vld [vmem:[%s1197_s1 + $0x1e0] sm:$0xff]  ;;  %v955_v54 = vld [vmem:[%s1197_s1 + $0x158] sm:$0xff]  ;;  %v954_v58 = vld [vmem:[%s1197_s1 + $0x150] sm:$0xff] }
  0x14   :  { %576 = vmatpush.bf16.msra.mxu2 %v931_v19  ;;  %v963_v55 = vld [vmem:[%s1197_s1 + $0x198] sm:$0xff]  ;;  %v962_v59 = vld [vmem:[%s1197_s1 + $0x190] sm:$0xff]  ;;  %v945_v61 = vld [vmem:[%s1197_s1 + $0x108] sm:$0xff] }
  0x15   :  { %589 = vmatpush.bf16.msra.mxu3 %v939_v20  ;;  %v971_v56 = vld [vmem:[%s1197_s1 + $0x1d8] sm:$0xff]  ;;  %v970_v60 = vld [vmem:[%s1197_s1 + $0x1d0] sm:$0xff]  ;;  %v953_v62 = vld [vmem:[%s1197_s1 + $0x148] sm:$0xff] }
  0x16   :  { %551 = vmatpush.bf16.msra.mxu0 %v914_v21  ;;  %v961_v63 = vld [vmem:[%s1197_s1 + $0x188] sm:$0xff]  ;;  %v944_v1 = vld [vmem:[%s1197_s1 + $0x100] sm:$0xff]  ;;  %v152_v7 = vld [vmem:[#allocation1 + $0x36] sm:$0xff] }
  0x17   :  { %564 = vmatpush.bf16.msra.mxu1 %v922_v22  ;;  %v969_v0 = vld [vmem:[%s1197_s1 + $0x1c8] sm:$0xff]  ;;  %v952_v2 = vld [vmem:[%s1197_s1 + $0x140] sm:$0xff] }
  0x18   :  { %577 = vmatpush.bf16.msra.mxu2 %v930_v23  ;;  %v960_v3 = vld [vmem:[%s1197_s1 + $0x180] sm:$0xff]  ;;  %v151_v6 = vld [vmem:[#allocation1 + $0x2d] sm:$0xff] }
  0x19   :  { %590 = vmatpush.bf16.msra.mxu3 %v938_v24  ;;  %v968_v4 = vld [vmem:[%s1197_s1 + $0x1c0] sm:$0xff] }
  0x1a   :  { %552 = vmatpush.bf16.msra.mxu0 %v913_v25  ;;  %v150_v5 = vld [vmem:[#allocation1 + $0x24] sm:$0xff]  ;;  %v143_v15 = vld [vmem:[%s1199_s2] sm:$0x1] }
  0x1b   :  { %565 = vmatpush.bf16.msra.mxu1 %v921_v26  ;;  %v153_v8 = vld [vmem:[#allocation1 + $0x3f] sm:$0xff] }
  0x1c   :  { %578 = vmatpush.bf16.msra.mxu2 %v929_v27 }
  0x1d   :  { %591 = vmatpush.bf16.msra.mxu3 %v937_v28 }
  0x1e   :  { %553 = vmatpush.bf16.msra.mxu0 %v912_v29 }
  0x1f   :  { %566 = vmatpush.bf16.msra.mxu1 %v920_v30 }
  0x20   :  { %579 = vmatpush.bf16.msra.mxu2 %v928_v31 }
  0x21   :  { %592 = vmatpush.bf16.msra.mxu3 %v936_v32  ;;  %554 = vmatmul.bf16.vlgmr.msra.gmra.mxu0 %v146_v41 }
  0x22   :  { %598 = vmatpush.bf16.msrb.mxu0 %v951_v33  ;;  %567 = vmatmul.bf16.vlgmr.msra.gmra.mxu1 %v147_v42 }
  0x23   :  { %611 = vmatpush.bf16.msrb.mxu1 %v959_v34  ;;  %580 = vmatmul.bf16.vlgmr.msra.gmra.mxu2 %v148_v38 }
  0x24   :  { %624 = vmatpush.bf16.msrb.mxu2 %v967_v35  ;;  %593 = vmatmul.bf16.vlgmr.msra.gmra.mxu3 %v149_v39 }
  0x25   :  { %637 = vmatpush.bf16.msrb.mxu3 %v975_v36 }
  0x26   :  { %599 = vmatpush.bf16.msrb.mxu0 %v950_v37 }
  0x27   :  { %612 = vmatpush.bf16.msrb.mxu1 %v958_v40 }
  0x28   :  { %625 = vmatpush.bf16.msrb.mxu2 %v966_v43 }
  0x29   :  { %638 = vmatpush.bf16.msrb.mxu3 %v974_v44 }
  0x2a   :  { %600 = vmatpush.bf16.msrb.mxu0 %v949_v45 }
  0x2b   :  { %613 = vmatpush.bf16.msrb.mxu1 %v957_v46 }
  0x2c   :  { %626 = vmatpush.bf16.msrb.mxu2 %v965_v47 }
  0x2d   :  { %639 = vmatpush.bf16.msrb.mxu3 %v973_v48 }
  0x2e   :  { %601 = vmatpush.bf16.msrb.mxu0 %v948_v49 }
  0x2f   :  { %614 = vmatpush.bf16.msrb.mxu1 %v956_v50 }
  0x30   :  { %627 = vmatpush.bf16.msrb.mxu2 %v964_v51 }
  0x31   :  { %640 = vmatpush.bf16.msrb.mxu3 %v972_v52 }
  0x32   :  { %602 = vmatpush.bf16.msrb.mxu0 %v947_v53 }
  0x33   :  { %615 = vmatpush.bf16.msrb.mxu1 %v955_v54 }
  0x34   :  { %628 = vmatpush.bf16.msrb.mxu2 %v963_v55 }
  0x35   :  { %641 = vmatpush.bf16.msrb.mxu3 %v971_v56 }
  0x36   :  { %603 = vmatpush.bf16.msrb.mxu0 %v946_v57 }
  0x37   :  { %616 = vmatpush.bf16.msrb.mxu1 %v954_v58 }
  0x38   :  { %629 = vmatpush.bf16.msrb.mxu2 %v962_v59 }
  0x39   :  { %642 = vmatpush.bf16.msrb.mxu3 %v970_v60 }
  0x3a   :  { %604 = vmatpush.bf16.msrb.mxu0 %v945_v61 }
  0x3b   :  { %617 = vmatpush.bf16.msrb.mxu1 %v953_v62 }
  0x3c   :  { %630 = vmatpush.bf16.msrb.mxu2 %v961_v63 }
  0x3d   :  { %643 = vmatpush.bf16.msrb.mxu3 %v969_v0 }
  0x3e   :  { %605 = vmatpush.bf16.msrb.mxu0 %v944_v1 }
  0x3f   :  { %618 = vmatpush.bf16.msrb.mxu1 %v952_v2 }
  0x40   :  { %631 = vmatpush.bf16.msrb.mxu2 %v960_v3 }
  0x41   :  { %644 = vmatpush.bf16.msrb.mxu3 %v968_v4  ;;  %606 = vmatmul.bf16.vlgmr.msrb.gmra.mxu0 %v150_v5 }
  0x42   :  { %619 = vmatmul.bf16.vlgmr.msrb.gmra.mxu1 %v151_v6 }
  0x43   :  { %632 = vmatmul.bf16.vlgmr.msrb.gmra.mxu2 %v152_v7 }
  0x44   :  { %645 = vmatmul.bf16.vlgmr.msrb.gmra.mxu3 %v153_v8 }
  0x9e   :  { %v555_v9 = vpop.f32.mrf.mxu0 }
  0x9f   :  { %v568_v10 = vpop.f32.mrf.mxu1  ;;  %v556_v18 = vadd.f32 %v555_v9, %v143_v15 }
  0xa1   :  { %v569_v19 = vadd.f32 %v568_v10, %v556_v18 }
  0xa6   :  { %v581_v11 = vpop.f32.mrf.mxu2  ;;  %v557_v13 = vpop.f32.mrf.mxu0 }
  0xa7   :  { %v594_v12 = vpop.f32.mrf.mxu3  ;;  %v570_v14 = vpop.f32.mrf.mxu1  ;;  %v582_v20 = vadd.f32 %v581_v11, %v569_v19 }
  0xa9   :  { %v595_v21 = vadd.f32 %v594_v12, %v582_v20 }
  0xae   :  { %v583_v16 = vpop.f32.mrf.mxu2 }
  0xaf   :  { %v596_v17 = vpop.f32.mrf.mxu3 }
  0xbe   :  { %v607_v22 = vpop.f32.mrf.mxu0 }
  0xbf   :  { %v620_v23 = vpop.f32.mrf.mxu1  ;;  %v608_v24 = vadd.f32 %v607_v22, %v595_v21 }
  0xc1   :  { %v621_v25 = vadd.f32 %v620_v23, %v608_v24 }
  0xc6   :  { %v633_v26 = vpop.f32.mrf.mxu2  ;;  %v609_v29 = vpop.f32.mrf.mxu0 }
  0xc7   :  { %v646_v27 = vpop.f32.mrf.mxu3  ;;  %v634_v28 = vadd.f32 %v633_v26, %v621_v25  ;;  %v622_v30 = vpop.f32.mrf.mxu1 }
  0xc9   :  { %v647_v31 = vadd.f32 %v646_v27, %v634_v28 }
  0xcb   :  { %651 = vst.msk [vmem:[%s1200_s3] sm:$0x1] %vm650_vm0, %v647_v31 }
  0xce   :  { %v635_v32 = vpop.f32.mrf.mxu2 }
  0xcf   :  { %v648_v33 = vpop.f32.mrf.mxu3 }

// kernel: cud_net_forward.15
= control target key start
LH: loop header
LB: loop body
LE: loop exit
PB: predicated region body
PF: predicated region fallthrough
CT: control target
= control target key end

     0   :  { %v668_v0 = vmov 0   ;;  %vm560_vm0 = vcmask 1043456   ;;  %s1053_s1 = inlined_call_operand.vmem [shape: f32[32,1,1], index: 1, kind: input, shape index: {}]   ;;  %s1054_s2 = inlined_call_operand.vmem [shape: f32[32,4,1], index: 2, kind: input, shape index: {}]   ;;  %s1055_s0 = inlined_call_operand.vmem [shape: f32[4,128], index: 0, kind: input, shape index: {}]   ;;  %s1056_s3 = inlined_call_operand.vmem [shape: f32[4,128], index: 3, kind: output, shape index: {}]  }
   0x1   :  { %635 = vset.pattern.permute.xlu2 %v668_v0  ;;  %634 = vset.pattern.permute.xlu1 %v668_v0  ;;  %v636_v1 = vld [vmem:[%s1053_s1 + $0x4] ss:$0 sm:$0xff]  ;;  %v637_v2 = vld [vmem:[%s1053_s1 + $0x2] ss:$0 sm:$0xff]  ;;  %v638_v3 = vld [vmem:[%s1053_s1] ss:$0 sm:$0xff] }
   0x2   :  { %633 = vset.pattern.permute.xlu0 %v668_v0  ;;  %129 = vperm.xlu2 %635, %v636_v1   ;;  %v639_v4 = vld [vmem:[%s1053_s1 + $0x5] ss:$0 sm:$0xff]  ;;  %v640_v5 = vld [vmem:[%s1053_s1 + $0x3] ss:$0 sm:$0xff]  ;;  %v641_v6 = vld [vmem:[%s1053_s1 + $0x1] ss:$0 sm:$0xff] }
   0x3   :  { %121 = vperm.xlu1 %634, %v637_v2   ;;  %113 = vperm.xlu0 %633, %v638_v3   ;;  %v642_v7 = vld [vmem:[%s1053_s1 + $0x8] ss:$0 sm:$0xff]  ;;  %v643_v8 = vld [vmem:[%s1053_s1 + $0x7] ss:$0 sm:$0xff]  ;;  %v644_v9 = vld [vmem:[%s1053_s1 + $0x6] ss:$0 sm:$0xff] }
   0x4   :  { %v645_v10 = vld [vmem:[%s1053_s1 + $0xb] ss:$0 sm:$0xff]  ;;  %v646_v11 = vld [vmem:[%s1053_s1 + $0xa] ss:$0 sm:$0xff]  ;;  %v647_v12 = vld [vmem:[%s1053_s1 + $0x9] ss:$0 sm:$0xff] }
   0x5   :  { %v648_v13 = vld [vmem:[%s1053_s1 + $0xe] ss:$0 sm:$0xff]  ;;  %v649_v14 = vld [vmem:[%s1053_s1 + $0xd] ss:$0 sm:$0xff]  ;;  %v650_v15 = vld [vmem:[%s1053_s1 + $0xc] ss:$0 sm:$0xff] }
   0x6   :  { %v651_v16 = vld [vmem:[%s1053_s1 + $0x11] ss:$0 sm:$0xff]  ;;  %v652_v17 = vld [vmem:[%s1053_s1 + $0x10] ss:$0 sm:$0xff]  ;;  %v653_v18 = vld [vmem:[%s1053_s1 + $0xf] ss:$0 sm:$0xff] }
   0x7   :  { %v654_v19 = vld [vmem:[%s1053_s1 + $0x14] ss:$0 sm:$0xff]  ;;  %v655_v20 = vld [vmem:[%s1053_s1 + $0x13] ss:$0 sm:$0xff]  ;;  %v656_v21 = vld [vmem:[%s1053_s1 + $0x12] ss:$0 sm:$0xff] }
   0x8   :  { %v657_v22 = vld [vmem:[%s1053_s1 + $0x17] ss:$0 sm:$0xff]  ;;  %v658_v23 = vld [vmem:[%s1053_s1 + $0x16] ss:$0 sm:$0xff]  ;;  %v659_v24 = vld [vmem:[%s1053_s1 + $0x15] ss:$0 sm:$0xff] }
   0x9   :  { %v660_v25 = vld [vmem:[%s1053_s1 + $0x1a] ss:$0 sm:$0xff]  ;;  %v661_v26 = vld [vmem:[%s1053_s1 + $0x19] ss:$0 sm:$0xff]  ;;  %v662_v27 = vld [vmem:[%s1053_s1 + $0x18] ss:$0 sm:$0xff] }
   0xa   :  { %133 = vperm.xlu2 %635, %v639_v4   ;;  %v663_v28 = vld [vmem:[%s1053_s1 + $0x1d] ss:$0 sm:$0xff]  ;;  %v664_v29 = vld [vmem:[%s1053_s1 + $0x1c] ss:$0 sm:$0xff]  ;;  %v665_v30 = vld [vmem:[%s1053_s1 + $0x1b] ss:$0 sm:$0xff] }
   0xb   :  { %125 = vperm.xlu1 %634, %v640_v5   ;;  %117 = vperm.xlu0 %633, %v641_v6   ;;  %v336_v31 = vld [vmem:[%s1054_s2] sm:$0xf]  ;;  %v666_v32 = vld [vmem:[%s1053_s1 + $0x1f] ss:$0 sm:$0xff]  ;;  %v667_v33 = vld [vmem:[%s1053_s1 + $0x1e] ss:$0 sm:$0xff] }
   0xc   :  { %v339_v34 = vld [vmem:[%s1054_s2 + $0xc] sm:$0xf]  ;;  %v338_v35 = vld [vmem:[%s1054_s2 + $0x8] sm:$0xf]  ;;  %v337_v36 = vld [vmem:[%s1054_s2 + $0x4] sm:$0xf] }
   0xd   :  { %v342_v38 = vld [vmem:[%s1054_s2 + $0x18] sm:$0xf]  ;;  %v341_v39 = vld [vmem:[%s1054_s2 + $0x14] sm:$0xf]  ;;  %v340_v40 = vld [vmem:[%s1054_s2 + $0x10] sm:$0xf] }
   0xe   :  { %v345_v42 = vld [vmem:[%s1054_s2 + $0x24] sm:$0xf]  ;;  %v344_v43 = vld [vmem:[%s1054_s2 + $0x20] sm:$0xf]  ;;  %v343_v44 = vld [vmem:[%s1054_s2 + $0x1c] sm:$0xf] }
   0xf   :  { %v348_v46 = vld [vmem:[%s1054_s2 + $0x30] sm:$0xf]  ;;  %v347_v47 = vld [vmem:[%s1054_s2 + $0x2c] sm:$0xf]  ;;  %v346_v48 = vld [vmem:[%s1054_s2 + $0x28] sm:$0xf] }
  0x10   :  { %v351_v52 = vld [vmem:[%s1054_s2 + $0x3c] sm:$0xf]  ;;  %v350_v53 = vld [vmem:[%s1054_s2 + $0x38] sm:$0xf]  ;;  %v349_v54 = vld [vmem:[%s1054_s2 + $0x34] sm:$0xf] }
  0x11   :  { %v354_v58 = vld [vmem:[%s1054_s2 + $0x48] sm:$0xf]  ;;  %v353_v59 = vld [vmem:[%s1054_s2 + $0x44] sm:$0xf]  ;;  %v352_v60 = vld [vmem:[%s1054_s2 + $0x40] sm:$0xf] }
  0x12   :  { %145 = vperm.xlu2 %635, %v642_v7   ;;  %v357_v0 = vld [vmem:[%s1054_s2 + $0x54] sm:$0xf]  ;;  %v356_v1 = vld [vmem:[%s1054_s2 + $0x50] sm:$0xf]  ;;  %v355_v2 = vld [vmem:[%s1054_s2 + $0x4c] sm:$0xf] }
  0x13   :  { %141 = vperm.xlu1 %634, %v643_v8   ;;  %137 = vperm.xlu0 %633, %v644_v9   ;;  %v360_v6 = vld [vmem:[%s1054_s2 + $0x60] sm:$0xf]  ;;  %v359_v7 = vld [vmem:[%s1054_s2 + $0x5c] sm:$0xf]  ;;  %v358_v8 = vld [vmem:[%s1054_s2 + $0x58] sm:$0xf] }
  0x1a   :  { %157 = vperm.xlu2 %635, %v645_v10  }
  0x1b   :  { %153 = vperm.xlu1 %634, %v646_v11   ;;  %149 = vperm.xlu0 %633, %v647_v12   ;;  %v363_v12 = vld [vmem:[%s1054_s2 + $0x6c] sm:$0xf] }
  0x22   :  { %169 = vperm.xlu2 %635, %v648_v13   ;;  %v362_v13 = vld [vmem:[%s1054_s2 + $0x68] sm:$0xf] }
  0x23   :  { %165 = vperm.xlu1 %634, %v649_v14   ;;  %161 = vperm.xlu0 %633, %v650_v15   ;;  %v361_v14 = vld [vmem:[%s1054_s2 + $0x64] sm:$0xf] }
  0x2a   :  { %181 = vperm.xlu2 %635, %v651_v16  }
  0x2b   :  { %177 = vperm.xlu1 %634, %v652_v17   ;;  %173 = vperm.xlu0 %633, %v653_v18   ;;  %v366_v18 = vld [vmem:[%s1054_s2 + $0x78] sm:$0xf] }
  0x32   :  { %193 = vperm.xlu2 %635, %v654_v19   ;;  %v365_v19 = vld [vmem:[%s1054_s2 + $0x74] sm:$0xf] }
  0x33   :  { %189 = vperm.xlu1 %634, %v655_v20   ;;  %185 = vperm.xlu0 %633, %v656_v21   ;;  %v364_v20 = vld [vmem:[%s1054_s2 + $0x70] sm:$0xf] }
  0x3a   :  { %205 = vperm.xlu2 %635, %v657_v22  }
  0x3b   :  { %201 = vperm.xlu1 %634, %v658_v23   ;;  %197 = vperm.xlu0 %633, %v659_v24   ;;  %v367_v24 = vld [vmem:[%s1054_s2 + $0x7c] sm:$0xf] }
  0x42   :  { %217 = vperm.xlu2 %635, %v660_v25  }
  0x43   :  { %213 = vperm.xlu1 %634, %v661_v26   ;;  %209 = vperm.xlu0 %633, %v662_v27  }
  0x4a   :  { %229 = vperm.xlu2 %635, %v663_v28  }
  0x4b   :  { %225 = vperm.xlu1 %634, %v664_v29   ;;  %221 = vperm.xlu0 %633, %v665_v30  }
  0x52   :  { %370 = vperm.xlu2 %635, %v336_v31   ;;  %v940_v31 = vld [vmem:[%s1055_s0] sm:$0xf] }
  0x53   :  { %237 = vperm.xlu1 %634, %v666_v32   ;;  %233 = vperm.xlu0 %633, %v667_v33  }
  0x5a   :  { %385 = vperm.xlu2 %635, %v339_v34   ;;  %v947_v34 = vmul.f32 31.0, %v940_v31 }
  0x5b   :  { %380 = vperm.xlu1 %634, %v338_v35   ;;  %375 = vperm.xlu0 %633, %v337_v36  }
  0x5c   :  { %v797_v37 = vpop.permute.xlu2 %129 }
  0x62   :  { %400 = vperm.xlu2 %635, %v342_v38  }
  0x63   :  { %395 = vperm.xlu1 %634, %v341_v39   ;;  %390 = vperm.xlu0 %633, %v340_v40  }
  0x64   :  { %v808_v41 = vpop.permute.xlu2 %133 }
  0x6a   :  { %415 = vperm.xlu2 %635, %v345_v42  }
  0x6b   :  { %410 = vperm.xlu1 %634, %v344_v43   ;;  %405 = vperm.xlu0 %633, %v343_v44  }
  0x6c   :  { %v819_v45 = vpop.permute.xlu2 %145 }
  0x72   :  { %430 = vperm.xlu2 %635, %v348_v46  }
  0x73   :  { %425 = vperm.xlu1 %634, %v347_v47   ;;  %420 = vperm.xlu0 %633, %v346_v48  }
  0x74   :  { %v830_v49 = vpop.permute.xlu2 %157 }
  0x75   :  { %v832_v50 = vpop.permute.xlu1 %121  ;;  %v834_v51 = vpop.permute.xlu0 %113 }
  0x76   :  { %v240_v35 = vsub.f32 %v947_v34, %v834_v51  ;;  %v242_v36 = vsub.f32 %v947_v34, %v832_v50  ;;  %v244_v51 = vsub.f32 %v947_v34, %v797_v37  ;;  %v245_v50 = vsub.f32 %v947_v34, %v808_v41 }
  0x78   :  { %v272_v43 = vmax.f32 %v240_v35, 0.0  ;;  %v274_v46 = vmax.f32 %v242_v36, 0.0 }
  0x7a   :  { %445 = vperm.xlu2 %635, %v351_v52   ;;  %v304_v48 = vmin.f32 %v272_v43, 1.0 }
  0x7b   :  { %440 = vperm.xlu1 %634, %v350_v53   ;;  %435 = vperm.xlu0 %633, %v349_v54   ;;  %v306_v53 = vmin.f32 %v274_v46, 1.0 }
  0x7c   :  { %v845_v55 = vpop.permute.xlu2 %169 }
  0x7d   :  { %v847_v56 = vpop.permute.xlu1 %125  ;;  %v849_v57 = vpop.permute.xlu0 %117 }
  0x7e   :  { %v241_v38 = vsub.f32 %v947_v34, %v849_v57  ;;  %v243_v44 = vsub.f32 %v947_v34, %v847_v56 }
  0x80   :  { %v273_v47 = vmax.f32 %v241_v38, 0.0  ;;  %v275_v52 = vmax.f32 %v243_v44, 0.0 }
  0x82   :  { %460 = vperm.xlu2 %635, %v354_v58   ;;  %v305_v54 = vmin.f32 %v273_v47, 1.0 }
  0x83   :  { %455 = vperm.xlu1 %634, %v353_v59   ;;  %450 = vperm.xlu0 %633, %v352_v60   ;;  %v307_v60 = vmin.f32 %v275_v52, 1.0 }
  0x84   :  { %v860_v61 = vpop.permute.xlu2 %181 }
  0x85   :  { %v862_v62 = vpop.permute.xlu1 %141  ;;  %v864_v63 = vpop.permute.xlu0 %137 }
  0x86   :  { %v246_v56 = vsub.f32 %v947_v34, %v864_v63 }
  0x8a   :  { %475 = vperm.xlu2 %635, %v357_v0  }
  0x8b   :  { %470 = vperm.xlu1 %634, %v356_v1   ;;  %465 = vperm.xlu0 %633, %v355_v2  }
  0x8c   :  { %v875_v3 = vpop.permute.xlu2 %193 }
  0x8d   :  { %v877_v4 = vpop.permute.xlu1 %153  ;;  %v879_v5 = vpop.permute.xlu0 %149 }
  0x8e   :  { %v249_v43 = vsub.f32 %v947_v34, %v879_v5  ;;  %v250_v5 = vsub.f32 %v947_v34, %v877_v4 }
  0x92   :  { %490 = vperm.xlu2 %635, %v360_v6   ;;  %v276_v6 = vmax.f32 %v244_v51, 0.0 }
  0x93   :  { %485 = vperm.xlu1 %634, %v359_v7   ;;  %480 = vperm.xlu0 %633, %v358_v8   ;;  %v277_v7 = vmax.f32 %v245_v50, 0.0 }
  0x94   :  { %v890_v9 = vpop.permute.xlu2 %205 }
  0x95   :  { %v892_v10 = vpop.permute.xlu1 %165  ;;  %v894_v11 = vpop.permute.xlu0 %161  ;;  %v309_v63 = vmin.f32 %v277_v7, 1.0 }
  0x9a   :  { %505 = vperm.xlu2 %635, %v363_v12  }
  0x9b   :  { %500 = vperm.xlu1 %634, %v362_v13   ;;  %495 = vperm.xlu0 %633, %v361_v14   ;;  %v278_v13 = vmax.f32 %v246_v56, 0.0 }
  0x9c   :  { %v905_v15 = vpop.permute.xlu2 %217 }
  0x9d   :  { %v907_v16 = vpop.permute.xlu1 %177  ;;  %v909_v17 = vpop.permute.xlu0 %173  ;;  %v310_v38 = vmin.f32 %v278_v13, 1.0 }
  0xa2   :  { %520 = vperm.xlu2 %635, %v366_v18   ;;  %v248_v18 = vsub.f32 %v947_v34, %v819_v45 }
  0xa3   :  { %515 = vperm.xlu1 %634, %v365_v19   ;;  %510 = vperm.xlu0 %633, %v364_v20   ;;  %v308_v20 = vmin.f32 %v276_v6, 1.0  ;;  %v252_v6 = vsub.f32 %v947_v34, %v894_v11  ;;  %v253_v11 = vsub.f32 %v947_v34, %v892_v10 }
  0xa4   :  { %v924_v23 = vpop.permute.xlu2 %229  ;;  %v280_v47 = vmax.f32 %v248_v18, 0.0 }
  0xa5   :  { %v920_v21 = vpop.permute.xlu1 %189  ;;  %v922_v22 = vpop.permute.xlu0 %185 }
  0xab   :  { %525 = vperm.xlu0 %633, %v367_v24   ;;  %v247_v24 = vsub.f32 %v947_v34, %v862_v62 }
  0xac   :  { %v371_v27 = vpop.permute.xlu2 %370 }
  0xad   :  { %v929_v25 = vpop.permute.xlu1 %201  ;;  %v931_v26 = vpop.permute.xlu0 %197  ;;  %v528_v57 = vmul.f32 %v371_v27, %v304_v48  ;;  %v279_v48 = vmax.f32 %v247_v24, 0.0 }
  0xaf   :  { %v561_v37 = vsel %vm560_vm0, %v528_v57, 0.0 }
  0xb4   :  { %v386_v30 = vpop.permute.xlu2 %385 }
  0xb5   :  { %v933_v28 = vpop.permute.xlu1 %213  ;;  %v935_v29 = vpop.permute.xlu0 %209  ;;  %v531_v8 = vmul.f32 %v386_v30, %v307_v60 }
  0xb7   :  { %v566_v27 = vsel %vm560_vm0, %v531_v8, 0.0 }
  0xbc   :  { %v401_v39 = vpop.permute.xlu2 %400 }
  0xbd   :  { %v942_v32 = vpop.permute.xlu1 %225  ;;  %v944_v33 = vpop.permute.xlu0 %221  ;;  %v534_v45 = vmul.f32 %v401_v39, %v310_v38  ;;  %v255_v38 = vsub.f32 %v947_v34, %v909_v17  ;;  %v256_v17 = vsub.f32 %v947_v34, %v907_v16 }
  0xbf   :  { %v572_v60 = vsel %vm560_vm0, %v534_v45, 0.0 }
  0xc4   :  { %v416_v0 = vpop.permute.xlu2 %415 }
  0xc5   :  { %v955_v40 = vpop.permute.xlu1 %237  ;;  %v957_v42 = vpop.permute.xlu0 %233 }
  0xcc   :  { %v431_v52 = vpop.permute.xlu2 %430 }
  0xcd   :  { %v381_v58 = vpop.permute.xlu1 %380  ;;  %v376_v59 = vpop.permute.xlu0 %375 }
  0xce   :  { %v530_v1 = vmul.f32 %v381_v58, %v306_v53  ;;  %v529_v2 = vmul.f32 %v376_v59, %v305_v54  ;;  %v281_v53 = vmax.f32 %v249_v43, 0.0  ;;  %v312_v54 = vmin.f32 %v280_v47, 1.0 }
  0xcf   :  { %v251_v58 = vsub.f32 %v947_v34, %v830_v49  ;;  %v311_v59 = vmin.f32 %v279_v48, 1.0  ;;  %v285_v47 = vmax.f32 %v253_v11, 0.0 }
  0xd0   :  { %v562_v41 = vsel %vm560_vm0, %v529_v2, 0.0  ;;  %v564_v14 = vsel %vm560_vm0, %v530_v1, 0.0  ;;  %v313_v2 = vmin.f32 %v281_v53, 1.0 }
  0xd1   :  { %v563_v12 = vadd.f32 %v562_v41, %v561_v37  ;;  %v283_v8 = vmax.f32 %v251_v58, 0.0  ;;  %v282_v41 = vmax.f32 %v250_v5, 0.0 }
  0xd3   :  { %v565_v19 = vadd.f32 %v564_v14, %v563_v12  ;;  %v537_v12 = vmul.f32 %v416_v0, %v313_v2  ;;  %v284_v14 = vmax.f32 %v252_v6, 0.0  ;;  %v314_v24 = vmin.f32 %v282_v41, 1.0 }
  0xd4   :  { %v446_v18 = vpop.permute.xlu2 %445  ;;  %v288_v6 = vmax.f32 %v256_v17, 0.0  ;;  %v260_v41 = vsub.f32 %v947_v34, %v875_v3 }
  0xd5   :  { %v396_v35 = vpop.permute.xlu1 %395  ;;  %v391_v36 = vpop.permute.xlu0 %390  ;;  %v567_v30 = vadd.f32 %v566_v27, %v565_v19  ;;  %v254_v19 = vsub.f32 %v947_v34, %v845_v55  ;;  %v578_v27 = vsel %vm560_vm0, %v537_v12, 0.0 }
  0xd6   :  { %v533_v44 = vmul.f32 %v396_v35, %v309_v63  ;;  %v532_v46 = vmul.f32 %v391_v36, %v308_v20  ;;  %v315_v63 = vmin.f32 %v283_v8, 1.0 }
  0xd8   :  { %v568_v51 = vsel %vm560_vm0, %v532_v46, 0.0  ;;  %v570_v62 = vsel %vm560_vm0, %v533_v44, 0.0  ;;  %v286_v46 = vmax.f32 %v254_v19, 0.0 }
  0xd9   :  { %v569_v50 = vadd.f32 %v568_v51, %v567_v30  ;;  %v316_v30 = vmin.f32 %v284_v14, 1.0  ;;  %v287_v51 = vmax.f32 %v255_v38, 0.0 }
  0xdb   :  { %v571_v57 = vadd.f32 %v570_v62, %v569_v50  ;;  %v540_v55 = vmul.f32 %v431_v52, %v316_v30  ;;  %v318_v50 = vmin.f32 %v286_v46, 1.0  ;;  %v257_v62 = vsub.f32 %v947_v34, %v860_v61 }
  0xdc   :  { %v461_v58 = vpop.permute.xlu2 %460  ;;  %v263_v46 = vsub.f32 %v947_v34, %v890_v9 }
  0xdd   :  { %v411_v56 = vpop.permute.xlu1 %410  ;;  %v406_v39 = vpop.permute.xlu0 %405  ;;  %v573_v1 = vadd.f32 %v572_v60, %v571_v57  ;;  %v584_v57 = vsel %vm560_vm0, %v540_v55, 0.0  ;;  %v319_v60 = vmin.f32 %v287_v51, 1.0  ;;  %v289_v2 = vmax.f32 %v257_v62, 0.0 }
  0xde   :  { %v536_v7 = vmul.f32 %v411_v56, %v312_v54  ;;  %v535_v37 = vmul.f32 %v406_v39, %v311_v59  ;;  %v317_v54 = vmin.f32 %v285_v47, 1.0  ;;  %v258_v56 = vsub.f32 %v947_v34, %v922_v22 }
  0xdf   :  { %v259_v22 = vsub.f32 %v947_v34, %v920_v21 }
  0xe0   :  { %v574_v49 = vsel %vm560_vm0, %v535_v37, 0.0  ;;  %v576_v4 = vsel %vm560_vm0, %v536_v7, 0.0  ;;  %v543_v7 = vmul.f32 %v446_v18, %v319_v60  ;;  %v290_v8 = vmax.f32 %v258_v56, 0.0 }
  0xe1   :  { %v575_v13 = vadd.f32 %v574_v49, %v573_v1  ;;  %v321_v49 = vmin.f32 %v289_v2, 1.0  ;;  %v291_v3 = vmax.f32 %v259_v22, 0.0 }
  0xe2   :  { %v590_v14 = vsel %vm560_vm0, %v543_v7, 0.0 }
  0xe3   :  { %v577_v20 = vadd.f32 %v576_v4, %v575_v13  ;;  %v320_v13 = vmin.f32 %v288_v6, 1.0  ;;  %v323_v47 = vmin.f32 %v291_v3, 1.0  ;;  %v270_v3 = vsub.f32 %v947_v34, %v957_v42 }
  0xe5   :  { %v426_v35 = vpop.permute.xlu1 %425  ;;  %v421_v0 = vpop.permute.xlu0 %420  ;;  %v579_v36 = vadd.f32 %v578_v27, %v577_v20  ;;  %v322_v20 = vmin.f32 %v290_v8, 1.0 }
  0xe6   :  { %v539_v43 = vmul.f32 %v426_v35, %v315_v63  ;;  %v538_v44 = vmul.f32 %v421_v0, %v314_v24  ;;  %v261_v63 = vsub.f32 %v947_v34, %v931_v26  ;;  %v476_v24 = vpop.permute.xlu2 %475  ;;  %v292_v35 = vmax.f32 %v260_v41, 0.0 }
  0xe7   :  { %v546_v0 = vmul.f32 %v461_v58, %v322_v20  ;;  %v262_v26 = vsub.f32 %v947_v34, %v929_v25 }
  0xe8   :  { %v580_v48 = vsel %vm560_vm0, %v538_v44, 0.0  ;;  %v582_v10 = vsel %vm560_vm0, %v539_v43, 0.0  ;;  %v293_v38 = vmax.f32 %v261_v63, 0.0  ;;  %v324_v43 = vmin.f32 %v292_v35, 1.0 }
  0xe9   :  { %v581_v45 = vadd.f32 %v580_v48, %v579_v36  ;;  %v596_v55 = vsel %vm560_vm0, %v546_v0, 0.0  ;;  %v294_v17 = vmax.f32 %v262_v26, 0.0 }
  0xeb   :  { %v583_v53 = vadd.f32 %v582_v10, %v581_v45  ;;  %v325_v10 = vmin.f32 %v293_v38, 1.0 }
  0xed   :  { %v441_v59 = vpop.permute.xlu1 %440  ;;  %v436_v52 = vpop.permute.xlu0 %435  ;;  %v585_v5 = vadd.f32 %v584_v57, %v583_v53  ;;  %v549_v57 = vmul.f32 %v476_v24, %v325_v10 }
  0xee   :  { %v542_v39 = vmul.f32 %v441_v59, %v318_v50  ;;  %v541_v1 = vmul.f32 %v436_v52, %v317_v54  ;;  %v264_v50 = vsub.f32 %v947_v34, %v935_v29  ;;  %v295_v54 = vmax.f32 %v263_v46, 0.0  ;;  %v491_v58 = vpop.permute.xlu2 %490 }
  0xef   :  { %v265_v29 = vsub.f32 %v947_v34, %v933_v28 }
  0xf0   :  { %v586_v61 = vsel %vm560_vm0, %v541_v1, 0.0  ;;  %v588_v16 = vsel %vm560_vm0, %v542_v39, 0.0  ;;  %v296_v52 = vmax.f32 %v264_v50, 0.0  ;;  %v327_v56 = vmin.f32 %v295_v54, 1.0 }
  0xf1   :  { %v587_v37 = vadd.f32 %v586_v61, %v585_v5  ;;  %v266_v5 = vsub.f32 %v947_v34, %v905_v15  ;;  %v326_v39 = vmin.f32 %v294_v17, 1.0  ;;  %v602_v1 = vsel %vm560_vm0, %v549_v57, 0.0 }
  0xf2   :  { %v328_v61 = vmin.f32 %v296_v52, 1.0 }
  0xf3   :  { %v589_v12 = vadd.f32 %v588_v16, %v587_v37  ;;  %v267_v37 = vsub.f32 %v947_v34, %v944_v33  ;;  %v298_v41 = vmax.f32 %v266_v5, 0.0  ;;  %v268_v33 = vsub.f32 %v947_v34, %v942_v32 }
  0xf4   :  { %v552_v15 = vmul.f32 %v491_v58, %v328_v61 }
  0xf5   :  { %v456_v4 = vpop.permute.xlu1 %455  ;;  %v451_v19 = vpop.permute.xlu0 %450  ;;  %v591_v18 = vadd.f32 %v590_v14, %v589_v12  ;;  %v297_v12 = vmax.f32 %v265_v29, 0.0  ;;  %v299_v22 = vmax.f32 %v267_v37, 0.0  ;;  %v300_v38 = vmax.f32 %v268_v33, 0.0 }
  0xf6   :  { %v545_v11 = vmul.f32 %v456_v4, %v321_v49  ;;  %v544_v27 = vmul.f32 %v451_v19, %v320_v13  ;;  %v506_v14 = vpop.permute.xlu2 %505  ;;  %v330_v4 = vmin.f32 %v298_v41, 1.0  ;;  %v608_v63 = vsel %vm560_vm0, %v552_v15, 0.0 }
  0xf7   :  { %v329_v20 = vmin.f32 %v297_v12, 1.0  ;;  %v331_v35 = vmin.f32 %v299_v22, 1.0  ;;  %v332_v26 = vmin.f32 %v300_v38, 1.0 }
  0xf8   :  { %v592_v36 = vsel %vm560_vm0, %v544_v27, 0.0  ;;  %v594_v21 = vsel %vm560_vm0, %v545_v11, 0.0 }
  0xf9   :  { %v593_v30 = vadd.f32 %v592_v36, %v591_v18  ;;  %v269_v18 = vsub.f32 %v947_v34, %v924_v23 }
  0xfb   :  { %v595_v44 = vadd.f32 %v594_v21, %v593_v30  ;;  %v301_v30 = vmax.f32 %v269_v18, 0.0  ;;  %v555_v21 = vmul.f32 %v506_v14, %v331_v35 }
  0xfd   :  { %v471_v48 = vpop.permute.xlu1 %470  ;;  %v466_v45 = vpop.permute.xlu0 %465  ;;  %v597_v51 = vadd.f32 %v596_v55, %v595_v44  ;;  %v302_v44 = vmax.f32 %v270_v3, 0.0  ;;  %v271_v55 = vsub.f32 %v947_v34, %v955_v40 }
  0xfe   :  { %v548_v53 = vmul.f32 %v471_v48, %v324_v43  ;;  %v547_v62 = vmul.f32 %v466_v45, %v323_v47  ;;  %v333_v47 = vmin.f32 %v301_v30, 1.0  ;;  %v614_v48 = vsel %vm560_vm0, %v555_v21, 0.0  ;;  %v521_v42 = vpop.permute.xlu2 %520 }
  0xff   :  { %v334_v50 = vmin.f32 %v302_v44, 1.0  ;;  %v303_v54 = vmax.f32 %v271_v55, 0.0 }
 0x100   :  { %v598_v9 = vsel %vm560_vm0, %v547_v62, 0.0  ;;  %v600_v25 = vsel %vm560_vm0, %v548_v53, 0.0 }
 0x101   :  { %v599_v59 = vadd.f32 %v598_v9, %v597_v51  ;;  %v558_v17 = vmul.f32 %v521_v42, %v334_v50  ;;  %v335_v52 = vmin.f32 %v303_v54, 1.0 }
 0x103   :  { %v601_v60 = vadd.f32 %v600_v25, %v599_v59  ;;  %v620_v34 = vsel %vm560_vm0, %v558_v17, 0.0 }
 0x105   :  { %v486_v2 = vpop.permute.xlu1 %485  ;;  %v481_v6 = vpop.permute.xlu0 %480  ;;  %v603_v7 = vadd.f32 %v602_v1, %v601_v60 }
 0x106   :  { %v551_v8 = vmul.f32 %v486_v2, %v327_v56  ;;  %v550_v16 = vmul.f32 %v481_v6, %v326_v39 }
 0x108   :  { %v604_v49 = vsel %vm560_vm0, %v550_v16, 0.0  ;;  %v606_v28 = vsel %vm560_vm0, %v551_v8, 0.0 }
 0x109   :  { %v605_v13 = vadd.f32 %v604_v49, %v603_v7 }
 0x10b   :  { %v607_v19 = vadd.f32 %v606_v28, %v605_v13 }
 0x10d   :  { %v501_v24 = vpop.permute.xlu1 %500  ;;  %v496_v11 = vpop.permute.xlu0 %495  ;;  %v609_v27 = vadd.f32 %v608_v63, %v607_v19 }
 0x10e   :  { %v554_v0 = vmul.f32 %v501_v24, %v330_v4  ;;  %v553_v36 = vmul.f32 %v496_v11, %v329_v20 }
 0x110   :  { %v610_v23 = vsel %vm560_vm0, %v553_v36, 0.0  ;;  %v612_v32 = vsel %vm560_vm0, %v554_v0, 0.0 }
 0x111   :  { %v611_v43 = vadd.f32 %v610_v23, %v609_v27 }
 0x113   :  { %v613_v46 = vadd.f32 %v612_v32, %v611_v43 }
 0x115   :  { %v516_v45 = vpop.permute.xlu1 %515  ;;  %v511_v51 = vpop.permute.xlu0 %510  ;;  %v615_v10 = vadd.f32 %v614_v48, %v613_v46 }
 0x116   :  { %v557_v53 = vmul.f32 %v516_v45, %v333_v47  ;;  %v556_v62 = vmul.f32 %v511_v51, %v332_v26 }
 0x118   :  { %v616_v57 = vsel %vm560_vm0, %v556_v62, 0.0  ;;  %v618_v9 = vsel %vm560_vm0, %v557_v53, 0.0 }
 0x119   :  { %v617_v58 = vadd.f32 %v616_v57, %v615_v10 }
 0x11b   :  { %v619_v59 = vadd.f32 %v618_v9, %v617_v58 }
 0x11d   :  { %v526_v40 = vpop.permute.xlu0 %525  ;;  %v621_v25 = vadd.f32 %v620_v34, %v619_v59 }
 0x11e   :  { %v559_v5 = vmul.f32 %v526_v40, %v335_v52 }
 0x120   :  { %v622_v60 = vsel %vm560_vm0, %v559_v5, 0.0 }
 0x121   :  { %v623_v56 = vadd.f32 %v622_v60, %v621_v25 }
 0x123   :  { %v624_v39 = vmul.f32 %v623_v56, %v940_v31 }
 0x125   :  { %v625_v29 = vmax.f32 %v624_v39, 0.0 }
 0x127   :  { %v626_v1 = vmin.f32 %v625_v29, 1.0 }
 0x129   :  { %627 = vst [vmem:[%s1056_s3] sm:$0xf] %v626_v1 }

</bundles_post_ra>
